<compile_context>
chip_gen: v6e
topology: v6e:2x2x1
jax: 0.10.0
libtpu: 0.0.40
codegen_flags: <defaults>
</compile_context>

<pallas_src>
import functools

import numpy as np
import jax
import jax.numpy as jnp
from jax.experimental import pallas as pl
from jax.experimental.pallas import tpu as pltpu

# ----------------------------- hyperparams (H) ------------------------------
BATCH = 2
LATENT_DIM = 32          # H.latent_dim
N_MLP = 2                # H.n_mpl
WIDTH = 32               # H.width
BOTTLENECK_MULTIPLE = 0.5
ARCHITECTURE = "8x2"     # two ModelBlocks at resolution 8, no mixin/down_rate
IMAGE_CHANNELS = 3
CUSTOM_WIDTH_STR = ""

COND_WIDTH = int(WIDTH * BOTTLENECK_MULTIPLE)
OUT_ROWS = 8             # sublane-padded output channel rows for the lane-dense store


def parse_layer_string(s):
    layers = []
    for ss in s.split(','):
        if 'x' in ss:
            res, num = ss.split('x')
            layers += [(int(res), None) for _ in range(int(num))]
        elif 'm' in ss:
            res, mixin = [int(a) for a in ss.split('m')]
            layers.append((res, mixin))
        elif 'd' in ss:
            res, down = [int(a) for a in ss.split('d')]
            layers.append((res, down))
        else:
            layers.append((int(ss), None))
    return layers


BLOCKS = parse_layer_string(ARCHITECTURE)
RES = sorted({r for r, _ in BLOCKS})[0]
HW = RES * RES
N_BLOCKS = len(BLOCKS)

# TODO(synk): the mixin path (F.interpolate) of ModelBlock is not implemented;
# the chosen architecture string contains no mixin / down_rate blocks.
assert all(m is None for _, m in BLOCKS)
assert RES > 2                       # use_3x3 branch of Block
assert RES & (RES - 1) == 0

_SQRT_2_OVER_PI = 0.7978845608028654


def _gelu(x):
    # TODO(synk): PyTorch F.gelu defaults to the exact erf formulation; the
    # tanh approximation is used here (erf is not guaranteed to lower in Mosaic).
    return 0.5 * x * (1.0 + jnp.tanh(_SQRT_2_OVER_PI * (x + 0.044715 * x * x * x)))


# ------------------------- host-side constant tables -------------------------
def _conv_tap_masks(Ws, B, Cm):
    """(9, Cm, B*Ws*Ws) float masks: 1 where the shifted 3x3 tap is in-bounds."""
    HWl = Ws * Ws
    n = np.arange(B * HWl)
    yy = (n % HWl) // Ws
    xx = (n % HWl) % Ws
    m = np.zeros((9, Cm, B * HWl), np.float32)
    for k in range(9):
        dy, dx = k // 3 - 1, k % 3 - 1
        ok = (yy + dy >= 0) & (yy + dy < Ws) & (xx + dx >= 0) & (xx + dx < Ws)
        m[k, :, :] = ok.astype(np.float32)[None, :]
    return m


def _segment_mats(HWl, B):
    """avg (N,B): per-image spatial averaging; bcast (B,N): broadcast back."""
    seg = np.arange(B * HWl) // HWl
    bcast = (seg[None, :] == np.arange(B)[:, None]).astype(np.float32)  # (B, N)
    avg = bcast.T / float(HWl)                                          # (N, B)
    return avg, bcast


# ------------------------------ fused kernel ---------------------------------
# Everything (mapping network, both ModelBlocks, output head) in one kernel.
def fused_model_kernel(z_ref, wmap_ref, bmap_ref, const_ref, wsty_ref, bsty_ref,
                       w1_ref, b1_ref, w2_ref, b2_ref, w3_ref, b3_ref,
                       w4_ref, b4_ref, wf_ref, bf_ref,
                       mask_ref, avg_ref, bcast_ref, o_ref,
                       *, B, Ws, n_mlp, n_blocks, C, Cm):
    HWl = Ws * Ws
    N = B * HWl

    def mm(a, b):
        return jnp.dot(a, b, preferred_element_type=jnp.float32)

    # ---- mapping network: n_mlp x (Linear + LeakyReLU(0.2)), kept as (D, B)
    # TODO(synk): MappingNetowrk is not provided in the reference; a standard
    # StyleGAN-style Linear+LeakyReLU stack is assumed.
    wlat = z_ref[...]                                      # (D, B)
    for l in range(n_mlp):                                 # static unroll
        wlat = mm(wmap_ref[l], wlat) + bmap_ref[l]
        wlat = jnp.where(wlat > 0.0, wlat, 0.2 * wlat)

    # ---- all AdaIN affines (gamma|beta for every block) in one matmul
    styles = mm(wsty_ref[...], wlat) + bsty_ref[...]       # (n_blocks*2C, B)

    avg = avg_ref[...]        # (N, B): per-image spatial averaging matrix
    bcast = bcast_ref[...]    # (B, N): per-image broadcast-back matrix

    x = const_ref[...]        # (C, N): constant input already tiled over batch

    def conv3x3(g, wT_ref, l, bk):
        # 9 shifted taps built in-register with lane rolls (XLU slot); rolled
        # positions that wrap across row / image borders are exactly the
        # zero-padded taps and are zeroed with host-precomputed float masks.
        # Each tap feeds one small accumulating MXU matmul (MXU is idle).
        acc = None
        for k in range(9):
            dy, dx = k // 3 - 1, k % 3 - 1
            s = dy * Ws + dx                               # tap[n] = g[n + s]
            tap = g if s == 0 else pltpu.roll(g, shift=(-s) % N, axis=1)
            if s != 0:
                tap = tap * mask_ref[k]
            t = mm(wT_ref[l, k], tap)
            acc = t if acc is None else acc + t
        return acc + bk

    # ---- ModelBlocks: AdaIN + residual Block
    for l in range(n_blocks):                              # static unroll
        base = 2 * l * C
        gamma_t = styles[base:base + C, :]                 # (C, B)
        beta_t = styles[base + C:base + 2 * C, :]          # (C, B)

        # InstanceNorm2d(affine=False, eps=1e-5): per-image mean/var computed
        # as matmuls against the segment-averaging matrix (no cross-lane XLU
        # reductions, no per-batch slicing), broadcast back via its transpose.
        mean_cb = mm(x, avg)                               # (C, B)
        cen = x - mm(mean_cb, bcast)                       # centered, (C, N)
        var_cb = mm(cen * cen, avg)                        # (C, B), biased var
        scale_cb = gamma_t * jax.lax.rsqrt(var_cb + 1e-5)  # (C, B)
        sb = mm(jnp.concatenate([scale_cb, beta_t], axis=0), bcast)  # (2C, N)
        xa = sb[:C, :] * cen + sb[C:, :]                   # AdaIN output

        # residual Block: c1(1x1) -> c2(3x3) -> c3(3x3) -> c4(1x1), gelu first
        h = mm(w1_ref[l], _gelu(xa)) + b1_ref[l]           # (Cm, N)
        h = conv3x3(_gelu(h), w2_ref, l, b2_ref[l])        # (Cm, N)
        h = conv3x3(_gelu(h), w3_ref, l, b3_ref[l])        # (Cm, N)
        h = mm(w4_ref[l], _gelu(h)) + b4_ref[l]            # (C, N)
        x = xa + h                                         # residual=True

    # ---- output head: 1x1 conv with gain/bias pre-folded; lane-dense store
    o_ref[...] = mm(wf_ref[...], x) + bf_ref[...]


# --------------------------------- wrapper -----------------------------------
def model_forward(latent_code, packed):
    B = latent_code.shape[0]
    kernel = functools.partial(fused_model_kernel, B=B, Ws=RES, n_mlp=N_MLP,
                               n_blocks=N_BLOCKS, C=WIDTH, Cm=COND_WIDTH)
    # TODO(synk): on v7x (2 TensorCores) the batch could be sharded with
    # grid=(B,) + dimension_semantics=("parallel",); kept gridless here since
    # v5e/v6e have a single TC and the per-step overhead outweighs it at this size.
    out = pl.pallas_call(
        kernel,
        out_shape=jax.ShapeDtypeStruct((OUT_ROWS, B * HW), jnp.float32),
    )(latent_code.T, packed['wmapT'], packed['bmapT'], packed['const'],
      packed['wsty'], packed['bsty'],
      packed['w1T'], packed['b1'], packed['w2T'], packed['b2'],
      packed['w3T'], packed['b3'], packed['w4T'], packed['b4'],
      packed['wfT'], packed['bfT'],
      packed['masks'], packed['avg'], packed['bcast'])
    # slice to 3 channels + NCHW layout: cheap plumbing in XLA
    y = out[:IMAGE_CHANNELS].reshape(IMAGE_CHANNELS, B, RES, RES)
    return y.transpose(1, 0, 2, 3)


def pack_params(params, B=BATCH):
    """Transpose/stack weights into the channel-major (w @ x) layout, pre-tile
    the constant over the batch, pre-broadcast the conv tap masks, and fold the
    output gain/bias into the final 1x1 conv."""
    C, Cm = WIDTH, COND_WIDTH
    blocks = params['blocks']
    swap = lambda a: jnp.swapaxes(a, -1, -2)
    st = lambda name: jnp.stack([swap(bp[name]) for bp in blocks], axis=0)

    # all style affines (gamma|beta per block) fused into one (n_blocks*2C, D)
    wsty = jnp.concatenate(
        [jnp.concatenate([bp['sgw'].T, bp['sbw'].T], axis=0) for bp in blocks], axis=0)
    bsty = jnp.concatenate(
        [jnp.concatenate([bp['sgb'].T, bp['sbb'].T], axis=0) for bp in blocks], axis=0)

    # output head: fold gain/bias into the 1x1 conv, pad channels to 8 sublanes
    wf_eff = params['gain'].T * params['wf'].T                       # (3, C)
    bf_eff = params['gain'].T * params['bf'].T + params['bias'].T    # (3, 1)
    wf_pad = jnp.zeros((OUT_ROWS, C), jnp.float32).at[:IMAGE_CHANNELS, :].set(wf_eff)
    bf_pad = jnp.zeros((OUT_ROWS, 1), jnp.float32).at[:IMAGE_CHANNELS, :].set(bf_eff)

    avg, bcast = _segment_mats(HW, B)
    return {
        'wmapT': swap(params['wmap']),                          # (n_mlp, D, D)
        'bmapT': swap(params['bmap']),                          # (n_mlp, D, 1)
        'const': jnp.tile(params['constant'][0].T, (1, B)),     # (C, B*HW)
        'wsty': wsty, 'bsty': bsty,
        'w1T': st('w1'), 'b1': st('b1'),
        'w2T': st('w2'), 'b2': st('b2'),
        'w3T': st('w3'), 'b3': st('b3'),
        'w4T': st('w4'), 'b4': st('b4'),
        'wfT': wf_pad, 'bfT': bf_pad,
        'masks': jnp.asarray(_conv_tap_masks(RES, B, Cm)),      # (9, Cm, B*HW)
        'avg': jnp.asarray(avg), 'bcast': jnp.asarray(bcast),
    }


# ------------------------------ parameter init -------------------------------
def init_params(key):
    n_blocks = N_BLOCKS
    keys = iter(jax.random.split(key, 128))

    def nrm(shape, scale):
        return scale * jax.random.normal(next(keys), shape, jnp.float32)

    C, Cm, D = WIDTH, COND_WIDTH, LATENT_DIM
    params = {
        'wmap': nrm((N_MLP, D, D), 1.0 / np.sqrt(D)),
        'bmap': jnp.zeros((N_MLP, 1, D), jnp.float32),
        'constant': nrm((1, HW, C), 1.0),                        # nn.Parameter(randn)
        'wf': nrm((C, IMAGE_CHANNELS), 1.0 / np.sqrt(C)),
        'bf': jnp.zeros((1, IMAGE_CHANNELS), jnp.float32),       # zero_bias 1x1 conv
        'gain': jnp.ones((1, IMAGE_CHANNELS), jnp.float32),
        'bias': jnp.zeros((1, IMAGE_CHANNELS), jnp.float32),
    }
    blocks = []
    for _ in range(n_blocks):
        blocks.append(dict(
            # AdaIN style linear (split into gamma/beta halves); gamma bias = 1
            sgw=nrm((D, C), 1.0 / np.sqrt(D)), sgb=jnp.ones((1, C), jnp.float32),
            sbw=nrm((D, C), 1.0 / np.sqrt(D)), sbb=jnp.zeros((1, C), jnp.float32),
            # Block convs (all biases zero: zero_bias=True)
            w1=nrm((C, Cm), 1.0 / np.sqrt(C)), b1=jnp.zeros((1, Cm), jnp.float32),
            w2=nrm((9, Cm, Cm), 1.0 / np.sqrt(9 * Cm)), b2=jnp.zeros((1, Cm), jnp.float32),
            w3=nrm((9, Cm, Cm), 1.0 / np.sqrt(9 * Cm)), b3=jnp.zeros((1, Cm), jnp.float32),
            # c4 weight scaled by sqrt(1 / n_blocks) as in ModelBlock.__init__
            w4=nrm((Cm, C), (1.0 / np.sqrt(Cm)) * np.sqrt(1.0 / n_blocks)),
            b4=jnp.zeros((1, C), jnp.float32),
        ))
    params['blocks'] = blocks
    return params


# --------------------------- pure-JAX reference ------------------------------
def ref_forward(latent_code, params):
    hi = jax.lax.Precision.HIGHEST
    x = latent_code
    for l in range(N_MLP):
        x = jnp.dot(x, params['wmap'][l], precision=hi) + params['bmap'][l]
        x = jnp.where(x > 0.0, x, 0.2 * x)
    w = x
    B = latent_code.shape[0]
    h = jnp.tile(params['constant'].reshape(1, RES, RES, WIDTH), (B, 1, 1, 1))

    def c1x1(v, wk, bk):
        return jnp.einsum('bhwc,cd->bhwd', v, wk, precision=hi) + bk.reshape(1, 1, 1, -1)

    def c3x3(v, wk, bk):
        vp = jnp.pad(v, ((0, 0), (1, 1), (1, 1), (0, 0)))
        acc = jnp.zeros(v.shape[:3] + (wk.shape[2],), jnp.float32)
        for k in range(9):
            dy, dx = k // 3, k % 3
            acc = acc + jnp.einsum('bhwc,cd->bhwd',
                                   vp[:, dy:dy + RES, dx:dx + RES, :], wk[k], precision=hi)
        return acc + bk.reshape(1, 1, 1, -1)

    for bp in params['blocks']:
        mean = h.mean(axis=(1, 2), keepdims=True)
        var = ((h - mean) ** 2).mean(axis=(1, 2), keepdims=True)
        hn = (h - mean) / jnp.sqrt(var + 1e-5)
        gamma = (jnp.dot(w, bp['sgw'], precision=hi) + bp['sgb'])[:, None, None, :]
        beta = (jnp.dot(w, bp['sbw'], precision=hi) + bp['sbb'])[:, None, None, :]
        ha = gamma * hn + beta
        xh = c1x1(_gelu(ha), bp['w1'], bp['b1'])
        xh = c3x3(_gelu(xh), bp['w2'], bp['b2'])
        xh = c3x3(_gelu(xh), bp['w3'], bp['b3'])
        xh = c1x1(_gelu(xh), bp['w4'], bp['b4'])
        h = ha + xh
    y = c1x1(h, params['wf'], params['bf'])
    y = params['gain'].reshape(1, 1, 1, -1) * y + params['bias'].reshape(1, 1, 1, -1)
    return y.transpose(0, 3, 1, 2)


if __name__ == "__main__":
    key = jax.random.PRNGKey(0)
    pkey, zkey = jax.random.split(key)
    params = init_params(pkey)
    packed = pack_params(params)
    latent_code = jax.random.normal(zkey, (BATCH, LATENT_DIM), jnp.float32)

    fwd = jax.jit(model_forward)
    out = jax.block_until_ready(fwd(latent_code, packed))
    assert out.shape == (BATCH, IMAGE_CHANNELS, RES, RES)

    ref = jax.block_until_ready(ref_forward(latent_code, params))
    np.testing.assert_allclose(np.asarray(out), np.asarray(ref), rtol=5e-2, atol=5e-2)

    print("KERNEL_OK")
</pallas_src>

<mosaic_0001>
module attributes {stable_mosaic.version = 11 : i64} {
  func.func @fused_model_kernel(%arg0: memref<32x2xf32, #tpu.memory_space<vmem>>, %arg1: memref<2x32x32xf32, #tpu.memory_space<vmem>>, %arg2: memref<2x32x1xf32, #tpu.memory_space<vmem>>, %arg3: memref<32x128xf32, #tpu.memory_space<vmem>>, %arg4: memref<128x32xf32, #tpu.memory_space<vmem>>, %arg5: memref<128x1xf32, #tpu.memory_space<vmem>>, %arg6: memref<2x16x32xf32, #tpu.memory_space<vmem>>, %arg7: memref<2x16x1xf32, #tpu.memory_space<vmem>>, %arg8: memref<2x9x16x16xf32, #tpu.memory_space<vmem>>, %arg9: memref<2x16x1xf32, #tpu.memory_space<vmem>>, %arg10: memref<2x9x16x16xf32, #tpu.memory_space<vmem>>, %arg11: memref<2x16x1xf32, #tpu.memory_space<vmem>>, %arg12: memref<2x32x16xf32, #tpu.memory_space<vmem>>, %arg13: memref<2x32x1xf32, #tpu.memory_space<vmem>>, %arg14: memref<8x32xf32, #tpu.memory_space<vmem>>, %arg15: memref<8x1xf32, #tpu.memory_space<vmem>>, %arg16: memref<9x16x128xf32, #tpu.memory_space<vmem>>, %arg17: memref<128x2xf32, #tpu.memory_space<vmem>>, %arg18: memref<2x128xf32, #tpu.memory_space<vmem>>, %arg19: memref<8x128xf32, #tpu.memory_space<vmem>>) attributes {dimension_semantics = [], scalar_prefetch = 0 : i64, scratch_operands = 0 : i64, tpu.core_type = #tpu.core_type<tc>} {
    %c0 = arith.constant 0 : index
    %c0_0 = arith.constant 0 : index
    %0 = vector.load %arg0[%c0, %c0_0] : memref<32x2xf32, #tpu.memory_space<vmem>>, vector<32x2xf32>
    %c0_1 = arith.constant 0 : index
    %c0_2 = arith.constant 0 : index
    %c0_3 = arith.constant 0 : index
    %1 = vector.load %arg1[%c0_1, %c0_2, %c0_3] : memref<2x32x32xf32, #tpu.memory_space<vmem>>, vector<1x32x32xf32>
    %2 = vector.shape_cast %1 : vector<1x32x32xf32> to vector<32x32xf32>
    %cst = arith.constant dense<0.000000e+00> : vector<32x2xf32>
    %3 = tpu.matmul %2, %0, %cst {dimension_numbers = #tpu.dot_dimension_numbers<[1], [0], [0], [1], [0, 0, 1, 1], [], []>} : vector<32x32xf32>, vector<32x2xf32>, vector<32x2xf32> -> vector<32x2xf32>
    %c0_4 = arith.constant 0 : index
    %c0_5 = arith.constant 0 : index
    %c0_6 = arith.constant 0 : index
    %4 = vector.load %arg2[%c0_4, %c0_5, %c0_6] : memref<2x32x1xf32, #tpu.memory_space<vmem>>, vector<1x32x1xf32>
    %5 = vector.shape_cast %4 : vector<1x32x1xf32> to vector<32x1xf32>
    %6 = vector.broadcast %5 : vector<32x1xf32> to vector<32x2xf32>
    %7 = arith.addf %3, %6 : vector<32x2xf32>
    %cst_7 = arith.constant 0.000000e+00 : f32
    %8 = vector.broadcast %cst_7 : f32 to vector<32x2xf32>
    %9 = arith.cmpf ogt, %7, %8 : vector<32x2xf32>
    %cst_8 = arith.constant 2.000000e-01 : f32
    %10 = vector.broadcast %cst_8 : f32 to vector<32x2xf32>
    %11 = arith.mulf %10, %7 : vector<32x2xf32>
    %12 = arith.select %9, %7, %11 : vector<32x2xi1>, vector<32x2xf32>
    %c1 = arith.constant 1 : index
    %c0_9 = arith.constant 0 : index
    %c0_10 = arith.constant 0 : index
    %13 = vector.load %arg1[%c1, %c0_9, %c0_10] : memref<2x32x32xf32, #tpu.memory_space<vmem>>, vector<1x32x32xf32>
    %14 = vector.shape_cast %13 : vector<1x32x32xf32> to vector<32x32xf32>
    %cst_11 = arith.constant dense<0.000000e+00> : vector<32x2xf32>
    %15 = tpu.matmul %14, %12, %cst_11 {dimension_numbers = #tpu.dot_dimension_numbers<[1], [0], [0], [1], [0, 0, 1, 1], [], []>} : vector<32x32xf32>, vector<32x2xf32>, vector<32x2xf32> -> vector<32x2xf32>
    %c1_12 = arith.constant 1 : index
    %c0_13 = arith.constant 0 : index
    %c0_14 = arith.constant 0 : index
    %16 = vector.load %arg2[%c1_12, %c0_13, %c0_14] : memref<2x32x1xf32, #tpu.memory_space<vmem>>, vector<1x32x1xf32>
    %17 = vector.shape_cast %16 : vector<1x32x1xf32> to vector<32x1xf32>
    %18 = vector.broadcast %17 : vector<32x1xf32> to vector<32x2xf32>
    %19 = arith.addf %15, %18 : vector<32x2xf32>
    %cst_15 = arith.constant 0.000000e+00 : f32
    %20 = vector.broadcast %cst_15 : f32 to vector<32x2xf32>
    %21 = arith.cmpf ogt, %19, %20 : vector<32x2xf32>
    %cst_16 = arith.constant 2.000000e-01 : f32
    %22 = vector.broadcast %cst_16 : f32 to vector<32x2xf32>
    %23 = arith.mulf %22, %19 : vector<32x2xf32>
    %24 = arith.select %21, %19, %23 : vector<32x2xi1>, vector<32x2xf32>
    %c0_17 = arith.constant 0 : index
    %c0_18 = arith.constant 0 : index
    %25 = vector.load %arg4[%c0_17, %c0_18] : memref<128x32xf32, #tpu.memory_space<vmem>>, vector<128x32xf32>
    %cst_19 = arith.constant dense<0.000000e+00> : vector<128x2xf32>
    %26 = tpu.matmul %25, %24, %cst_19 {dimension_numbers = #tpu.dot_dimension_numbers<[1], [0], [0], [1], [0, 0, 1, 1], [], []>} : vector<128x32xf32>, vector<32x2xf32>, vector<128x2xf32> -> vector<128x2xf32>
    %c0_20 = arith.constant 0 : index
    %c0_21 = arith.constant 0 : index
    %27 = vector.load %arg5[%c0_20, %c0_21] : memref<128x1xf32, #tpu.memory_space<vmem>>, vector<128x1xf32>
    %28 = vector.broadcast %27 : vector<128x1xf32> to vector<128x2xf32>
    %29 = arith.addf %26, %28 : vector<128x2xf32>
    %c0_22 = arith.constant 0 : index
    %c0_23 = arith.constant 0 : index
    %30 = vector.load %arg17[%c0_22, %c0_23] : memref<128x2xf32, #tpu.memory_space<vmem>>, vector<128x2xf32>
    %c0_24 = arith.constant 0 : index
    %c0_25 = arith.constant 0 : index
    %31 = vector.load %arg18[%c0_24, %c0_25] : memref<2x128xf32, #tpu.memory_space<vmem>>, vector<2x128xf32>
    %c0_26 = arith.constant 0 : index
    %c0_27 = arith.constant 0 : index
    %32 = vector.load %arg3[%c0_26, %c0_27] : memref<32x128xf32, #tpu.memory_space<vmem>>, vector<32x128xf32>
    %33 = vector.extract_strided_slice %29 {offsets = [0, 0], sizes = [32, 2], strides = [1, 1]} : vector<128x2xf32> to vector<32x2xf32>
    %34 = vector.extract_strided_slice %29 {offsets = [32, 0], sizes = [32, 2], strides = [1, 1]} : vector<128x2xf32> to vector<32x2xf32>
    %cst_28 = arith.constant dense<0.000000e+00> : vector<32x2xf32>
    %35 = tpu.matmul %32, %30, %cst_28 {dimension_numbers = #tpu.dot_dimension_numbers<[1], [0], [0], [1], [0, 0, 1, 1], [], []>} : vector<32x128xf32>, vector<128x2xf32>, vector<32x2xf32> -> vector<32x2xf32>
    %cst_29 = arith.constant dense<0.000000e+00> : vector<32x128xf32>
    %36 = tpu.matmul %35, %31, %cst_29 {dimension_numbers = #tpu.dot_dimension_numbers<[1], [0], [0], [1], [0, 0, 1, 1], [], []>} : vector<32x2xf32>, vector<2x128xf32>, vector<32x128xf32> -> vector<32x128xf32>
    %37 = arith.subf %32, %36 : vector<32x128xf32>
    %38 = arith.mulf %37, %37 : vector<32x128xf32>
    %cst_30 = arith.constant dense<0.000000e+00> : vector<32x2xf32>
    %39 = tpu.matmul %38, %30, %cst_30 {dimension_numbers = #tpu.dot_dimension_numbers<[1], [0], [0], [1], [0, 0, 1, 1], [], []>} : vector<32x128xf32>, vector<128x2xf32>, vector<32x2xf32> -> vector<32x2xf32>
    %cst_31 = arith.constant 9.99999974E-6 : f32
    %40 = vector.broadcast %cst_31 : f32 to vector<32x2xf32>
    %41 = arith.addf %39, %40 : vector<32x2xf32>
    %42 = math.rsqrt %41 : vector<32x2xf32>
    %43 = arith.mulf %33, %42 : vector<32x2xf32>
    %44 = tpu.concatenate %43, %34 in 0 : vector<32x2xf32>, vector<32x2xf32> -> vector<64x2xf32>
    %cst_32 = arith.constant dense<0.000000e+00> : vector<64x128xf32>
    %45 = tpu.matmul %44, %31, %cst_32 {dimension_numbers = #tpu.dot_dimension_numbers<[1], [0], [0], [1], [0, 0, 1, 1], [], []>} : vector<64x2xf32>, vector<2x128xf32>, vector<64x128xf32> -> vector<64x128xf32>
    %46 = vector.extract_strided_slice %45 {offsets = [0, 0], sizes = [32, 128], strides = [1, 1]} : vector<64x128xf32> to vector<32x128xf32>
    %47 = arith.mulf %46, %37 : vector<32x128xf32>
    %48 = vector.extract_strided_slice %45 {offsets = [32, 0], sizes = [32, 128], strides = [1, 1]} : vector<64x128xf32> to vector<32x128xf32>
    %49 = arith.addf %47, %48 : vector<32x128xf32>
    %c0_33 = arith.constant 0 : index
    %c0_34 = arith.constant 0 : index
    %c0_35 = arith.constant 0 : index
    %50 = vector.load %arg6[%c0_33, %c0_34, %c0_35] : memref<2x16x32xf32, #tpu.memory_space<vmem>>, vector<1x16x32xf32>
    %51 = vector.shape_cast %50 : vector<1x16x32xf32> to vector<16x32xf32>
    %cst_36 = arith.constant 5.000000e-01 : f32
    %52 = vector.broadcast %cst_36 : f32 to vector<32x128xf32>
    %53 = arith.mulf %52, %49 : vector<32x128xf32>
    %cst_37 = arith.constant 4.471500e-02 : f32
    %54 = vector.broadcast %cst_37 : f32 to vector<32x128xf32>
    %55 = arith.mulf %54, %49 : vector<32x128xf32>
    %56 = arith.mulf %55, %49 : vector<32x128xf32>
    %57 = arith.mulf %56, %49 : vector<32x128xf32>
    %58 = arith.addf %49, %57 : vector<32x128xf32>
    %cst_38 = arith.constant 0.797884583 : f32
    %59 = vector.broadcast %cst_38 : f32 to vector<32x128xf32>
    %60 = arith.mulf %59, %58 : vector<32x128xf32>
    %61 = math.tanh %60 : vector<32x128xf32>
    %cst_39 = arith.constant 1.000000e+00 : f32
    %62 = vector.broadcast %cst_39 : f32 to vector<32x128xf32>
    %63 = arith.addf %62, %61 : vector<32x128xf32>
    %64 = arith.mulf %53, %63 : vector<32x128xf32>
    %cst_40 = arith.constant dense<0.000000e+00> : vector<16x128xf32>
    %65 = tpu.matmul %51, %64, %cst_40 {dimension_numbers = #tpu.dot_dimension_numbers<[1], [0], [0], [1], [0, 0, 1, 1], [], []>} : vector<16x32xf32>, vector<32x128xf32>, vector<16x128xf32> -> vector<16x128xf32>
    %c0_41 = arith.constant 0 : index
    %c0_42 = arith.constant 0 : index
    %c0_43 = arith.constant 0 : index
    %66 = vector.load %arg7[%c0_41, %c0_42, %c0_43] : memref<2x16x1xf32, #tpu.memory_space<vmem>>, vector<1x16x1xf32>
    %67 = vector.shape_cast %66 : vector<1x16x1xf32> to vector<16x1xf32>
    %68 = vector.broadcast %67 : vector<16x1xf32> to vector<16x128xf32>
    %69 = arith.addf %65, %68 : vector<16x128xf32>
    %cst_44 = arith.constant 5.000000e-01 : f32
    %70 = vector.broadcast %cst_44 : f32 to vector<16x128xf32>
    %71 = arith.mulf %70, %69 : vector<16x128xf32>
    %cst_45 = arith.constant 4.471500e-02 : f32
    %72 = vector.broadcast %cst_45 : f32 to vector<16x128xf32>
    %73 = arith.mulf %72, %69 : vector<16x128xf32>
    %74 = arith.mulf %73, %69 : vector<16x128xf32>
    %75 = arith.mulf %74, %69 : vector<16x128xf32>
    %76 = arith.addf %69, %75 : vector<16x128xf32>
    %cst_46 = arith.constant 0.797884583 : f32
    %77 = vector.broadcast %cst_46 : f32 to vector<16x128xf32>
    %78 = arith.mulf %77, %76 : vector<16x128xf32>
    %79 = math.tanh %78 : vector<16x128xf32>
    %cst_47 = arith.constant 1.000000e+00 : f32
    %80 = vector.broadcast %cst_47 : f32 to vector<16x128xf32>
    %81 = arith.addf %80, %79 : vector<16x128xf32>
    %82 = arith.mulf %71, %81 : vector<16x128xf32>
    %c0_48 = arith.constant 0 : index
    %c0_49 = arith.constant 0 : index
    %c0_50 = arith.constant 0 : index
    %83 = vector.load %arg9[%c0_48, %c0_49, %c0_50] : memref<2x16x1xf32, #tpu.memory_space<vmem>>, vector<1x16x1xf32>
    %84 = vector.shape_cast %83 : vector<1x16x1xf32> to vector<16x1xf32>
    %c9_i32 = arith.constant 9 : i32
    %85 = tpu.dynamic_rotate %82 by %c9_i32 dim 1 : vector<16x128xf32>, i32 -> vector<16x128xf32>
    %c0_51 = arith.constant 0 : index
    %c0_52 = arith.constant 0 : index
    %c0_53 = arith.constant 0 : index
    %86 = vector.load %arg16[%c0_51, %c0_52, %c0_53] : memref<9x16x128xf32, #tpu.memory_space<vmem>>, vector<1x16x128xf32>
    %87 = vector.shape_cast %86 : vector<1x16x128xf32> to vector<16x128xf32>
    %88 = arith.mulf %85, %87 : vector<16x128xf32>
    %c0_54 = arith.constant 0 : index
    %c0_55 = arith.constant 0 : index
    %c0_56 = arith.constant 0 : index
    %c0_57 = arith.constant 0 : index
    %89 = vector.load %arg8[%c0_54, %c0_55, %c0_56, %c0_57] : memref<2x9x16x16xf32, #tpu.memory_space<vmem>>, vector<1x1x16x16xf32>
    %90 = vector.shape_cast %89 : vector<1x1x16x16xf32> to vector<16x16xf32>
    %cst_58 = arith.constant dense<0.000000e+00> : vector<16x128xf32>
    %91 = tpu.matmul %90, %88, %cst_58 {dimension_numbers = #tpu.dot_dimension_numbers<[1], [0], [0], [1], [0, 0, 1, 1], [], []>} : vector<16x16xf32>, vector<16x128xf32>, vector<16x128xf32> -> vector<16x128xf32>
    %c8_i32 = arith.constant 8 : i32
    %92 = tpu.dynamic_rotate %82 by %c8_i32 dim 1 : vector<16x128xf32>, i32 -> vector<16x128xf32>
    %c1_59 = arith.constant 1 : index
    %c0_60 = arith.constant 0 : index
    %c0_61 = arith.constant 0 : index
    %93 = vector.load %arg16[%c1_59, %c0_60, %c0_61] : memref<9x16x128xf32, #tpu.memory_space<vmem>>, vector<1x16x128xf32>
    %94 = vector.shape_cast %93 : vector<1x16x128xf32> to vector<16x128xf32>
    %95 = arith.mulf %92, %94 : vector<16x128xf32>
    %c0_62 = arith.constant 0 : index
    %c1_63 = arith.constant 1 : index
    %c0_64 = arith.constant 0 : index
    %c0_65 = arith.constant 0 : index
    %96 = vector.load %arg8[%c0_62, %c1_63, %c0_64, %c0_65] : memref<2x9x16x16xf32, #tpu.memory_space<vmem>>, vector<1x1x16x16xf32>
    %97 = vector.shape_cast %96 : vector<1x1x16x16xf32> to vector<16x16xf32>
    %cst_66 = arith.constant dense<0.000000e+00> : vector<16x128xf32>
    %98 = tpu.matmul %97, %95, %cst_66 {dimension_numbers = #tpu.dot_dimension_numbers<[1], [0], [0], [1], [0, 0, 1, 1], [], []>} : vector<16x16xf32>, vector<16x128xf32>, vector<16x128xf32> -> vector<16x128xf32>
    %99 = arith.addf %91, %98 : vector<16x128xf32>
    %c7_i32 = arith.constant 7 : i32
    %100 = tpu.dynamic_rotate %82 by %c7_i32 dim 1 : vector<16x128xf32>, i32 -> vector<16x128xf32>
    %c2 = arith.constant 2 : index
    %c0_67 = arith.constant 0 : index
    %c0_68 = arith.constant 0 : index
    %101 = vector.load %arg16[%c2, %c0_67, %c0_68] : memref<9x16x128xf32, #tpu.memory_space<vmem>>, vector<1x16x128xf32>
    %102 = vector.shape_cast %101 : vector<1x16x128xf32> to vector<16x128xf32>
    %103 = arith.mulf %100, %102 : vector<16x128xf32>
    %c0_69 = arith.constant 0 : index
    %c2_70 = arith.constant 2 : index
    %c0_71 = arith.constant 0 : index
    %c0_72 = arith.constant 0 : index
    %104 = vector.load %arg8[%c0_69, %c2_70, %c0_71, %c0_72] : memref<2x9x16x16xf32, #tpu.memory_space<vmem>>, vector<1x1x16x16xf32>
    %105 = vector.shape_cast %104 : vector<1x1x16x16xf32> to vector<16x16xf32>
    %cst_73 = arith.constant dense<0.000000e+00> : vector<16x128xf32>
    %106 = tpu.matmul %105, %103, %cst_73 {dimension_numbers = #tpu.dot_dimension_numbers<[1], [0], [0], [1], [0, 0, 1, 1], [], []>} : vector<16x16xf32>, vector<16x128xf32>, vector<16x128xf32> -> vector<16x128xf32>
    %107 = arith.addf %99, %106 : vector<16x128xf32>
    %c1_i32 = arith.constant 1 : i32
    %108 = tpu.dynamic_rotate %82 by %c1_i32 dim 1 : vector<16x128xf32>, i32 -> vector<16x128xf32>
    %c3 = arith.constant 3 : index
    %c0_74 = arith.constant 0 : index
    %c0_75 = arith.constant 0 : index
    %109 = vector.load %arg16[%c3, %c0_74, %c0_75] : memref<9x16x128xf32, #tpu.memory_space<vmem>>, vector<1x16x128xf32>
    %110 = vector.shape_cast %109 : vector<1x16x128xf32> to vector<16x128xf32>
    %111 = arith.mulf %108, %110 : vector<16x128xf32>
    %c0_76 = arith.constant 0 : index
    %c3_77 = arith.constant 3 : index
    %c0_78 = arith.constant 0 : index
    %c0_79 = arith.constant 0 : index
    %112 = vector.load %arg8[%c0_76, %c3_77, %c0_78, %c0_79] : memref<2x9x16x16xf32, #tpu.memory_space<vmem>>, vector<1x1x16x16xf32>
    %113 = vector.shape_cast %112 : vector<1x1x16x16xf32> to vector<16x16xf32>
    %cst_80 = arith.constant dense<0.000000e+00> : vector<16x128xf32>
    %114 = tpu.matmul %113, %111, %cst_80 {dimension_numbers = #tpu.dot_dimension_numbers<[1], [0], [0], [1], [0, 0, 1, 1], [], []>} : vector<16x16xf32>, vector<16x128xf32>, vector<16x128xf32> -> vector<16x128xf32>
    %115 = arith.addf %107, %114 : vector<16x128xf32>
    %c0_81 = arith.constant 0 : index
    %c4 = arith.constant 4 : index
    %c0_82 = arith.constant 0 : index
    %c0_83 = arith.constant 0 : index
    %116 = vector.load %arg8[%c0_81, %c4, %c0_82, %c0_83] : memref<2x9x16x16xf32, #tpu.memory_space<vmem>>, vector<1x1x16x16xf32>
    %117 = vector.shape_cast %116 : vector<1x1x16x16xf32> to vector<16x16xf32>
    %cst_84 = arith.constant dense<0.000000e+00> : vector<16x128xf32>
    %118 = tpu.matmul %117, %82, %cst_84 {dimension_numbers = #tpu.dot_dimension_numbers<[1], [0], [0], [1], [0, 0, 1, 1], [], []>} : vector<16x16xf32>, vector<16x128xf32>, vector<16x128xf32> -> vector<16x128xf32>
    %119 = arith.addf %115, %118 : vector<16x128xf32>
    %c127_i32 = arith.constant 127 : i32
    %120 = tpu.dynamic_rotate %82 by %c127_i32 dim 1 : vector<16x128xf32>, i32 -> vector<16x128xf32>
    %c5 = arith.constant 5 : index
    %c0_85 = arith.constant 0 : index
    %c0_86 = arith.constant 0 : index
    %121 = vector.load %arg16[%c5, %c0_85, %c0_86] : memref<9x16x128xf32, #tpu.memory_space<vmem>>, vector<1x16x128xf32>
    %122 = vector.shape_cast %121 : vector<1x16x128xf32> to vector<16x128xf32>
    %123 = arith.mulf %120, %122 : vector<16x128xf32>
    %c0_87 = arith.constant 0 : index
    %c5_88 = arith.constant 5 : index
    %c0_89 = arith.constant 0 : index
    %c0_90 = arith.constant 0 : index
    %124 = vector.load %arg8[%c0_87, %c5_88, %c0_89, %c0_90] : memref<2x9x16x16xf32, #tpu.memory_space<vmem>>, vector<1x1x16x16xf32>
    %125 = vector.shape_cast %124 : vector<1x1x16x16xf32> to vector<16x16xf32>
    %cst_91 = arith.constant dense<0.000000e+00> : vector<16x128xf32>
    %126 = tpu.matmul %125, %123, %cst_91 {dimension_numbers = #tpu.dot_dimension_numbers<[1], [0], [0], [1], [0, 0, 1, 1], [], []>} : vector<16x16xf32>, vector<16x128xf32>, vector<16x128xf32> -> vector<16x128xf32>
    %127 = arith.addf %119, %126 : vector<16x128xf32>
    %c121_i32 = arith.constant 121 : i32
    %128 = tpu.dynamic_rotate %82 by %c121_i32 dim 1 : vector<16x128xf32>, i32 -> vector<16x128xf32>
    %c6 = arith.constant 6 : index
    %c0_92 = arith.constant 0 : index
    %c0_93 = arith.constant 0 : index
    %129 = vector.load %arg16[%c6, %c0_92, %c0_93] : memref<9x16x128xf32, #tpu.memory_space<vmem>>, vector<1x16x128xf32>
    %130 = vector.shape_cast %129 : vector<1x16x128xf32> to vector<16x128xf32>
    %131 = arith.mulf %128, %130 : vector<16x128xf32>
    %c0_94 = arith.constant 0 : index
    %c6_95 = arith.constant 6 : index
    %c0_96 = arith.constant 0 : index
    %c0_97 = arith.constant 0 : index
    %132 = vector.load %arg8[%c0_94, %c6_95, %c0_96, %c0_97] : memref<2x9x16x16xf32, #tpu.memory_space<vmem>>, vector<1x1x16x16xf32>
    %133 = vector.shape_cast %132 : vector<1x1x16x16xf32> to vector<16x16xf32>
    %cst_98 = arith.constant dense<0.000000e+00> : vector<16x128xf32>
    %134 = tpu.matmul %133, %131, %cst_98 {dimension_numbers = #tpu.dot_dimension_numbers<[1], [0], [0], [1], [0, 0, 1, 1], [], []>} : vector<16x16xf32>, vector<16x128xf32>, vector<16x128xf32> -> vector<16x128xf32>
    %135 = arith.addf %127, %134 : vector<16x128xf32>
    %c120_i32 = arith.constant 120 : i32
    %136 = tpu.dynamic_rotate %82 by %c120_i32 dim 1 : vector<16x128xf32>, i32 -> vector<16x128xf32>
    %c7 = arith.constant 7 : index
    %c0_99 = arith.constant 0 : index
    %c0_100 = arith.constant 0 : index
    %137 = vector.load %arg16[%c7, %c0_99, %c0_100] : memref<9x16x128xf32, #tpu.memory_space<vmem>>, vector<1x16x128xf32>
    %138 = vector.shape_cast %137 : vector<1x16x128xf32> to vector<16x128xf32>
    %139 = arith.mulf %136, %138 : vector<16x128xf32>
    %c0_101 = arith.constant 0 : index
    %c7_102 = arith.constant 7 : index
    %c0_103 = arith.constant 0 : index
    %c0_104 = arith.constant 0 : index
    %140 = vector.load %arg8[%c0_101, %c7_102, %c0_103, %c0_104] : memref<2x9x16x16xf32, #tpu.memory_space<vmem>>, vector<1x1x16x16xf32>
    %141 = vector.shape_cast %140 : vector<1x1x16x16xf32> to vector<16x16xf32>
    %cst_105 = arith.constant dense<0.000000e+00> : vector<16x128xf32>
    %142 = tpu.matmul %141, %139, %cst_105 {dimension_numbers = #tpu.dot_dimension_numbers<[1], [0], [0], [1], [0, 0, 1, 1], [], []>} : vector<16x16xf32>, vector<16x128xf32>, vector<16x128xf32> -> vector<16x128xf32>
    %143 = arith.addf %135, %142 : vector<16x128xf32>
    %c119_i32 = arith.constant 119 : i32
    %144 = tpu.dynamic_rotate %82 by %c119_i32 dim 1 : vector<16x128xf32>, i32 -> vector<16x128xf32>
    %c8 = arith.constant 8 : index
    %c0_106 = arith.constant 0 : index
    %c0_107 = arith.constant 0 : index
    %145 = vector.load %arg16[%c8, %c0_106, %c0_107] : memref<9x16x128xf32, #tpu.memory_space<vmem>>, vector<1x16x128xf32>
    %146 = vector.shape_cast %145 : vector<1x16x128xf32> to vector<16x128xf32>
    %147 = arith.mulf %144, %146 : vector<16x128xf32>
    %c0_108 = arith.constant 0 : index
    %c8_109 = arith.constant 8 : index
    %c0_110 = arith.constant 0 : index
    %c0_111 = arith.constant 0 : index
    %148 = vector.load %arg8[%c0_108, %c8_109, %c0_110, %c0_111] : memref<2x9x16x16xf32, #tpu.memory_space<vmem>>, vector<1x1x16x16xf32>
    %149 = vector.shape_cast %148 : vector<1x1x16x16xf32> to vector<16x16xf32>
    %cst_112 = arith.constant dense<0.000000e+00> : vector<16x128xf32>
    %150 = tpu.matmul %149, %147, %cst_112 {dimension_numbers = #tpu.dot_dimension_numbers<[1], [0], [0], [1], [0, 0, 1, 1], [], []>} : vector<16x16xf32>, vector<16x128xf32>, vector<16x128xf32> -> vector<16x128xf32>
    %151 = arith.addf %143, %150 : vector<16x128xf32>
    %152 = vector.broadcast %84 : vector<16x1xf32> to vector<16x128xf32>
    %153 = arith.addf %151, %152 : vector<16x128xf32>
    %cst_113 = arith.constant 5.000000e-01 : f32
    %154 = vector.broadcast %cst_113 : f32 to vector<16x128xf32>
    %155 = arith.mulf %154, %153 : vector<16x128xf32>
    %cst_114 = arith.constant 4.471500e-02 : f32
    %156 = vector.broadcast %cst_114 : f32 to vector<16x128xf32>
    %157 = arith.mulf %156, %153 : vector<16x128xf32>
    %158 = arith.mulf %157, %153 : vector<16x128xf32>
    %159 = arith.mulf %158, %153 : vector<16x128xf32>
    %160 = arith.addf %153, %159 : vector<16x128xf32>
    %cst_115 = arith.constant 0.797884583 : f32
    %161 = vector.broadcast %cst_115 : f32 to vector<16x128xf32>
    %162 = arith.mulf %161, %160 : vector<16x128xf32>
    %163 = math.tanh %162 : vector<16x128xf32>
    %cst_116 = arith.constant 1.000000e+00 : f32
    %164 = vector.broadcast %cst_116 : f32 to vector<16x128xf32>
    %165 = arith.addf %164, %163 : vector<16x128xf32>
    %166 = arith.mulf %155, %165 : vector<16x128xf32>
    %c0_117 = arith.constant 0 : index
    %c0_118 = arith.constant 0 : index
    %c0_119 = arith.constant 0 : index
    %167 = vector.load %arg11[%c0_117, %c0_118, %c0_119] : memref<2x16x1xf32, #tpu.memory_space<vmem>>, vector<1x16x1xf32>
    %168 = vector.shape_cast %167 : vector<1x16x1xf32> to vector<16x1xf32>
    %c9_i32_120 = arith.constant 9 : i32
    %169 = tpu.dynamic_rotate %166 by %c9_i32_120 dim 1 : vector<16x128xf32>, i32 -> vector<16x128xf32>
    %c0_121 = arith.constant 0 : index
    %c0_122 = arith.constant 0 : index
    %c0_123 = arith.constant 0 : index
    %170 = vector.load %arg16[%c0_121, %c0_122, %c0_123] : memref<9x16x128xf32, #tpu.memory_space<vmem>>, vector<1x16x128xf32>
    %171 = vector.shape_cast %170 : vector<1x16x128xf32> to vector<16x128xf32>
    %172 = arith.mulf %169, %171 : vector<16x128xf32>
    %c0_124 = arith.constant 0 : index
    %c0_125 = arith.constant 0 : index
    %c0_126 = arith.constant 0 : index
    %c0_127 = arith.constant 0 : index
    %173 = vector.load %arg10[%c0_124, %c0_125, %c0_126, %c0_127] : memref<2x9x16x16xf32, #tpu.memory_space<vmem>>, vector<1x1x16x16xf32>
    %174 = vector.shape_cast %173 : vector<1x1x16x16xf32> to vector<16x16xf32>
    %cst_128 = arith.constant dense<0.000000e+00> : vector<16x128xf32>
    %175 = tpu.matmul %174, %172, %cst_128 {dimension_numbers = #tpu.dot_dimension_numbers<[1], [0], [0], [1], [0, 0, 1, 1], [], []>} : vector<16x16xf32>, vector<16x128xf32>, vector<16x128xf32> -> vector<16x128xf32>
    %c8_i32_129 = arith.constant 8 : i32
    %176 = tpu.dynamic_rotate %166 by %c8_i32_129 dim 1 : vector<16x128xf32>, i32 -> vector<16x128xf32>
    %c1_130 = arith.constant 1 : index
    %c0_131 = arith.constant 0 : index
    %c0_132 = arith.constant 0 : index
    %177 = vector.load %arg16[%c1_130, %c0_131, %c0_132] : memref<9x16x128xf32, #tpu.memory_space<vmem>>, vector<1x16x128xf32>
    %178 = vector.shape_cast %177 : vector<1x16x128xf32> to vector<16x128xf32>
    %179 = arith.mulf %176, %178 : vector<16x128xf32>
    %c0_133 = arith.constant 0 : index
    %c1_134 = arith.constant 1 : index
    %c0_135 = arith.constant 0 : index
    %c0_136 = arith.constant 0 : index
    %180 = vector.load %arg10[%c0_133, %c1_134, %c0_135, %c0_136] : memref<2x9x16x16xf32, #tpu.memory_space<vmem>>, vector<1x1x16x16xf32>
    %181 = vector.shape_cast %180 : vector<1x1x16x16xf32> to vector<16x16xf32>
    %cst_137 = arith.constant dense<0.000000e+00> : vector<16x128xf32>
    %182 = tpu.matmul %181, %179, %cst_137 {dimension_numbers = #tpu.dot_dimension_numbers<[1], [0], [0], [1], [0, 0, 1, 1], [], []>} : vector<16x16xf32>, vector<16x128xf32>, vector<16x128xf32> -> vector<16x128xf32>
    %183 = arith.addf %175, %182 : vector<16x128xf32>
    %c7_i32_138 = arith.constant 7 : i32
    %184 = tpu.dynamic_rotate %166 by %c7_i32_138 dim 1 : vector<16x128xf32>, i32 -> vector<16x128xf32>
    %c2_139 = arith.constant 2 : index
    %c0_140 = arith.constant 0 : index
    %c0_141 = arith.constant 0 : index
    %185 = vector.load %arg16[%c2_139, %c0_140, %c0_141] : memref<9x16x128xf32, #tpu.memory_space<vmem>>, vector<1x16x128xf32>
    %186 = vector.shape_cast %185 : vector<1x16x128xf32> to vector<16x128xf32>
    %187 = arith.mulf %184, %186 : vector<16x128xf32>
    %c0_142 = arith.constant 0 : index
    %c2_143 = arith.constant 2 : index
    %c0_144 = arith.constant 0 : index
    %c0_145 = arith.constant 0 : index
    %188 = vector.load %arg10[%c0_142, %c2_143, %c0_144, %c0_145] : memref<2x9x16x16xf32, #tpu.memory_space<vmem>>, vector<1x1x16x16xf32>
    %189 = vector.shape_cast %188 : vector<1x1x16x16xf32> to vector<16x16xf32>
    %cst_146 = arith.constant dense<0.000000e+00> : vector<16x128xf32>
    %190 = tpu.matmul %189, %187, %cst_146 {dimension_numbers = #tpu.dot_dimension_numbers<[1], [0], [0], [1], [0, 0, 1, 1], [], []>} : vector<16x16xf32>, vector<16x128xf32>, vector<16x128xf32> -> vector<16x128xf32>
    %191 = arith.addf %183, %190 : vector<16x128xf32>
    %c1_i32_147 = arith.constant 1 : i32
    %192 = tpu.dynamic_rotate %166 by %c1_i32_147 dim 1 : vector<16x128xf32>, i32 -> vector<16x128xf32>
    %c3_148 = arith.constant 3 : index
    %c0_149 = arith.constant 0 : index
    %c0_150 = arith.constant 0 : index
    %193 = vector.load %arg16[%c3_148, %c0_149, %c0_150] : memref<9x16x128xf32, #tpu.memory_space<vmem>>, vector<1x16x128xf32>
    %194 = vector.shape_cast %193 : vector<1x16x128xf32> to vector<16x128xf32>
    %195 = arith.mulf %192, %194 : vector<16x128xf32>
    %c0_151 = arith.constant 0 : index
    %c3_152 = arith.constant 3 : index
    %c0_153 = arith.constant 0 : index
    %c0_154 = arith.constant 0 : index
    %196 = vector.load %arg10[%c0_151, %c3_152, %c0_153, %c0_154] : memref<2x9x16x16xf32, #tpu.memory_space<vmem>>, vector<1x1x16x16xf32>
    %197 = vector.shape_cast %196 : vector<1x1x16x16xf32> to vector<16x16xf32>
    %cst_155 = arith.constant dense<0.000000e+00> : vector<16x128xf32>
    %198 = tpu.matmul %197, %195, %cst_155 {dimension_numbers = #tpu.dot_dimension_numbers<[1], [0], [0], [1], [0, 0, 1, 1], [], []>} : vector<16x16xf32>, vector<16x128xf32>, vector<16x128xf32> -> vector<16x128xf32>
    %199 = arith.addf %191, %198 : vector<16x128xf32>
    %c0_156 = arith.constant 0 : index
    %c4_157 = arith.constant 4 : index
    %c0_158 = arith.constant 0 : index
    %c0_159 = arith.constant 0 : index
    %200 = vector.load %arg10[%c0_156, %c4_157, %c0_158, %c0_159] : memref<2x9x16x16xf32, #tpu.memory_space<vmem>>, vector<1x1x16x16xf32>
    %201 = vector.shape_cast %200 : vector<1x1x16x16xf32> to vector<16x16xf32>
    %cst_160 = arith.constant dense<0.000000e+00> : vector<16x128xf32>
    %202 = tpu.matmul %201, %166, %cst_160 {dimension_numbers = #tpu.dot_dimension_numbers<[1], [0], [0], [1], [0, 0, 1, 1], [], []>} : vector<16x16xf32>, vector<16x128xf32>, vector<16x128xf32> -> vector<16x128xf32>
    %203 = arith.addf %199, %202 : vector<16x128xf32>
    %c127_i32_161 = arith.constant 127 : i32
    %204 = tpu.dynamic_rotate %166 by %c127_i32_161 dim 1 : vector<16x128xf32>, i32 -> vector<16x128xf32>
    %c5_162 = arith.constant 5 : index
    %c0_163 = arith.constant 0 : index
    %c0_164 = arith.constant 0 : index
    %205 = vector.load %arg16[%c5_162, %c0_163, %c0_164] : memref<9x16x128xf32, #tpu.memory_space<vmem>>, vector<1x16x128xf32>
    %206 = vector.shape_cast %205 : vector<1x16x128xf32> to vector<16x128xf32>
    %207 = arith.mulf %204, %206 : vector<16x128xf32>
    %c0_165 = arith.constant 0 : index
    %c5_166 = arith.constant 5 : index
    %c0_167 = arith.constant 0 : index
    %c0_168 = arith.constant 0 : index
    %208 = vector.load %arg10[%c0_165, %c5_166, %c0_167, %c0_168] : memref<2x9x16x16xf32, #tpu.memory_space<vmem>>, vector<1x1x16x16xf32>
    %209 = vector.shape_cast %208 : vector<1x1x16x16xf32> to vector<16x16xf32>
    %cst_169 = arith.constant dense<0.000000e+00> : vector<16x128xf32>
    %210 = tpu.matmul %209, %207, %cst_169 {dimension_numbers = #tpu.dot_dimension_numbers<[1], [0], [0], [1], [0, 0, 1, 1], [], []>} : vector<16x16xf32>, vector<16x128xf32>, vector<16x128xf32> -> vector<16x128xf32>
    %211 = arith.addf %203, %210 : vector<16x128xf32>
    %c121_i32_170 = arith.constant 121 : i32
    %212 = tpu.dynamic_rotate %166 by %c121_i32_170 dim 1 : vector<16x128xf32>, i32 -> vector<16x128xf32>
    %c6_171 = arith.constant 6 : index
    %c0_172 = arith.constant 0 : index
    %c0_173 = arith.constant 0 : index
    %213 = vector.load %arg16[%c6_171, %c0_172, %c0_173] : memref<9x16x128xf32, #tpu.memory_space<vmem>>, vector<1x16x128xf32>
    %214 = vector.shape_cast %213 : vector<1x16x128xf32> to vector<16x128xf32>
    %215 = arith.mulf %212, %214 : vector<16x128xf32>
    %c0_174 = arith.constant 0 : index
    %c6_175 = arith.constant 6 : index
    %c0_176 = arith.constant 0 : index
    %c0_177 = arith.constant 0 : index
    %216 = vector.load %arg10[%c0_174, %c6_175, %c0_176, %c0_177] : memref<2x9x16x16xf32, #tpu.memory_space<vmem>>, vector<1x1x16x16xf32>
    %217 = vector.shape_cast %216 : vector<1x1x16x16xf32> to vector<16x16xf32>
    %cst_178 = arith.constant dense<0.000000e+00> : vector<16x128xf32>
    %218 = tpu.matmul %217, %215, %cst_178 {dimension_numbers = #tpu.dot_dimension_numbers<[1], [0], [0], [1], [0, 0, 1, 1], [], []>} : vector<16x16xf32>, vector<16x128xf32>, vector<16x128xf32> -> vector<16x128xf32>
    %219 = arith.addf %211, %218 : vector<16x128xf32>
    %c120_i32_179 = arith.constant 120 : i32
    %220 = tpu.dynamic_rotate %166 by %c120_i32_179 dim 1 : vector<16x128xf32>, i32 -> vector<16x128xf32>
    %c7_180 = arith.constant 7 : index
    %c0_181 = arith.constant 0 : index
    %c0_182 = arith.constant 0 : index
    %221 = vector.load %arg16[%c7_180, %c0_181, %c0_182] : memref<9x16x128xf32, #tpu.memory_space<vmem>>, vector<1x16x128xf32>
    %222 = vector.shape_cast %221 : vector<1x16x128xf32> to vector<16x128xf32>
    %223 = arith.mulf %220, %222 : vector<16x128xf32>
    %c0_183 = arith.constant 0 : index
    %c7_184 = arith.constant 7 : index
    %c0_185 = arith.constant 0 : index
    %c0_186 = arith.constant 0 : index
    %224 = vector.load %arg10[%c0_183, %c7_184, %c0_185, %c0_186] : memref<2x9x16x16xf32, #tpu.memory_space<vmem>>, vector<1x1x16x16xf32>
    %225 = vector.shape_cast %224 : vector<1x1x16x16xf32> to vector<16x16xf32>
    %cst_187 = arith.constant dense<0.000000e+00> : vector<16x128xf32>
    %226 = tpu.matmul %225, %223, %cst_187 {dimension_numbers = #tpu.dot_dimension_numbers<[1], [0], [0], [1], [0, 0, 1, 1], [], []>} : vector<16x16xf32>, vector<16x128xf32>, vector<16x128xf32> -> vector<16x128xf32>
    %227 = arith.addf %219, %226 : vector<16x128xf32>
    %c119_i32_188 = arith.constant 119 : i32
    %228 = tpu.dynamic_rotate %166 by %c119_i32_188 dim 1 : vector<16x128xf32>, i32 -> vector<16x128xf32>
    %c8_189 = arith.constant 8 : index
    %c0_190 = arith.constant 0 : index
    %c0_191 = arith.constant 0 : index
    %229 = vector.load %arg16[%c8_189, %c0_190, %c0_191] : memref<9x16x128xf32, #tpu.memory_space<vmem>>, vector<1x16x128xf32>
    %230 = vector.shape_cast %229 : vector<1x16x128xf32> to vector<16x128xf32>
    %231 = arith.mulf %228, %230 : vector<16x128xf32>
    %c0_192 = arith.constant 0 : index
    %c8_193 = arith.constant 8 : index
    %c0_194 = arith.constant 0 : index
    %c0_195 = arith.constant 0 : index
    %232 = vector.load %arg10[%c0_192, %c8_193, %c0_194, %c0_195] : memref<2x9x16x16xf32, #tpu.memory_space<vmem>>, vector<1x1x16x16xf32>
    %233 = vector.shape_cast %232 : vector<1x1x16x16xf32> to vector<16x16xf32>
    %cst_196 = arith.constant dense<0.000000e+00> : vector<16x128xf32>
    %234 = tpu.matmul %233, %231, %cst_196 {dimension_numbers = #tpu.dot_dimension_numbers<[1], [0], [0], [1], [0, 0, 1, 1], [], []>} : vector<16x16xf32>, vector<16x128xf32>, vector<16x128xf32> -> vector<16x128xf32>
    %235 = arith.addf %227, %234 : vector<16x128xf32>
    %236 = vector.broadcast %168 : vector<16x1xf32> to vector<16x128xf32>
    %237 = arith.addf %235, %236 : vector<16x128xf32>
    %c0_197 = arith.constant 0 : index
    %c0_198 = arith.constant 0 : index
    %c0_199 = arith.constant 0 : index
    %238 = vector.load %arg12[%c0_197, %c0_198, %c0_199] : memref<2x32x16xf32, #tpu.memory_space<vmem>>, vector<1x32x16xf32>
    %239 = vector.shape_cast %238 : vector<1x32x16xf32> to vector<32x16xf32>
    %cst_200 = arith.constant 5.000000e-01 : f32
    %240 = vector.broadcast %cst_200 : f32 to vector<16x128xf32>
    %241 = arith.mulf %240, %237 : vector<16x128xf32>
    %cst_201 = arith.constant 4.471500e-02 : f32
    %242 = vector.broadcast %cst_201 : f32 to vector<16x128xf32>
    %243 = arith.mulf %242, %237 : vector<16x128xf32>
    %244 = arith.mulf %243, %237 : vector<16x128xf32>
    %245 = arith.mulf %244, %237 : vector<16x128xf32>
    %246 = arith.addf %237, %245 : vector<16x128xf32>
    %cst_202 = arith.constant 0.797884583 : f32
    %247 = vector.broadcast %cst_202 : f32 to vector<16x128xf32>
    %248 = arith.mulf %247, %246 : vector<16x128xf32>
    %249 = math.tanh %248 : vector<16x128xf32>
    %cst_203 = arith.constant 1.000000e+00 : f32
    %250 = vector.broadcast %cst_203 : f32 to vector<16x128xf32>
    %251 = arith.addf %250, %249 : vector<16x128xf32>
    %252 = arith.mulf %241, %251 : vector<16x128xf32>
    %cst_204 = arith.constant dense<0.000000e+00> : vector<32x128xf32>
    %253 = tpu.matmul %239, %252, %cst_204 {dimension_numbers = #tpu.dot_dimension_numbers<[1], [0], [0], [1], [0, 0, 1, 1], [], []>} : vector<32x16xf32>, vector<16x128xf32>, vector<32x128xf32> -> vector<32x128xf32>
    %c0_205 = arith.constant 0 : index
    %c0_206 = arith.constant 0 : index
    %c0_207 = arith.constant 0 : index
    %254 = vector.load %arg13[%c0_205, %c0_206, %c0_207] : memref<2x32x1xf32, #tpu.memory_space<vmem>>, vector<1x32x1xf32>
    %255 = vector.shape_cast %254 : vector<1x32x1xf32> to vector<32x1xf32>
    %256 = vector.broadcast %255 : vector<32x1xf32> to vector<32x128xf32>
    %257 = arith.addf %253, %256 : vector<32x128xf32>
    %258 = arith.addf %49, %257 : vector<32x128xf32>
    %259 = vector.extract_strided_slice %29 {offsets = [64, 0], sizes = [32, 2], strides = [1, 1]} : vector<128x2xf32> to vector<32x2xf32>
    %260 = vector.extract_strided_slice %29 {offsets = [96, 0], sizes = [32, 2], strides = [1, 1]} : vector<128x2xf32> to vector<32x2xf32>
    %cst_208 = arith.constant dense<0.000000e+00> : vector<32x2xf32>
    %261 = tpu.matmul %258, %30, %cst_208 {dimension_numbers = #tpu.dot_dimension_numbers<[1], [0], [0], [1], [0, 0, 1, 1], [], []>} : vector<32x128xf32>, vector<128x2xf32>, vector<32x2xf32> -> vector<32x2xf32>
    %cst_209 = arith.constant dense<0.000000e+00> : vector<32x128xf32>
    %262 = tpu.matmul %261, %31, %cst_209 {dimension_numbers = #tpu.dot_dimension_numbers<[1], [0], [0], [1], [0, 0, 1, 1], [], []>} : vector<32x2xf32>, vector<2x128xf32>, vector<32x128xf32> -> vector<32x128xf32>
    %263 = arith.subf %258, %262 : vector<32x128xf32>
    %264 = arith.mulf %263, %263 : vector<32x128xf32>
    %cst_210 = arith.constant dense<0.000000e+00> : vector<32x2xf32>
    %265 = tpu.matmul %264, %30, %cst_210 {dimension_numbers = #tpu.dot_dimension_numbers<[1], [0], [0], [1], [0, 0, 1, 1], [], []>} : vector<32x128xf32>, vector<128x2xf32>, vector<32x2xf32> -> vector<32x2xf32>
    %cst_211 = arith.constant 9.99999974E-6 : f32
    %266 = vector.broadcast %cst_211 : f32 to vector<32x2xf32>
    %267 = arith.addf %265, %266 : vector<32x2xf32>
    %268 = math.rsqrt %267 : vector<32x2xf32>
    %269 = arith.mulf %259, %268 : vector<32x2xf32>
    %270 = tpu.concatenate %269, %260 in 0 : vector<32x2xf32>, vector<32x2xf32> -> vector<64x2xf32>
    %cst_212 = arith.constant dense<0.000000e+00> : vector<64x128xf32>
    %271 = tpu.matmul %270, %31, %cst_212 {dimension_numbers = #tpu.dot_dimension_numbers<[1], [0], [0], [1], [0, 0, 1, 1], [], []>} : vector<64x2xf32>, vector<2x128xf32>, vector<64x128xf32> -> vector<64x128xf32>
    %272 = vector.extract_strided_slice %271 {offsets = [0, 0], sizes = [32, 128], strides = [1, 1]} : vector<64x128xf32> to vector<32x128xf32>
    %273 = arith.mulf %272, %263 : vector<32x128xf32>
    %274 = vector.extract_strided_slice %271 {offsets = [32, 0], sizes = [32, 128], strides = [1, 1]} : vector<64x128xf32> to vector<32x128xf32>
    %275 = arith.addf %273, %274 : vector<32x128xf32>
    %c1_213 = arith.constant 1 : index
    %c0_214 = arith.constant 0 : index
    %c0_215 = arith.constant 0 : index
    %276 = vector.load %arg6[%c1_213, %c0_214, %c0_215] : memref<2x16x32xf32, #tpu.memory_space<vmem>>, vector<1x16x32xf32>
    %277 = vector.shape_cast %276 : vector<1x16x32xf32> to vector<16x32xf32>
    %cst_216 = arith.constant 5.000000e-01 : f32
    %278 = vector.broadcast %cst_216 : f32 to vector<32x128xf32>
    %279 = arith.mulf %278, %275 : vector<32x128xf32>
    %cst_217 = arith.constant 4.471500e-02 : f32
    %280 = vector.broadcast %cst_217 : f32 to vector<32x128xf32>
    %281 = arith.mulf %280, %275 : vector<32x128xf32>
    %282 = arith.mulf %281, %275 : vector<32x128xf32>
    %283 = arith.mulf %282, %275 : vector<32x128xf32>
    %284 = arith.addf %275, %283 : vector<32x128xf32>
    %cst_218 = arith.constant 0.797884583 : f32
    %285 = vector.broadcast %cst_218 : f32 to vector<32x128xf32>
    %286 = arith.mulf %285, %284 : vector<32x128xf32>
    %287 = math.tanh %286 : vector<32x128xf32>
    %cst_219 = arith.constant 1.000000e+00 : f32
    %288 = vector.broadcast %cst_219 : f32 to vector<32x128xf32>
    %289 = arith.addf %288, %287 : vector<32x128xf32>
    %290 = arith.mulf %279, %289 : vector<32x128xf32>
    %cst_220 = arith.constant dense<0.000000e+00> : vector<16x128xf32>
    %291 = tpu.matmul %277, %290, %cst_220 {dimension_numbers = #tpu.dot_dimension_numbers<[1], [0], [0], [1], [0, 0, 1, 1], [], []>} : vector<16x32xf32>, vector<32x128xf32>, vector<16x128xf32> -> vector<16x128xf32>
    %c1_221 = arith.constant 1 : index
    %c0_222 = arith.constant 0 : index
    %c0_223 = arith.constant 0 : index
    %292 = vector.load %arg7[%c1_221, %c0_222, %c0_223] : memref<2x16x1xf32, #tpu.memory_space<vmem>>, vector<1x16x1xf32>
    %293 = vector.shape_cast %292 : vector<1x16x1xf32> to vector<16x1xf32>
    %294 = vector.broadcast %293 : vector<16x1xf32> to vector<16x128xf32>
    %295 = arith.addf %291, %294 : vector<16x128xf32>
    %cst_224 = arith.constant 5.000000e-01 : f32
    %296 = vector.broadcast %cst_224 : f32 to vector<16x128xf32>
    %297 = arith.mulf %296, %295 : vector<16x128xf32>
    %cst_225 = arith.constant 4.471500e-02 : f32
    %298 = vector.broadcast %cst_225 : f32 to vector<16x128xf32>
    %299 = arith.mulf %298, %295 : vector<16x128xf32>
    %300 = arith.mulf %299, %295 : vector<16x128xf32>
    %301 = arith.mulf %300, %295 : vector<16x128xf32>
    %302 = arith.addf %295, %301 : vector<16x128xf32>
    %cst_226 = arith.constant 0.797884583 : f32
    %303 = vector.broadcast %cst_226 : f32 to vector<16x128xf32>
    %304 = arith.mulf %303, %302 : vector<16x128xf32>
    %305 = math.tanh %304 : vector<16x128xf32>
    %cst_227 = arith.constant 1.000000e+00 : f32
    %306 = vector.broadcast %cst_227 : f32 to vector<16x128xf32>
    %307 = arith.addf %306, %305 : vector<16x128xf32>
    %308 = arith.mulf %297, %307 : vector<16x128xf32>
    %c1_228 = arith.constant 1 : index
    %c0_229 = arith.constant 0 : index
    %c0_230 = arith.constant 0 : index
    %309 = vector.load %arg9[%c1_228, %c0_229, %c0_230] : memref<2x16x1xf32, #tpu.memory_space<vmem>>, vector<1x16x1xf32>
    %310 = vector.shape_cast %309 : vector<1x16x1xf32> to vector<16x1xf32>
    %c9_i32_231 = arith.constant 9 : i32
    %311 = tpu.dynamic_rotate %308 by %c9_i32_231 dim 1 : vector<16x128xf32>, i32 -> vector<16x128xf32>
    %c0_232 = arith.constant 0 : index
    %c0_233 = arith.constant 0 : index
    %c0_234 = arith.constant 0 : index
    %312 = vector.load %arg16[%c0_232, %c0_233, %c0_234] : memref<9x16x128xf32, #tpu.memory_space<vmem>>, vector<1x16x128xf32>
    %313 = vector.shape_cast %312 : vector<1x16x128xf32> to vector<16x128xf32>
    %314 = arith.mulf %311, %313 : vector<16x128xf32>
    %c1_235 = arith.constant 1 : index
    %c0_236 = arith.constant 0 : index
    %c0_237 = arith.constant 0 : index
    %c0_238 = arith.constant 0 : index
    %315 = vector.load %arg8[%c1_235, %c0_236, %c0_237, %c0_238] : memref<2x9x16x16xf32, #tpu.memory_space<vmem>>, vector<1x1x16x16xf32>
    %316 = vector.shape_cast %315 : vector<1x1x16x16xf32> to vector<16x16xf32>
    %cst_239 = arith.constant dense<0.000000e+00> : vector<16x128xf32>
    %317 = tpu.matmul %316, %314, %cst_239 {dimension_numbers = #tpu.dot_dimension_numbers<[1], [0], [0], [1], [0, 0, 1, 1], [], []>} : vector<16x16xf32>, vector<16x128xf32>, vector<16x128xf32> -> vector<16x128xf32>
    %c8_i32_240 = arith.constant 8 : i32
    %318 = tpu.dynamic_rotate %308 by %c8_i32_240 dim 1 : vector<16x128xf32>, i32 -> vector<16x128xf32>
    %c1_241 = arith.constant 1 : index
    %c0_242 = arith.constant 0 : index
    %c0_243 = arith.constant 0 : index
    %319 = vector.load %arg16[%c1_241, %c0_242, %c0_243] : memref<9x16x128xf32, #tpu.memory_space<vmem>>, vector<1x16x128xf32>
    %320 = vector.shape_cast %319 : vector<1x16x128xf32> to vector<16x128xf32>
    %321 = arith.mulf %318, %320 : vector<16x128xf32>
    %c1_244 = arith.constant 1 : index
    %c1_245 = arith.constant 1 : index
    %c0_246 = arith.constant 0 : index
    %c0_247 = arith.constant 0 : index
    %322 = vector.load %arg8[%c1_244, %c1_245, %c0_246, %c0_247] : memref<2x9x16x16xf32, #tpu.memory_space<vmem>>, vector<1x1x16x16xf32>
    %323 = vector.shape_cast %322 : vector<1x1x16x16xf32> to vector<16x16xf32>
    %cst_248 = arith.constant dense<0.000000e+00> : vector<16x128xf32>
    %324 = tpu.matmul %323, %321, %cst_248 {dimension_numbers = #tpu.dot_dimension_numbers<[1], [0], [0], [1], [0, 0, 1, 1], [], []>} : vector<16x16xf32>, vector<16x128xf32>, vector<16x128xf32> -> vector<16x128xf32>
    %325 = arith.addf %317, %324 : vector<16x128xf32>
    %c7_i32_249 = arith.constant 7 : i32
    %326 = tpu.dynamic_rotate %308 by %c7_i32_249 dim 1 : vector<16x128xf32>, i32 -> vector<16x128xf32>
    %c2_250 = arith.constant 2 : index
    %c0_251 = arith.constant 0 : index
    %c0_252 = arith.constant 0 : index
    %327 = vector.load %arg16[%c2_250, %c0_251, %c0_252] : memref<9x16x128xf32, #tpu.memory_space<vmem>>, vector<1x16x128xf32>
    %328 = vector.shape_cast %327 : vector<1x16x128xf32> to vector<16x128xf32>
    %329 = arith.mulf %326, %328 : vector<16x128xf32>
    %c1_253 = arith.constant 1 : index
    %c2_254 = arith.constant 2 : index
    %c0_255 = arith.constant 0 : index
    %c0_256 = arith.constant 0 : index
    %330 = vector.load %arg8[%c1_253, %c2_254, %c0_255, %c0_256] : memref<2x9x16x16xf32, #tpu.memory_space<vmem>>, vector<1x1x16x16xf32>
    %331 = vector.shape_cast %330 : vector<1x1x16x16xf32> to vector<16x16xf32>
    %cst_257 = arith.constant dense<0.000000e+00> : vector<16x128xf32>
    %332 = tpu.matmul %331, %329, %cst_257 {dimension_numbers = #tpu.dot_dimension_numbers<[1], [0], [0], [1], [0, 0, 1, 1], [], []>} : vector<16x16xf32>, vector<16x128xf32>, vector<16x128xf32> -> vector<16x128xf32>
    %333 = arith.addf %325, %332 : vector<16x128xf32>
    %c1_i32_258 = arith.constant 1 : i32
    %334 = tpu.dynamic_rotate %308 by %c1_i32_258 dim 1 : vector<16x128xf32>, i32 -> vector<16x128xf32>
    %c3_259 = arith.constant 3 : index
    %c0_260 = arith.constant 0 : index
    %c0_261 = arith.constant 0 : index
    %335 = vector.load %arg16[%c3_259, %c0_260, %c0_261] : memref<9x16x128xf32, #tpu.memory_space<vmem>>, vector<1x16x128xf32>
    %336 = vector.shape_cast %335 : vector<1x16x128xf32> to vector<16x128xf32>
    %337 = arith.mulf %334, %336 : vector<16x128xf32>
    %c1_262 = arith.constant 1 : index
    %c3_263 = arith.constant 3 : index
    %c0_264 = arith.constant 0 : index
    %c0_265 = arith.constant 0 : index
    %338 = vector.load %arg8[%c1_262, %c3_263, %c0_264, %c0_265] : memref<2x9x16x16xf32, #tpu.memory_space<vmem>>, vector<1x1x16x16xf32>
    %339 = vector.shape_cast %338 : vector<1x1x16x16xf32> to vector<16x16xf32>
    %cst_266 = arith.constant dense<0.000000e+00> : vector<16x128xf32>
    %340 = tpu.matmul %339, %337, %cst_266 {dimension_numbers = #tpu.dot_dimension_numbers<[1], [0], [0], [1], [0, 0, 1, 1], [], []>} : vector<16x16xf32>, vector<16x128xf32>, vector<16x128xf32> -> vector<16x128xf32>
    %341 = arith.addf %333, %340 : vector<16x128xf32>
    %c1_267 = arith.constant 1 : index
    %c4_268 = arith.constant 4 : index
    %c0_269 = arith.constant 0 : index
    %c0_270 = arith.constant 0 : index
    %342 = vector.load %arg8[%c1_267, %c4_268, %c0_269, %c0_270] : memref<2x9x16x16xf32, #tpu.memory_space<vmem>>, vector<1x1x16x16xf32>
    %343 = vector.shape_cast %342 : vector<1x1x16x16xf32> to vector<16x16xf32>
    %cst_271 = arith.constant dense<0.000000e+00> : vector<16x128xf32>
    %344 = tpu.matmul %343, %308, %cst_271 {dimension_numbers = #tpu.dot_dimension_numbers<[1], [0], [0], [1], [0, 0, 1, 1], [], []>} : vector<16x16xf32>, vector<16x128xf32>, vector<16x128xf32> -> vector<16x128xf32>
    %345 = arith.addf %341, %344 : vector<16x128xf32>
    %c127_i32_272 = arith.constant 127 : i32
    %346 = tpu.dynamic_rotate %308 by %c127_i32_272 dim 1 : vector<16x128xf32>, i32 -> vector<16x128xf32>
    %c5_273 = arith.constant 5 : index
    %c0_274 = arith.constant 0 : index
    %c0_275 = arith.constant 0 : index
    %347 = vector.load %arg16[%c5_273, %c0_274, %c0_275] : memref<9x16x128xf32, #tpu.memory_space<vmem>>, vector<1x16x128xf32>
    %348 = vector.shape_cast %347 : vector<1x16x128xf32> to vector<16x128xf32>
    %349 = arith.mulf %346, %348 : vector<16x128xf32>
    %c1_276 = arith.constant 1 : index
    %c5_277 = arith.constant 5 : index
    %c0_278 = arith.constant 0 : index
    %c0_279 = arith.constant 0 : index
    %350 = vector.load %arg8[%c1_276, %c5_277, %c0_278, %c0_279] : memref<2x9x16x16xf32, #tpu.memory_space<vmem>>, vector<1x1x16x16xf32>
    %351 = vector.shape_cast %350 : vector<1x1x16x16xf32> to vector<16x16xf32>
    %cst_280 = arith.constant dense<0.000000e+00> : vector<16x128xf32>
    %352 = tpu.matmul %351, %349, %cst_280 {dimension_numbers = #tpu.dot_dimension_numbers<[1], [0], [0], [1], [0, 0, 1, 1], [], []>} : vector<16x16xf32>, vector<16x128xf32>, vector<16x128xf32> -> vector<16x128xf32>
    %353 = arith.addf %345, %352 : vector<16x128xf32>
    %c121_i32_281 = arith.constant 121 : i32
    %354 = tpu.dynamic_rotate %308 by %c121_i32_281 dim 1 : vector<16x128xf32>, i32 -> vector<16x128xf32>
    %c6_282 = arith.constant 6 : index
    %c0_283 = arith.constant 0 : index
    %c0_284 = arith.constant 0 : index
    %355 = vector.load %arg16[%c6_282, %c0_283, %c0_284] : memref<9x16x128xf32, #tpu.memory_space<vmem>>, vector<1x16x128xf32>
    %356 = vector.shape_cast %355 : vector<1x16x128xf32> to vector<16x128xf32>
    %357 = arith.mulf %354, %356 : vector<16x128xf32>
    %c1_285 = arith.constant 1 : index
    %c6_286 = arith.constant 6 : index
    %c0_287 = arith.constant 0 : index
    %c0_288 = arith.constant 0 : index
    %358 = vector.load %arg8[%c1_285, %c6_286, %c0_287, %c0_288] : memref<2x9x16x16xf32, #tpu.memory_space<vmem>>, vector<1x1x16x16xf32>
    %359 = vector.shape_cast %358 : vector<1x1x16x16xf32> to vector<16x16xf32>
    %cst_289 = arith.constant dense<0.000000e+00> : vector<16x128xf32>
    %360 = tpu.matmul %359, %357, %cst_289 {dimension_numbers = #tpu.dot_dimension_numbers<[1], [0], [0], [1], [0, 0, 1, 1], [], []>} : vector<16x16xf32>, vector<16x128xf32>, vector<16x128xf32> -> vector<16x128xf32>
    %361 = arith.addf %353, %360 : vector<16x128xf32>
    %c120_i32_290 = arith.constant 120 : i32
    %362 = tpu.dynamic_rotate %308 by %c120_i32_290 dim 1 : vector<16x128xf32>, i32 -> vector<16x128xf32>
    %c7_291 = arith.constant 7 : index
    %c0_292 = arith.constant 0 : index
    %c0_293 = arith.constant 0 : index
    %363 = vector.load %arg16[%c7_291, %c0_292, %c0_293] : memref<9x16x128xf32, #tpu.memory_space<vmem>>, vector<1x16x128xf32>
    %364 = vector.shape_cast %363 : vector<1x16x128xf32> to vector<16x128xf32>
    %365 = arith.mulf %362, %364 : vector<16x128xf32>
    %c1_294 = arith.constant 1 : index
    %c7_295 = arith.constant 7 : index
    %c0_296 = arith.constant 0 : index
    %c0_297 = arith.constant 0 : index
    %366 = vector.load %arg8[%c1_294, %c7_295, %c0_296, %c0_297] : memref<2x9x16x16xf32, #tpu.memory_space<vmem>>, vector<1x1x16x16xf32>
    %367 = vector.shape_cast %366 : vector<1x1x16x16xf32> to vector<16x16xf32>
    %cst_298 = arith.constant dense<0.000000e+00> : vector<16x128xf32>
    %368 = tpu.matmul %367, %365, %cst_298 {dimension_numbers = #tpu.dot_dimension_numbers<[1], [0], [0], [1], [0, 0, 1, 1], [], []>} : vector<16x16xf32>, vector<16x128xf32>, vector<16x128xf32> -> vector<16x128xf32>
    %369 = arith.addf %361, %368 : vector<16x128xf32>
    %c119_i32_299 = arith.constant 119 : i32
    %370 = tpu.dynamic_rotate %308 by %c119_i32_299 dim 1 : vector<16x128xf32>, i32 -> vector<16x128xf32>
    %c8_300 = arith.constant 8 : index
    %c0_301 = arith.constant 0 : index
    %c0_302 = arith.constant 0 : index
    %371 = vector.load %arg16[%c8_300, %c0_301, %c0_302] : memref<9x16x128xf32, #tpu.memory_space<vmem>>, vector<1x16x128xf32>
    %372 = vector.shape_cast %371 : vector<1x16x128xf32> to vector<16x128xf32>
    %373 = arith.mulf %370, %372 : vector<16x128xf32>
    %c1_303 = arith.constant 1 : index
    %c8_304 = arith.constant 8 : index
    %c0_305 = arith.constant 0 : index
    %c0_306 = arith.constant 0 : index
    %374 = vector.load %arg8[%c1_303, %c8_304, %c0_305, %c0_306] : memref<2x9x16x16xf32, #tpu.memory_space<vmem>>, vector<1x1x16x16xf32>
    %375 = vector.shape_cast %374 : vector<1x1x16x16xf32> to vector<16x16xf32>
    %cst_307 = arith.constant dense<0.000000e+00> : vector<16x128xf32>
    %376 = tpu.matmul %375, %373, %cst_307 {dimension_numbers = #tpu.dot_dimension_numbers<[1], [0], [0], [1], [0, 0, 1, 1], [], []>} : vector<16x16xf32>, vector<16x128xf32>, vector<16x128xf32> -> vector<16x128xf32>
    %377 = arith.addf %369, %376 : vector<16x128xf32>
    %378 = vector.broadcast %310 : vector<16x1xf32> to vector<16x128xf32>
    %379 = arith.addf %377, %378 : vector<16x128xf32>
    %cst_308 = arith.constant 5.000000e-01 : f32
    %380 = vector.broadcast %cst_308 : f32 to vector<16x128xf32>
    %381 = arith.mulf %380, %379 : vector<16x128xf32>
    %cst_309 = arith.constant 4.471500e-02 : f32
    %382 = vector.broadcast %cst_309 : f32 to vector<16x128xf32>
    %383 = arith.mulf %382, %379 : vector<16x128xf32>
    %384 = arith.mulf %383, %379 : vector<16x128xf32>
    %385 = arith.mulf %384, %379 : vector<16x128xf32>
    %386 = arith.addf %379, %385 : vector<16x128xf32>
    %cst_310 = arith.constant 0.797884583 : f32
    %387 = vector.broadcast %cst_310 : f32 to vector<16x128xf32>
    %388 = arith.mulf %387, %386 : vector<16x128xf32>
    %389 = math.tanh %388 : vector<16x128xf32>
    %cst_311 = arith.constant 1.000000e+00 : f32
    %390 = vector.broadcast %cst_311 : f32 to vector<16x128xf32>
    %391 = arith.addf %390, %389 : vector<16x128xf32>
    %392 = arith.mulf %381, %391 : vector<16x128xf32>
    %c1_312 = arith.constant 1 : index
    %c0_313 = arith.constant 0 : index
    %c0_314 = arith.constant 0 : index
    %393 = vector.load %arg11[%c1_312, %c0_313, %c0_314] : memref<2x16x1xf32, #tpu.memory_space<vmem>>, vector<1x16x1xf32>
    %394 = vector.shape_cast %393 : vector<1x16x1xf32> to vector<16x1xf32>
    %c9_i32_315 = arith.constant 9 : i32
    %395 = tpu.dynamic_rotate %392 by %c9_i32_315 dim 1 : vector<16x128xf32>, i32 -> vector<16x128xf32>
    %c0_316 = arith.constant 0 : index
    %c0_317 = arith.constant 0 : index
    %c0_318 = arith.constant 0 : index
    %396 = vector.load %arg16[%c0_316, %c0_317, %c0_318] : memref<9x16x128xf32, #tpu.memory_space<vmem>>, vector<1x16x128xf32>
    %397 = vector.shape_cast %396 : vector<1x16x128xf32> to vector<16x128xf32>
    %398 = arith.mulf %395, %397 : vector<16x128xf32>
    %c1_319 = arith.constant 1 : index
    %c0_320 = arith.constant 0 : index
    %c0_321 = arith.constant 0 : index
    %c0_322 = arith.constant 0 : index
    %399 = vector.load %arg10[%c1_319, %c0_320, %c0_321, %c0_322] : memref<2x9x16x16xf32, #tpu.memory_space<vmem>>, vector<1x1x16x16xf32>
    %400 = vector.shape_cast %399 : vector<1x1x16x16xf32> to vector<16x16xf32>
    %cst_323 = arith.constant dense<0.000000e+00> : vector<16x128xf32>
    %401 = tpu.matmul %400, %398, %cst_323 {dimension_numbers = #tpu.dot_dimension_numbers<[1], [0], [0], [1], [0, 0, 1, 1], [], []>} : vector<16x16xf32>, vector<16x128xf32>, vector<16x128xf32> -> vector<16x128xf32>
    %c8_i32_324 = arith.constant 8 : i32
    %402 = tpu.dynamic_rotate %392 by %c8_i32_324 dim 1 : vector<16x128xf32>, i32 -> vector<16x128xf32>
    %c1_325 = arith.constant 1 : index
    %c0_326 = arith.constant 0 : index
    %c0_327 = arith.constant 0 : index
    %403 = vector.load %arg16[%c1_325, %c0_326, %c0_327] : memref<9x16x128xf32, #tpu.memory_space<vmem>>, vector<1x16x128xf32>
    %404 = vector.shape_cast %403 : vector<1x16x128xf32> to vector<16x128xf32>
    %405 = arith.mulf %402, %404 : vector<16x128xf32>
    %c1_328 = arith.constant 1 : index
    %c1_329 = arith.constant 1 : index
    %c0_330 = arith.constant 0 : index
    %c0_331 = arith.constant 0 : index
    %406 = vector.load %arg10[%c1_328, %c1_329, %c0_330, %c0_331] : memref<2x9x16x16xf32, #tpu.memory_space<vmem>>, vector<1x1x16x16xf32>
    %407 = vector.shape_cast %406 : vector<1x1x16x16xf32> to vector<16x16xf32>
    %cst_332 = arith.constant dense<0.000000e+00> : vector<16x128xf32>
    %408 = tpu.matmul %407, %405, %cst_332 {dimension_numbers = #tpu.dot_dimension_numbers<[1], [0], [0], [1], [0, 0, 1, 1], [], []>} : vector<16x16xf32>, vector<16x128xf32>, vector<16x128xf32> -> vector<16x128xf32>
    %409 = arith.addf %401, %408 : vector<16x128xf32>
    %c7_i32_333 = arith.constant 7 : i32
    %410 = tpu.dynamic_rotate %392 by %c7_i32_333 dim 1 : vector<16x128xf32>, i32 -> vector<16x128xf32>
    %c2_334 = arith.constant 2 : index
    %c0_335 = arith.constant 0 : index
    %c0_336 = arith.constant 0 : index
    %411 = vector.load %arg16[%c2_334, %c0_335, %c0_336] : memref<9x16x128xf32, #tpu.memory_space<vmem>>, vector<1x16x128xf32>
    %412 = vector.shape_cast %411 : vector<1x16x128xf32> to vector<16x128xf32>
    %413 = arith.mulf %410, %412 : vector<16x128xf32>
    %c1_337 = arith.constant 1 : index
    %c2_338 = arith.constant 2 : index
    %c0_339 = arith.constant 0 : index
    %c0_340 = arith.constant 0 : index
    %414 = vector.load %arg10[%c1_337, %c2_338, %c0_339, %c0_340] : memref<2x9x16x16xf32, #tpu.memory_space<vmem>>, vector<1x1x16x16xf32>
    %415 = vector.shape_cast %414 : vector<1x1x16x16xf32> to vector<16x16xf32>
    %cst_341 = arith.constant dense<0.000000e+00> : vector<16x128xf32>
    %416 = tpu.matmul %415, %413, %cst_341 {dimension_numbers = #tpu.dot_dimension_numbers<[1], [0], [0], [1], [0, 0, 1, 1], [], []>} : vector<16x16xf32>, vector<16x128xf32>, vector<16x128xf32> -> vector<16x128xf32>
    %417 = arith.addf %409, %416 : vector<16x128xf32>
    %c1_i32_342 = arith.constant 1 : i32
    %418 = tpu.dynamic_rotate %392 by %c1_i32_342 dim 1 : vector<16x128xf32>, i32 -> vector<16x128xf32>
    %c3_343 = arith.constant 3 : index
    %c0_344 = arith.constant 0 : index
    %c0_345 = arith.constant 0 : index
    %419 = vector.load %arg16[%c3_343, %c0_344, %c0_345] : memref<9x16x128xf32, #tpu.memory_space<vmem>>, vector<1x16x128xf32>
    %420 = vector.shape_cast %419 : vector<1x16x128xf32> to vector<16x128xf32>
    %421 = arith.mulf %418, %420 : vector<16x128xf32>
    %c1_346 = arith.constant 1 : index
    %c3_347 = arith.constant 3 : index
    %c0_348 = arith.constant 0 : index
    %c0_349 = arith.constant 0 : index
    %422 = vector.load %arg10[%c1_346, %c3_347, %c0_348, %c0_349] : memref<2x9x16x16xf32, #tpu.memory_space<vmem>>, vector<1x1x16x16xf32>
    %423 = vector.shape_cast %422 : vector<1x1x16x16xf32> to vector<16x16xf32>
    %cst_350 = arith.constant dense<0.000000e+00> : vector<16x128xf32>
    %424 = tpu.matmul %423, %421, %cst_350 {dimension_numbers = #tpu.dot_dimension_numbers<[1], [0], [0], [1], [0, 0, 1, 1], [], []>} : vector<16x16xf32>, vector<16x128xf32>, vector<16x128xf32> -> vector<16x128xf32>
    %425 = arith.addf %417, %424 : vector<16x128xf32>
    %c1_351 = arith.constant 1 : index
    %c4_352 = arith.constant 4 : index
    %c0_353 = arith.constant 0 : index
    %c0_354 = arith.constant 0 : index
    %426 = vector.load %arg10[%c1_351, %c4_352, %c0_353, %c0_354] : memref<2x9x16x16xf32, #tpu.memory_space<vmem>>, vector<1x1x16x16xf32>
    %427 = vector.shape_cast %426 : vector<1x1x16x16xf32> to vector<16x16xf32>
    %cst_355 = arith.constant dense<0.000000e+00> : vector<16x128xf32>
    %428 = tpu.matmul %427, %392, %cst_355 {dimension_numbers = #tpu.dot_dimension_numbers<[1], [0], [0], [1], [0, 0, 1, 1], [], []>} : vector<16x16xf32>, vector<16x128xf32>, vector<16x128xf32> -> vector<16x128xf32>
    %429 = arith.addf %425, %428 : vector<16x128xf32>
    %c127_i32_356 = arith.constant 127 : i32
    %430 = tpu.dynamic_rotate %392 by %c127_i32_356 dim 1 : vector<16x128xf32>, i32 -> vector<16x128xf32>
    %c5_357 = arith.constant 5 : index
    %c0_358 = arith.constant 0 : index
    %c0_359 = arith.constant 0 : index
    %431 = vector.load %arg16[%c5_357, %c0_358, %c0_359] : memref<9x16x128xf32, #tpu.memory_space<vmem>>, vector<1x16x128xf32>
    %432 = vector.shape_cast %431 : vector<1x16x128xf32> to vector<16x128xf32>
    %433 = arith.mulf %430, %432 : vector<16x128xf32>
    %c1_360 = arith.constant 1 : index
    %c5_361 = arith.constant 5 : index
    %c0_362 = arith.constant 0 : index
    %c0_363 = arith.constant 0 : index
    %434 = vector.load %arg10[%c1_360, %c5_361, %c0_362, %c0_363] : memref<2x9x16x16xf32, #tpu.memory_space<vmem>>, vector<1x1x16x16xf32>
    %435 = vector.shape_cast %434 : vector<1x1x16x16xf32> to vector<16x16xf32>
    %cst_364 = arith.constant dense<0.000000e+00> : vector<16x128xf32>
    %436 = tpu.matmul %435, %433, %cst_364 {dimension_numbers = #tpu.dot_dimension_numbers<[1], [0], [0], [1], [0, 0, 1, 1], [], []>} : vector<16x16xf32>, vector<16x128xf32>, vector<16x128xf32> -> vector<16x128xf32>
    %437 = arith.addf %429, %436 : vector<16x128xf32>
    %c121_i32_365 = arith.constant 121 : i32
    %438 = tpu.dynamic_rotate %392 by %c121_i32_365 dim 1 : vector<16x128xf32>, i32 -> vector<16x128xf32>
    %c6_366 = arith.constant 6 : index
    %c0_367 = arith.constant 0 : index
    %c0_368 = arith.constant 0 : index
    %439 = vector.load %arg16[%c6_366, %c0_367, %c0_368] : memref<9x16x128xf32, #tpu.memory_space<vmem>>, vector<1x16x128xf32>
    %440 = vector.shape_cast %439 : vector<1x16x128xf32> to vector<16x128xf32>
    %441 = arith.mulf %438, %440 : vector<16x128xf32>
    %c1_369 = arith.constant 1 : index
    %c6_370 = arith.constant 6 : index
    %c0_371 = arith.constant 0 : index
    %c0_372 = arith.constant 0 : index
    %442 = vector.load %arg10[%c1_369, %c6_370, %c0_371, %c0_372] : memref<2x9x16x16xf32, #tpu.memory_space<vmem>>, vector<1x1x16x16xf32>
    %443 = vector.shape_cast %442 : vector<1x1x16x16xf32> to vector<16x16xf32>
    %cst_373 = arith.constant dense<0.000000e+00> : vector<16x128xf32>
    %444 = tpu.matmul %443, %441, %cst_373 {dimension_numbers = #tpu.dot_dimension_numbers<[1], [0], [0], [1], [0, 0, 1, 1], [], []>} : vector<16x16xf32>, vector<16x128xf32>, vector<16x128xf32> -> vector<16x128xf32>
    %445 = arith.addf %437, %444 : vector<16x128xf32>
    %c120_i32_374 = arith.constant 120 : i32
    %446 = tpu.dynamic_rotate %392 by %c120_i32_374 dim 1 : vector<16x128xf32>, i32 -> vector<16x128xf32>
    %c7_375 = arith.constant 7 : index
    %c0_376 = arith.constant 0 : index
    %c0_377 = arith.constant 0 : index
    %447 = vector.load %arg16[%c7_375, %c0_376, %c0_377] : memref<9x16x128xf32, #tpu.memory_space<vmem>>, vector<1x16x128xf32>
    %448 = vector.shape_cast %447 : vector<1x16x128xf32> to vector<16x128xf32>
    %449 = arith.mulf %446, %448 : vector<16x128xf32>
    %c1_378 = arith.constant 1 : index
    %c7_379 = arith.constant 7 : index
    %c0_380 = arith.constant 0 : index
    %c0_381 = arith.constant 0 : index
    %450 = vector.load %arg10[%c1_378, %c7_379, %c0_380, %c0_381] : memref<2x9x16x16xf32, #tpu.memory_space<vmem>>, vector<1x1x16x16xf32>
    %451 = vector.shape_cast %450 : vector<1x1x16x16xf32> to vector<16x16xf32>
    %cst_382 = arith.constant dense<0.000000e+00> : vector<16x128xf32>
    %452 = tpu.matmul %451, %449, %cst_382 {dimension_numbers = #tpu.dot_dimension_numbers<[1], [0], [0], [1], [0, 0, 1, 1], [], []>} : vector<16x16xf32>, vector<16x128xf32>, vector<16x128xf32> -> vector<16x128xf32>
    %453 = arith.addf %445, %452 : vector<16x128xf32>
    %c119_i32_383 = arith.constant 119 : i32
    %454 = tpu.dynamic_rotate %392 by %c119_i32_383 dim 1 : vector<16x128xf32>, i32 -> vector<16x128xf32>
    %c8_384 = arith.constant 8 : index
    %c0_385 = arith.constant 0 : index
    %c0_386 = arith.constant 0 : index
    %455 = vector.load %arg16[%c8_384, %c0_385, %c0_386] : memref<9x16x128xf32, #tpu.memory_space<vmem>>, vector<1x16x128xf32>
    %456 = vector.shape_cast %455 : vector<1x16x128xf32> to vector<16x128xf32>
    %457 = arith.mulf %454, %456 : vector<16x128xf32>
    %c1_387 = arith.constant 1 : index
    %c8_388 = arith.constant 8 : index
    %c0_389 = arith.constant 0 : index
    %c0_390 = arith.constant 0 : index
    %458 = vector.load %arg10[%c1_387, %c8_388, %c0_389, %c0_390] : memref<2x9x16x16xf32, #tpu.memory_space<vmem>>, vector<1x1x16x16xf32>
    %459 = vector.shape_cast %458 : vector<1x1x16x16xf32> to vector<16x16xf32>
    %cst_391 = arith.constant dense<0.000000e+00> : vector<16x128xf32>
    %460 = tpu.matmul %459, %457, %cst_391 {dimension_numbers = #tpu.dot_dimension_numbers<[1], [0], [0], [1], [0, 0, 1, 1], [], []>} : vector<16x16xf32>, vector<16x128xf32>, vector<16x128xf32> -> vector<16x128xf32>
    %461 = arith.addf %453, %460 : vector<16x128xf32>
    %462 = vector.broadcast %394 : vector<16x1xf32> to vector<16x128xf32>
    %463 = arith.addf %461, %462 : vector<16x128xf32>
    %c1_392 = arith.constant 1 : index
    %c0_393 = arith.constant 0 : index
    %c0_394 = arith.constant 0 : index
    %464 = vector.load %arg12[%c1_392, %c0_393, %c0_394] : memref<2x32x16xf32, #tpu.memory_space<vmem>>, vector<1x32x16xf32>
    %465 = vector.shape_cast %464 : vector<1x32x16xf32> to vector<32x16xf32>
    %cst_395 = arith.constant 5.000000e-01 : f32
    %466 = vector.broadcast %cst_395 : f32 to vector<16x128xf32>
    %467 = arith.mulf %466, %463 : vector<16x128xf32>
    %cst_396 = arith.constant 4.471500e-02 : f32
    %468 = vector.broadcast %cst_396 : f32 to vector<16x128xf32>
    %469 = arith.mulf %468, %463 : vector<16x128xf32>
    %470 = arith.mulf %469, %463 : vector<16x128xf32>
    %471 = arith.mulf %470, %463 : vector<16x128xf32>
    %472 = arith.addf %463, %471 : vector<16x128xf32>
    %cst_397 = arith.constant 0.797884583 : f32
    %473 = vector.broadcast %cst_397 : f32 to vector<16x128xf32>
    %474 = arith.mulf %473, %472 : vector<16x128xf32>
    %475 = math.tanh %474 : vector<16x128xf32>
    %cst_398 = arith.constant 1.000000e+00 : f32
    %476 = vector.broadcast %cst_398 : f32 to vector<16x128xf32>
    %477 = arith.addf %476, %475 : vector<16x128xf32>
    %478 = arith.mulf %467, %477 : vector<16x128xf32>
    %cst_399 = arith.constant dense<0.000000e+00> : vector<32x128xf32>
    %479 = tpu.matmul %465, %478, %cst_399 {dimension_numbers = #tpu.dot_dimension_numbers<[1], [0], [0], [1], [0, 0, 1, 1], [], []>} : vector<32x16xf32>, vector<16x128xf32>, vector<32x128xf32> -> vector<32x128xf32>
    %c1_400 = arith.constant 1 : index
    %c0_401 = arith.constant 0 : index
    %c0_402 = arith.constant 0 : index
    %480 = vector.load %arg13[%c1_400, %c0_401, %c0_402] : memref<2x32x1xf32, #tpu.memory_space<vmem>>, vector<1x32x1xf32>
    %481 = vector.shape_cast %480 : vector<1x32x1xf32> to vector<32x1xf32>
    %482 = vector.broadcast %481 : vector<32x1xf32> to vector<32x128xf32>
    %483 = arith.addf %479, %482 : vector<32x128xf32>
    %484 = arith.addf %275, %483 : vector<32x128xf32>
    %c0_403 = arith.constant 0 : index
    %c0_404 = arith.constant 0 : index
    %485 = vector.load %arg14[%c0_403, %c0_404] : memref<8x32xf32, #tpu.memory_space<vmem>>, vector<8x32xf32>
    %cst_405 = arith.constant dense<0.000000e+00> : vector<8x128xf32>
    %486 = tpu.matmul %485, %484, %cst_405 {dimension_numbers = #tpu.dot_dimension_numbers<[1], [0], [0], [1], [0, 0, 1, 1], [], []>} : vector<8x32xf32>, vector<32x128xf32>, vector<8x128xf32> -> vector<8x128xf32>
    %c0_406 = arith.constant 0 : index
    %c0_407 = arith.constant 0 : index
    %487 = vector.load %arg15[%c0_406, %c0_407] : memref<8x1xf32, #tpu.memory_space<vmem>>, vector<8x1xf32>
    %488 = vector.broadcast %487 : vector<8x1xf32> to vector<8x128xf32>
    %489 = arith.addf %486, %488 : vector<8x128xf32>
    %c0_408 = arith.constant 0 : index
    %c0_409 = arith.constant 0 : index
    %490 = vector.load %arg19[%c0_408, %c0_409] : memref<8x128xf32, #tpu.memory_space<vmem>>, vector<8x128xf32>
    tpu.vector_store %arg19[%c0_408, %c0_409], %489 {strides = array<i32>} : memref<8x128xf32, #tpu.memory_space<vmem>>, vector<8x128xf32>,
    return
  }
}

</mosaic_0001>

<bundles_post_ra>
// kernel: model_forward.1
= control target key start
LH: loop header
LB: loop body
LE: loop exit
PB: predicated region body
PF: predicated region fallthrough
CT: control target
= control target key end

     0   :  { %s8383_s0 = inlined_call_operand.vmem [shape: f32[32,2], index: 0, kind: input, shape index: {}]   ;;  %s8384_s1 = inlined_call_operand.vmem [shape: f32[2,32,32], index: 1, kind: input, shape index: {}]   ;;  %s8385_s2 = inlined_call_operand.vmem [shape: f32[2,32,1], index: 2, kind: input, shape index: {}]   ;;  %s8386_s3 = inlined_call_operand.hbm [shape: f32[32,128], index: 3, kind: input, shape index: {}]   ;;  %s8387_s4 = inlined_call_operand.vmem [shape: f32[128,32], index: 4, kind: input, shape index: {}]   ;;  %s8388_s5 = inlined_call_operand.vmem [shape: f32[128,1], index: 5, kind: input, shape index: {}]   ;;  %s8389_s6 = inlined_call_operand.hbm [shape: f32[2,16,32], index: 6, kind: input, shape index: {}]   ;;  %s8390_s7 = inlined_call_operand.vmem [shape: f32[2,16,1], index: 7, kind: input, shape index: {}]   ;;  %s8391_s8 = inlined_call_operand.vmem [shape: f32[2,9,16,16], index: 8, kind: input, shape index: {}]   ;;  %s8392_s9 = inlined_call_operand.vmem [shape: f32[2,16,1], index: 9, kind: input, shape index: {}]   ;;  %s8393_s10 = inlined_call_operand.vmem [shape: f32[2,9,16,16], index: 10, kind: input, shape index: {}]   ;;  %s8394_s11 = inlined_call_operand.vmem [shape: f32[2,16,1], index: 11, kind: input, shape index: {}]   ;;  %s8395_s12 = inlined_call_operand.vmem [shape: f32[2,32,16], index: 12, kind: input, shape index: {}]   ;;  %s8396_s13 = inlined_call_operand.vmem [shape: f32[2,32,1], index: 13, kind: input, shape index: {}]   ;;  %s8397_s14 = inlined_call_operand.hbm [shape: f32[8,32], index: 14, kind: input, shape index: {}]   ;;  %s8398_s15 = inlined_call_operand.vmem [shape: f32[8,1], index: 15, kind: input, shape index: {}]   ;;  %s8399_s16 = inlined_call_operand.vmem [shape: f32[9,16,128], index: 16, kind: input, shape index: {}]   ;;  %s8400_s17 = inlined_call_operand.vmem [shape: f32[128,2], index: 17, kind: input, shape index: {}]   ;;  %s8401_s18 = inlined_call_operand.vmem [shape: f32[2,128], index: 18, kind: input, shape index: {}]   ;;  %s8402_s19 = inlined_call_operand.vmem [shape: f32[8,128], index: 19, kind: output, shape index: {}]  }
   0x1   :  { %8406 = sst [smem:[#allocation9_spill]] %s8383_s0 }
   0x2   :  { %8407 = sst [smem:[#allocation10_spill]] %s8384_s1 }
   0x3   :  { %8408 = sst [smem:[#allocation11_spill]] %s8385_s2 }
   0x4   :  { %8409 = sst [smem:[#allocation12_spill]] %s8386_s3 }
   0x5   :  { %24 = vsyncpa [#allocation3], 0 }
   0x6   :  { %25 = vsyncpa [#allocation5], 0  ;;  %s6913_s0 = smov [#allocation4]   ;;  %s6914_s20 = smov [#allocation2]  }
   0x7   :  { %s53_s30 = sshll.u32 %s6913_s0, 4  ;;  %s37_s21 = sshll.u32 %s6914_s20, 4  ;;  %s54_s30 = int_to_ptr.vmem [resolvable:$true] %s53_s30  ;;  %s38_s21 = int_to_ptr.vmem [resolvable:$true] %s37_s21 }
   0x8   :  { %s6857_s1 = scalar_lea.vmem %s54_s30, 512  ;;  %p6862_p1 = scmp.lt.s32.totalorder %s54_s30, %s54_s30 }
   0x9   :  { %p6858_p0 = scmp.ne.s32.totalorder %s54_s30, %s6857_s1  ;;  %p6863_p2 = scmp.lt.s32.totalorder %s6857_s1, %s6857_s1 }
   0xb   :  { %p6864_p3 = por %p6863_p2, %p6862_p1 }
   0xd   :  { %p6865_p4 = pnand %p6864_p3, %p6858_p0 }
   0xf   :  { %6868 = shalt.err (!%p6865_p4)
}
  0x10   :  { %s6915_s22 = smov 128   ;;  %s6916_s2 = smov 8  }
  0x11   :  { %59 = dma.hbm_to_vmem [thread:$0]  %s8389_s6, 512, %s54_s30, [#allocation5], %s6915_s22, %s6915_s22, %s6916_s2  }
  0x12   :  { %s6877_s25 = scalar_lea.vmem %s38_s21, 512  ;;  %p6882_p6 = scmp.lt.s32.totalorder %s38_s21, %s38_s21 }
  0x13   :  { %p6878_p5 = scmp.ne.s32.totalorder %s38_s21, %s6877_s25  ;;  %p6883_p7 = scmp.lt.s32.totalorder %s6877_s25, %s6877_s25 }
  0x15   :  { %p6884_p8 = por %p6883_p7, %p6882_p6 }
  0x17   :  { %p6885_p9 = pnand %p6884_p8, %p6878_p5 }
  0x19   :  { %6888 = shalt.err (!%p6885_p9)
}
  0x1a   :  { %s8410_s27 = sld [smem:[#allocation12_spill]]  ;;  %s6917_s28 = smov [#allocation6]  }
  0x1b   :  { %s80_s29 = sshll.u32 %s6917_s28, 4  ;;  %s81_s29 = int_to_ptr.vmem [resolvable:$true] %s80_s29 }
  0x1c   :  { %s6897_s0 = scalar_lea.vmem %s81_s29, 128  ;;  %p6902_p11 = scmp.lt.s32.totalorder %s81_s29, %s81_s29 }
  0x1d   :  { %p6898_p10 = scmp.ne.s32.totalorder %s81_s29, %s6897_s0  ;;  %p6903_p12 = scmp.lt.s32.totalorder %s6897_s0, %s6897_s0 }
  0x1f   :  { %p6904_p13 = por %p6903_p12, %p6902_p11 }
  0x20   :  { %43 = dma.hbm_to_vmem [thread:$0]  %s8410_s27, 512, %s38_s21, [#allocation3], %s6915_s22, %s6915_s22, %s6916_s2  }
  0x21   :  { %p6905_p0 = pnand %p6904_p13, %p6898_p10 }
  0x23   :  { %6908 = shalt.err (!%p6905_p0)
}
  0x24   :  { %83 = dma.hbm_to_vmem [thread:$0]  %s8397_s14, 128, %s81_s29, [#allocation5]  }
  0x25   :  { %6909 = dma.done.wait [#allocation3], 512  }
  0x26   :  { %6910 = vsyncadd [#allocation3], 4294966784 }
  0x27   :  { %6911 = dma.done.wait [#allocation5], 640  }
  0x28   :  { %6912 = vsyncadd [#allocation5], 4294966656  ;;  %v6918_v0 = vmov 0   ;;  %vm133_vm0 = vcmask 261120   ;;  %s8411_s1 = sld [smem:[#allocation9_spill]]  ;;  %v398_v17 = vld [vmem:[%s8388_s5] sm:$0xff] }
  0x29   :  { %6758 = vset.pattern.permute.xlu0 %v6918_v0  ;;  %6759 = vset.pattern.permute.xlu1 %v6918_v0  ;;  %s8412_s14 = sld [smem:[#allocation10_spill]]  ;;  %v399_v18 = vld [vmem:[%s8388_s5 + $0x8] sm:$0xff]  ;;  %v400_v19 = vld [vmem:[%s8388_s5 + $0x10] sm:$0xff]  ;;  %v401_v20 = vld [vmem:[%s8388_s5 + $0x18] sm:$0xff]  ;;  %vm806_vm9 = vcmask 1041408   ;;  %vm793_vm10 = vcmask 15360  }
  0x2a   :  { %s8413_s29 = sld [smem:[#allocation11_spill]]  ;;  %v402_v21 = vld [vmem:[%s8388_s5 + $0x20] sm:$0xff]  ;;  %v403_v22 = vld [vmem:[%s8388_s5 + $0x28] sm:$0xff]  ;;  %v404_v23 = vld [vmem:[%s8388_s5 + $0x30] sm:$0xff]  ;;  %vm1306_vm11 = vcmask 130048   ;;  %s6919_s27 = smov 9  }
  0x2b   :  { %v405_v24 = vld [vmem:[%s8388_s5 + $0x38] sm:$0xff]  ;;  %v1172_v25 = vld [vmem:[%s8390_s7 + $0x8] sm:$0xff]  ;;  %v1171_v26 = vld [vmem:[%s8390_s7] sm:$0xff]  ;;  %s6921_s28 = smov 1   ;;  %s6922_s0 = smov 127   ;;  %vm6927_vm12 = vmmov 0  }
  0x2c   :  { %v702_v49 = vld [vmem:[%s8400_s17 + $0x78] sm:$0xff]  ;;  %v701_v51 = vld [vmem:[%s8400_s17 + $0x70] sm:$0xff]  ;;  %v700_v53 = vld [vmem:[%s8400_s17 + $0x68] sm:$0xff]  ;;  %s6923_s6 = smov 121  }
  0x2d   :  { %v7145_v54 = vld [vmem:[#allocation2] sm:$0xff]  ;;  %v698_v56 = vld [vmem:[%s8400_s17 + $0x58] sm:$0xff]  ;;  %v697_v57 = vld [vmem:[%s8400_s17 + $0x50] sm:$0xff] }
  0x2e   :  { %v104_v1 = vld [vmem:[%s8411_s1 + $0x18] sm:$0xff]  ;;  %v103_v2 = vld [vmem:[%s8411_s1 + $0x10] sm:$0xff]  ;;  %v102_v4 = vld [vmem:[%s8411_s1 + $0x8] sm:$0xff] }
  0x2f   :  { %6182 = vmatprep.subr.mxu0 %v104_v1  ;;  %v105_v3 = vld [vmem:[%s8412_s14] sm:$0xff]  ;;  %v106_v10 = vld [vmem:[%s8412_s14 + $0x8] sm:$0xff]  ;;  %v107_v11 = vld [vmem:[%s8412_s14 + $0x10] sm:$0xff] }
  0x30   :  { %6183 = vmatpush3.msra.mxu0 %v104_v1  ;;  %6190 = vmatprep.mubr.msk.f32.mxu0 %vm133_vm0, %v105_v3  ;;  %v112_v5 = vld [vmem:[%s8413_s29 + $0x18] sm:$0xff]  ;;  %v110_v6 = vld [vmem:[%s8413_s29 + $0x8] sm:$0xff]  ;;  %v101_v7 = vld [vmem:[%s8411_s1] sm:$0xff]  ;;  %s6920_s1 = smov 7  }
  0x31   :  { %6184 = vmatprep.subr.mxu0 %v103_v2  ;;  %130 = vperm.xlu0 %6758, %v112_v5   ;;  %v111_v8 = vld [vmem:[%s8413_s29 + $0x10] sm:$0xff]  ;;  %v109_v9 = vld [vmem:[%s8413_s29] sm:$0xff]  ;;  %v5635_v12 = vld [vmem:[%s8413_s29 + $0x38] sm:$0xff] }
  0x32   :  { %6185 = vmatpush3.msra.mxu0 %v103_v2  ;;  %120 = vperm.xlu1 %6759, %v110_v6   ;;  %v5634_v13 = vld [vmem:[%s8413_s29 + $0x30] sm:$0xff]  ;;  %v108_v14 = vld [vmem:[%s8412_s14 + $0x18] sm:$0xff]  ;;  %v5633_v15 = vld [vmem:[%s8413_s29 + $0x28] sm:$0xff] }
  0x33   :  { %6186 = vmatprep.subr.mxu0 %v102_v4  ;;  %v5632_v16 = vld [vmem:[%s8413_s29 + $0x20] sm:$0xff]  ;;  %v5629_v48 = vld [vmem:[%s8412_s14 + $0x28] sm:$0xff]  ;;  %v5630_v50 = vld [vmem:[%s8412_s14 + $0x30] sm:$0xff]  ;;  %s6925_s29 = smov 119  }
  0x34   :  { %6187 = vmatpush3.msra.mxu0 %v102_v4  ;;  %v5628_v27 = vld [vmem:[%s8412_s14 + $0x20] sm:$0xff]  ;;  %v5631_v52 = vld [vmem:[%s8412_s14 + $0x38] sm:$0xff]  ;;  %v696_v58 = vld [vmem:[%s8400_s17 + $0x48] sm:$0xff]  ;;  %s6924_s14 = smov 120  }
  0x35   :  { %6188 = vmatprep.subr.mxu0 %v101_v7  ;;  %125 = vperm.xlu0 %6758, %v111_v8   ;;  %v699_v55 = vld [vmem:[%s8400_s17 + $0x60] sm:$0xff]  ;;  %v694_v60 = vld [vmem:[%s8400_s17 + $0x38] sm:$0xff]  ;;  %v693_v61 = vld [vmem:[%s8400_s17 + $0x30] sm:$0xff] }
  0x36   :  { %6189 = vmatpush3.msra.mxu0 %v101_v7  ;;  %115 = vperm.xlu1 %6759, %v109_v9   ;;  %v695_v59 = vld [vmem:[%s8400_s17 + $0x40] sm:$0xff]  ;;  %v692_v62 = vld [vmem:[%s8400_s17 + $0x28] sm:$0xff]  ;;  %v690_v0 = vld [vmem:[%s8400_s17 + $0x18] sm:$0xff] }
  0x37   :  { %6191 = vmatmul.mubr.msk.f32.vlgmr.msra.gmra.mxu0 %vm133_vm0, %v106_v10  ;;  %6204 = vmatprep.mubr.msk.f32.mxu1 %vm133_vm0, %v5628_v27  ;;  %v691_v63 = vld [vmem:[%s8400_s17 + $0x20] sm:$0xff]  ;;  %v689_v1 = vld [vmem:[%s8400_s17 + $0x10] sm:$0xff]  ;;  %v688_v2 = vld [vmem:[%s8400_s17 + $0x8] sm:$0xff] }
  0x38   :  { %6193 = vmatprep.mubr.msk.f32.mxu0 %vm133_vm0, %v107_v11  ;;  %v687_v3 = vld [vmem:[%s8400_s17] sm:$0xff]  ;;  %v7188_v4 = vld [vmem:[#allocation2 + $0x8] sm:$0xff]  ;;  %v7190_v5 = vld [vmem:[#allocation2 + $0x10] sm:$0xff] }
  0x39   :  { %270 = vperm.xlu0 %6758, %v5635_v12   ;;  %v7194_v6 = vld [vmem:[#allocation2 + $0x18] sm:$0xff]  ;;  %v382_v7 = vld [vmem:[%s8387_s4] sm:$0xff] }
  0x3a   :  { %265 = vperm.xlu1 %6759, %v5634_v13  }
  0x3b   :  { %6194 = vmatmul.mubr.msk.f32.gmra.mxu0 %vm133_vm0, %v108_v14 }
  0x3c   :  { %6218 = vmatprep.mubr.msk.f32.mxu0 %vm133_vm0, %v382_v7 }
  0x3d   :  { %260 = vperm.xlu0 %6758, %v5633_v15  }
  0x3e   :  { %255 = vperm.xlu1 %6759, %v5632_v16  }
  0x41   :  { %416 = vperm.xlu0 %6758, %v398_v17  }
  0x42   :  { %421 = vperm.xlu1 %6759, %v399_v18  }
  0x45   :  { %426 = vperm.xlu0 %6758, %v400_v19  }
  0x46   :  { %431 = vperm.xlu1 %6759, %v401_v20  }
  0x49   :  { %436 = vperm.xlu0 %6758, %v402_v21  }
  0x4a   :  { %441 = vperm.xlu1 %6759, %v403_v22  }
  0x4d   :  { %446 = vperm.xlu0 %6758, %v404_v23  }
  0x4e   :  { %451 = vperm.xlu1 %6759, %v405_v24  }
  0x51   :  { %1180 = vperm.xlu0 %6758, %v1172_v25  }
  0x52   :  { %1175 = vperm.xlu1 %6759, %v1171_v26  }
  0xac   :  { %v131_v28 = vpop.permute.xlu0 %130 }
  0xad   :  { %v121_v29 = vpop.permute.xlu1 %120 }
  0xb0   :  { %v126_v33 = vpop.permute.xlu0 %125 }
  0xb1   :  { %v116_v36 = vpop.permute.xlu1 %115 }
  0xb4   :  { %v271_v8 = vpop.permute.xlu0 %270 }
  0xb5   :  { %v266_v9 = vpop.permute.xlu1 %265 }
  0xb8   :  { %v261_v12 = vpop.permute.xlu0 %260 }
  0xb9   :  { %v256_v16 = vpop.permute.xlu1 %255 }
  0xf7   :  { %v6192_v30 = vpop.f32.mrf.mxu0 }
  0xf8   :  { %v218_v34 = vadd.f32 %v6192_v30, %v121_v29  ;;  %v703_v29 = vld [vmem:[%s8401_s18] sm:$0x3]  ;;  %v384_v30 = vld [vmem:[%s8387_s4 + $0x10] sm:$0xff] }
  0xf9   :  { %v212_v31 = vpop.f32.mrf.mxu0 }
  0xfa   :  { %v213_v38 = vadd.f32 %v212_v31, %v116_v36  ;;  %v236_v41 = vmul.f32 0.2, %v218_v34  ;;  %vm232_vm3 = vcmp.gt.f32.partialorder %v218_v34, 0.0  ;;  %v385_v31 = vld [vmem:[%s8387_s4 + $0x18] sm:$0xff]  ;;  %v390_v36 = vld [vmem:[%s8387_s4 + $0x40] sm:$0xff] }
  0xfb   :  { %v6195_v32 = vpop.f32.mrf.mxu0 }
  0xfc   :  { %v228_v35 = vadd.f32 %v6195_v32, %v131_v28  ;;  %v235_v44 = vmul.f32 0.2, %v213_v38  ;;  %vm231_vm4 = vcmp.gt.f32.partialorder %v213_v38, 0.0  ;;  %v240_v46 = vsel %vm232_vm3, %v218_v34, %v236_v41  ;;  %v383_v28 = vld [vmem:[%s8387_s4 + $0x8] sm:$0xff]  ;;  %v386_v32 = vld [vmem:[%s8387_s4 + $0x20] sm:$0xff]  ;;  %v388_v34 = vld [vmem:[%s8387_s4 + $0x30] sm:$0xff] }
  0xfd   :  { %v222_v37 = vpop.f32.mrf.mxu0 }
  0xfe   :  { %v223_v39 = vadd.f32 %v222_v37, %v126_v33  ;;  %vm234_vm1 = vcmp.gt.f32.partialorder %v228_v35, 0.0  ;;  %v238_v40 = vmul.f32 0.2, %v228_v35  ;;  %v239_v47 = vsel %vm231_vm4, %v213_v38, %v235_v44  ;;  %v387_v33 = vld [vmem:[%s8387_s4 + $0x28] sm:$0xff]  ;;  %v392_v38 = vld [vmem:[%s8387_s4 + $0x50] sm:$0xff] }
  0xff   :  { %v391_v37 = vld [vmem:[%s8387_s4 + $0x48] sm:$0xff] }
 0x100   :  { %v237_v42 = vmul.f32 0.2, %v223_v39  ;;  %v242_v43 = vsel %vm234_vm1, %v228_v35, %v238_v40  ;;  %vm233_vm2 = vcmp.gt.f32.partialorder %v223_v39, 0.0  ;;  %v389_v35 = vld [vmem:[%s8387_s4 + $0x38] sm:$0xff]  ;;  %v394_v40 = vld [vmem:[%s8387_s4 + $0x60] sm:$0xff] }
 0x101   :  { %6196 = vmatprep.subr.mxu1 %v242_v43 }
 0x102   :  { %6197 = vmatpush3.msra.mxu1 %v242_v43  ;;  %v241_v45 = vsel %vm233_vm2, %v223_v39, %v237_v42  ;;  %v393_v39 = vld [vmem:[%s8387_s4 + $0x58] sm:$0xff]  ;;  %v395_v42 = vld [vmem:[%s8387_s4 + $0x68] sm:$0xff]  ;;  %v396_v43 = vld [vmem:[%s8387_s4 + $0x70] sm:$0xff] }
 0x103   :  { %6198 = vmatprep.subr.mxu1 %v241_v45 }
 0x104   :  { %6199 = vmatpush3.msra.mxu1 %v241_v45  ;;  %v397_v45 = vld [vmem:[%s8387_s4 + $0x78] sm:$0xff] }
 0x105   :  { %6200 = vmatprep.subr.mxu1 %v240_v46 }
 0x106   :  { %6201 = vmatpush3.msra.mxu1 %v240_v46 }
 0x107   :  { %6202 = vmatprep.subr.mxu1 %v239_v47 }
 0x108   :  { %6203 = vmatpush3.msra.mxu1 %v239_v47 }
 0x109   :  { %6205 = vmatmul.mubr.msk.f32.vlgmr.msra.gmra.mxu1 %vm133_vm0, %v5629_v48  ;;  %6242 = vmatprep.subr.mxu1 %v702_v49 }
 0x10a   :  { %6207 = vmatprep.mubr.msk.f32.mxu1 %vm133_vm0, %v5630_v50  ;;  %6243 = vmatpush3.msra.mxu1 %v702_v49 }
 0x10b   :  { %6244 = vmatprep.subr.mxu1 %v701_v51 }
 0x10c   :  { %6245 = vmatpush3.msra.mxu1 %v701_v51 }
 0x10d   :  { %6208 = vmatmul.mubr.msk.f32.gmra.mxu1 %vm133_vm0, %v5631_v52  ;;  %6246 = vmatprep.subr.mxu1 %v700_v53 }
 0x10e   :  { %6247 = vmatpush3.msra.mxu1 %v700_v53  ;;  %6274 = vmatprep.mubr.f32.mxu1 %v7145_v54 }
 0x10f   :  { %6248 = vmatprep.subr.mxu1 %v699_v55 }
 0x110   :  { %6249 = vmatpush3.msra.mxu1 %v699_v55 }
 0x111   :  { %6250 = vmatprep.subr.mxu1 %v698_v56 }
 0x112   :  { %6251 = vmatpush3.msra.mxu1 %v698_v56 }
 0x113   :  { %6252 = vmatprep.subr.mxu1 %v697_v57 }
 0x114   :  { %6253 = vmatpush3.msra.mxu1 %v697_v57 }
 0x115   :  { %6254 = vmatprep.subr.mxu1 %v696_v58 }
 0x116   :  { %6255 = vmatpush3.msra.mxu1 %v696_v58 }
 0x117   :  { %6256 = vmatprep.subr.mxu1 %v695_v59 }
 0x118   :  { %6257 = vmatpush3.msra.mxu1 %v695_v59 }
 0x119   :  { %6258 = vmatprep.subr.mxu1 %v694_v60 }
 0x11a   :  { %6259 = vmatpush3.msra.mxu1 %v694_v60 }
 0x11b   :  { %6260 = vmatprep.subr.mxu1 %v693_v61 }
 0x11c   :  { %6261 = vmatpush3.msra.mxu1 %v693_v61 }
 0x11d   :  { %6262 = vmatprep.subr.mxu1 %v692_v62 }
 0x11e   :  { %6263 = vmatpush3.msra.mxu1 %v692_v62 }
 0x11f   :  { %6264 = vmatprep.subr.mxu1 %v691_v63 }
 0x120   :  { %6265 = vmatpush3.msra.mxu1 %v691_v63 }
 0x121   :  { %6266 = vmatprep.subr.mxu1 %v690_v0 }
 0x122   :  { %6267 = vmatpush3.msra.mxu1 %v690_v0 }
 0x123   :  { %6268 = vmatprep.subr.mxu1 %v689_v1 }
 0x124   :  { %6269 = vmatpush3.msra.mxu1 %v689_v1 }
 0x125   :  { %6270 = vmatprep.subr.mxu1 %v688_v2 }
 0x126   :  { %6271 = vmatpush3.msra.mxu1 %v688_v2 }
 0x127   :  { %6272 = vmatprep.subr.mxu1 %v687_v3 }
 0x128   :  { %6273 = vmatpush3.msra.mxu1 %v687_v3 }
 0x129   :  { %6275 = vmatmul.mubr.f32.vlgmr.msra.gmra.mxu1 %v7188_v4  ;;  %6288 = vmatprep.subr.mxu1 %v702_v49 }
 0x12a   :  { %6277 = vmatprep.mubr.f32.mxu1 %v7190_v5  ;;  %6289 = vmatpush3.msra.mxu1 %v702_v49 }
 0x12b   :  { %6290 = vmatprep.subr.mxu1 %v701_v51 }
 0x12c   :  { %6291 = vmatpush3.msra.mxu1 %v701_v51 }
 0x12d   :  { %6278 = vmatmul.mubr.f32.gmra.mxu1 %v7194_v6  ;;  %6292 = vmatprep.subr.mxu1 %v700_v53 }
 0x12e   :  { %6293 = vmatpush3.msra.mxu1 %v700_v53 }
 0x12f   :  { %6294 = vmatprep.subr.mxu1 %v699_v55 }
 0x130   :  { %6295 = vmatpush3.msra.mxu1 %v699_v55 }
 0x131   :  { %6296 = vmatprep.subr.mxu1 %v698_v56 }
 0x132   :  { %6297 = vmatpush3.msra.mxu1 %v698_v56 }
 0x133   :  { %6298 = vmatprep.subr.mxu1 %v697_v57 }
 0x134   :  { %6299 = vmatpush3.msra.mxu1 %v697_v57 }
 0x135   :  { %6300 = vmatprep.subr.mxu1 %v696_v58 }
 0x136   :  { %6301 = vmatpush3.msra.mxu1 %v696_v58 }
 0x137   :  { %6302 = vmatprep.subr.mxu1 %v695_v59 }
 0x138   :  { %6303 = vmatpush3.msra.mxu1 %v695_v59 }
 0x139   :  { %6304 = vmatprep.subr.mxu1 %v694_v60 }
 0x13a   :  { %6305 = vmatpush3.msra.mxu1 %v694_v60 }
 0x13b   :  { %6306 = vmatprep.subr.mxu1 %v693_v61 }
 0x13c   :  { %6307 = vmatpush3.msra.mxu1 %v693_v61 }
 0x13d   :  { %6308 = vmatprep.subr.mxu1 %v692_v62 }
 0x13e   :  { %6309 = vmatpush3.msra.mxu1 %v692_v62 }
 0x13f   :  { %6310 = vmatprep.subr.mxu1 %v691_v63 }
 0x140   :  { %6311 = vmatpush3.msra.mxu1 %v691_v63 }
 0x141   :  { %6312 = vmatprep.subr.mxu1 %v690_v0 }
 0x142   :  { %6313 = vmatpush3.msra.mxu1 %v690_v0 }
 0x143   :  { %6314 = vmatprep.subr.mxu1 %v689_v1 }
 0x144   :  { %6315 = vmatpush3.msra.mxu1 %v689_v1 }
 0x145   :  { %6316 = vmatprep.subr.mxu1 %v688_v2 }
 0x146   :  { %6317 = vmatpush3.msra.mxu1 %v688_v2 }
 0x147   :  { %6318 = vmatprep.subr.mxu1 %v687_v3 }
 0x148   :  { %6319 = vmatpush3.msra.mxu1 %v687_v3 }
 0x1c9   :  { %v6206_v10 = vpop.f32.mrf.mxu1 }
 0x1ca   :  { %v357_v14 = vadd.f32 %v6206_v10, %v261_v12 }
 0x1cb   :  { %v351_v11 = vpop.f32.mrf.mxu1 }
 0x1cc   :  { %v352_v18 = vadd.f32 %v351_v11, %v256_v16  ;;  %v375_v21 = vmul.f32 0.2, %v357_v14  ;;  %vm371_vm7 = vcmp.gt.f32.partialorder %v357_v14, 0.0 }
 0x1cd   :  { %v6209_v13 = vpop.f32.mrf.mxu1 }
 0x1ce   :  { %v367_v15 = vadd.f32 %v6209_v13, %v271_v8  ;;  %v374_v24 = vmul.f32 0.2, %v352_v18  ;;  %vm370_vm8 = vcmp.gt.f32.partialorder %v352_v18, 0.0  ;;  %v379_v26 = vsel %vm371_vm7, %v357_v14, %v375_v21  ;;  %v422_v21 = vpop.permute.xlu1 %421 }
 0x1cf   :  { %v361_v17 = vpop.f32.mrf.mxu1 }
 0x1d0   :  { %v377_v19 = vmul.f32 0.2, %v367_v15  ;;  %v362_v20 = vadd.f32 %v361_v17, %v266_v9  ;;  %vm373_vm5 = vcmp.gt.f32.partialorder %v367_v15, 0.0  ;;  %v378_v27 = vsel %vm370_vm8, %v352_v18, %v374_v24 }
 0x1d2   :  { %v376_v22 = vmul.f32 0.2, %v362_v20  ;;  %v381_v23 = vsel %vm373_vm5, %v367_v15, %v377_v19  ;;  %vm372_vm6 = vcmp.gt.f32.partialorder %v362_v20, 0.0 }
 0x1d3   :  { %6210 = vmatprep.subr.mxu0 %v381_v23 }
 0x1d4   :  { %6211 = vmatpush3.msra.mxu0 %v381_v23  ;;  %v380_v25 = vsel %vm372_vm6, %v362_v20, %v376_v22  ;;  %v417_v20 = vpop.permute.xlu0 %416 }
 0x1d5   :  { %6212 = vmatprep.subr.mxu0 %v380_v25 }
 0x1d6   :  { %6213 = vmatpush3.msra.mxu0 %v380_v25 }
 0x1d7   :  { %6214 = vmatprep.subr.mxu0 %v379_v26 }
 0x1d8   :  { %6215 = vmatpush3.msra.mxu0 %v379_v26  ;;  %v427_v22 = vpop.permute.xlu0 %426 }
 0x1d9   :  { %6216 = vmatprep.subr.mxu0 %v378_v27 }
 0x1da   :  { %6217 = vmatpush3.msra.mxu0 %v378_v27  ;;  %v432_v27 = vpop.permute.xlu1 %431 }
 0x1db   :  { %6219 = vmatmul.mubr.msk.f32.vlgmr.msra.gmra.mxu0 %vm133_vm0, %v383_v28  ;;  %6280 = vmatprep.subr.msk.mxu0 %vm806_vm9, %v703_v29 }
 0x1dc   :  { %6221 = vmatprep.mubr.msk.f32.mxu0 %vm133_vm0, %v384_v30  ;;  %6281 = vmatpush3.msk.msra.mxu0 %vm806_vm9, %v703_v29 }
 0x1dd   :  { %6326 = vmatprep.subr.msk.mxu0 %vm806_vm9, %v703_v29 }
 0x1df   :  { %6222 = vmatmul.mubr.msk.f32.gmra.mxu0 %vm133_vm0, %v385_v31 }
 0x1e0   :  { %6224 = vmatprep.mubr.msk.f32.mxu0 %vm133_vm0, %v386_v32 }
 0x1e3   :  { %6225 = vmatmul.mubr.msk.f32.gmra.mxu0 %vm133_vm0, %v387_v33  ;;  %v437_v33 = vpop.permute.xlu0 %436 }
 0x1e4   :  { %6227 = vmatprep.mubr.msk.f32.mxu0 %vm133_vm0, %v388_v34 }
 0x1e7   :  { %6228 = vmatmul.mubr.msk.f32.gmra.mxu0 %vm133_vm0, %v389_v35 }
 0x1e8   :  { %6230 = vmatprep.mubr.msk.f32.mxu0 %vm133_vm0, %v390_v36 }
 0x1e9   :  { %v6276_v41 = vpop.f32.mrf.mxu1 }
 0x1eb   :  { %6231 = vmatmul.mubr.msk.f32.gmra.mxu0 %vm133_vm0, %v391_v37  ;;  %v774_v44 = vpop.f32.mrf.mxu1  ;;  %v442_v37 = vpop.permute.xlu1 %441 }
 0x1ec   :  { %6233 = vmatprep.mubr.msk.f32.mxu0 %vm133_vm0, %v392_v38 }
 0x1ed   :  { %v6279_v46 = vpop.f32.mrf.mxu1 }
 0x1ef   :  { %6234 = vmatmul.mubr.msk.f32.gmra.mxu0 %vm133_vm0, %v393_v39  ;;  %v784_v47 = vpop.f32.mrf.mxu1  ;;  %v447_v39 = vpop.permute.xlu0 %446 }
 0x1f0   :  { %6236 = vmatprep.mubr.msk.f32.mxu0 %vm133_vm0, %v394_v40 }
 0x1f3   :  { %6237 = vmatmul.mubr.msk.f32.gmra.mxu0 %vm133_vm0, %v395_v42  ;;  %v452_v42 = vpop.permute.xlu1 %451 }
 0x1f4   :  { %6239 = vmatprep.mubr.msk.f32.mxu0 %vm133_vm0, %v396_v43 }
 0x1f7   :  { %6240 = vmatmul.mubr.msk.f32.gmra.mxu0 %vm133_vm0, %v397_v45 }
 0x1f8   :  { %6282 = vmatprep.mubr.msk.f32.mxu0 %vm793_vm10, %v774_v44  ;;  %v1133_v44 = vld [vmem:[#allocation4] sm:$0xff] }
 0x1fb   :  { %6283 = vmatmul.mubr.msk.f32.vlgmr.msra.gmra.mxu0 %vm793_vm10, %v6276_v41 }
 0x1fc   :  { %6285 = vmatprep.mubr.msk.f32.mxu0 %vm793_vm10, %v784_v47  ;;  %6327 = vmatpush3.msk.msra.mxu0 %vm806_vm9, %v703_v29 }
 0x1ff   :  { %6286 = vmatmul.mubr.msk.f32.gmra.mxu0 %vm793_vm10, %v6279_v46 }
 0x29b   :  { %v6220_v48 = vpop.f32.mrf.mxu0 }
 0x29c   :  { %v614_v26 = vadd.f32 %v6220_v48, %v422_v21 }
 0x29d   :  { %v608_v49 = vpop.f32.mrf.mxu0 }
 0x29e   :  { %v609_v24 = vadd.f32 %v608_v49, %v417_v20 }
 0x29f   :  { %v6223_v50 = vpop.f32.mrf.mxu0 }
 0x2a0   :  { %v624_v34 = vadd.f32 %v6223_v50, %v432_v27 }
 0x2a1   :  { %v618_v51 = vpop.f32.mrf.mxu0 }
 0x2a2   :  { %v619_v31 = vadd.f32 %v618_v51, %v427_v22 }
 0x2a3   :  { %v7272_v52 = vpop.f32.mrf.mxu0 }
 0x2a4   :  { %v634_v40 = vadd.f32 %v7272_v52, %v442_v37 }
 0x2a5   :  { %v628_v53 = vpop.f32.mrf.mxu0 }
 0x2a6   :  { %v629_v38 = vadd.f32 %v628_v53, %v437_v33 }
 0x2a7   :  { %v7274_v55 = vpop.f32.mrf.mxu0 }
 0x2a8   :  { %v644_v43 = vadd.f32 %v7274_v55, %v452_v42  ;;  %v1181_v42 = vpop.permute.xlu0 %1180 }
 0x2a9   :  { %v7276_v56 = vpop.f32.mrf.mxu0 }
 0x2aa   :  { %v639_v41 = vadd.f32 %v7276_v56, %v447_v39 }
 0x2ab   :  { %v7278_v57 = vpop.f32.mrf.mxu0 }
 0x2ad   :  { %v7280_v58 = vpop.f32.mrf.mxu0 }
 0x2af   :  { %v7282_v59 = vpop.f32.mrf.mxu0 }
 0x2b1   :  { %v7284_v60 = vpop.f32.mrf.mxu0 }
 0x2b3   :  { %v7286_v61 = vpop.f32.mrf.mxu0 }
 0x2b5   :  { %v7288_v62 = vpop.f32.mrf.mxu0 }
 0x2b7   :  { %v7290_v63 = vpop.f32.mrf.mxu0 }
 0x2b9   :  { %v7292_v0 = vpop.f32.mrf.mxu0 }
 0x2bb   :  { %v6284_v1 = vpop.f32.mrf.mxu0 }
 0x2bc   :  { %v7295_v2 = vsub.f32 %v7188_v4, %v6284_v1 }
 0x2bd   :  { %v876_v3 = vpop.f32.mrf.mxu0 }
 0x2be   :  { %v7298_v7 = vsub.f32 %v7145_v54, %v876_v3  ;;  %v900_v10 = vmul.f32 %v7295_v2, %v7295_v2 }
 0x2bf   :  { %v6287_v8 = vpop.f32.mrf.mxu0 }
 0x2c0   :  { %v899_v9 = vmul.f32 %v7298_v7, %v7298_v7  ;;  %v7305_v11 = vsub.f32 %v7194_v6, %v6287_v8 }
 0x2c1   :  { %v886_v12 = vpop.f32.mrf.mxu0 }
 0x2c2   :  { %v7308_v13 = vsub.f32 %v7190_v5, %v886_v12  ;;  %6320 = vmatprep.mubr.f32.mxu1 %v899_v9  ;;  %v902_v4 = vmul.f32 %v7305_v11, %v7305_v11 }
 0x2c3   :  { %6321 = vmatmul.mubr.f32.vlgmr.msra.gmra.mxu1 %v900_v10 }
 0x2c4   :  { %v901_v54 = vmul.f32 %v7308_v13, %v7308_v13 }
 0x2c6   :  { %6323 = vmatprep.mubr.f32.mxu1 %v901_v54 }
 0x2c7   :  { %6324 = vmatmul.mubr.f32.gmra.mxu1 %v902_v4 }
 0x383   :  { %v6322_v14 = vpop.f32.mrf.mxu1 }
 0x384   :  { %v975_v15 = vadd.f32 1e-05, %v6322_v14 }
 0x385   :  { %v969_v16 = vpop.f32.mrf.mxu1 }
 0x386   :  { %v970_v17 = vadd.f32 1e-05, %v969_v16  ;;  %6760 = vrsqrt.f32 %v975_v15 }
 0x387   :  { %v6325_v6 = vpop.f32.mrf.mxu1 }
 0x388   :  { %6762 = vrsqrt.f32 %v970_v17  ;;  %v985_v18 = vadd.f32 1e-05, %v6325_v6 }
 0x389   :  { %v979_v5 = vpop.f32.mrf.mxu1 }
 0x38a   :  { %v980_v19 = vadd.f32 1e-05, %v979_v5  ;;  %6764 = vrsqrt.f32 %v985_v18 }
 0x38c   :  { %6766 = vrsqrt.f32 %v980_v19 }
 0x393   :  { %v6761_v23 = vpop.eup %6760 }
 0x394   :  { %v993_v29 = vmul.f32 %v6761_v23, %v614_v26 }
 0x395   :  { %v6763_v25 = vpop.eup %6762 }
 0x396   :  { %v992_v28 = vmul.f32 %v6763_v25, %v609_v24 }
 0x397   :  { %v6765_v30 = vpop.eup %6764 }
 0x398   :  { %6328 = vmatprep.mubr.msk.f32.mxu0 %vm793_vm10, %v992_v28  ;;  %v995_v36 = vmul.f32 %v6765_v30, %v624_v34 }
 0x399   :  { %v6767_v32 = vpop.eup %6766  ;;  %6329 = vmatmul.mubr.msk.f32.vlgmr.msra.gmra.mxu0 %vm793_vm10, %v993_v29 }
 0x39a   :  { %v994_v35 = vmul.f32 %v6767_v32, %v619_v31 }
 0x39c   :  { %6331 = vmatprep.mubr.msk.f32.mxu0 %vm793_vm10, %v994_v35 }
 0x39d   :  { %6332 = vmatmul.mubr.msk.f32.gmra.mxu0 %vm793_vm10, %v995_v36 }
 0x39e   :  { %6334 = vmatprep.mubr.msk.f32.mxu0 %vm793_vm10, %v629_v38 }
 0x3a1   :  { %6335 = vmatmul.mubr.msk.f32.gmra.mxu0 %vm793_vm10, %v634_v40 }
 0x3a2   :  { %6337 = vmatprep.mubr.msk.f32.mxu0 %vm793_vm10, %v639_v41  ;;  %v1134_v41 = vld [vmem:[#allocation4 + $0x8] sm:$0xff] }
 0x3a5   :  { %6338 = vmatmul.mubr.msk.f32.gmra.mxu0 %vm793_vm10, %v644_v43 }
 0x3a6   :  { %6348 = vmatprep.mubr.msk.f32.mxu0 %vm133_vm0, %v1133_v44 }
 0x459   :  { %v6330_v45 = vpop.f32.mrf.mxu0 }
 0x45a   :  { %v1126_v49 = vmul.f32 %v6330_v45, %v7295_v2  ;;  %v1176_v45 = vpop.permute.xlu1 %1175 }
 0x45b   :  { %v1086_v46 = vpop.f32.mrf.mxu0 }
 0x45c   :  { %v1125_v51 = vmul.f32 %v1086_v46, %v7298_v7 }
 0x45d   :  { %v6333_v47 = vpop.f32.mrf.mxu0 }
 0x45e   :  { %v1128_v56 = vmul.f32 %v6333_v47, %v7305_v11 }
 0x45f   :  { %v1096_v48 = vpop.f32.mrf.mxu0 }
 0x460   :  { %v1127_v8 = vmul.f32 %v1096_v48, %v7308_v13 }
 0x461   :  { %v6336_v50 = vpop.f32.mrf.mxu0 }
 0x462   :  { %v7328_v52 = vadd.f32 %v6336_v50, %v1126_v49 }
 0x463   :  { %v1106_v53 = vpop.f32.mrf.mxu0 }
 0x464   :  { %v7331_v55 = vadd.f32 %v1125_v51, %v1106_v53  ;;  %v1140_v1 = vmul.f32 0.044715, %v7328_v52  ;;  %v1136_v36 = vmul.f32 0.5, %v7328_v52 }
 0x465   :  { %v6339_v3 = vpop.f32.mrf.mxu0 }
 0x466   :  { %v7335_v9 = vadd.f32 %v6339_v3, %v1128_v56  ;;  %v1144_v10 = vmul.f32 %v1140_v1, %v7328_v52  ;;  %v1139_v2 = vmul.f32 0.044715, %v7331_v55  ;;  %v1135_v39 = vmul.f32 0.5, %v7331_v55 }
 0x467   :  { %v1116_v12 = vpop.f32.mrf.mxu0 }
 0x468   :  { %v7339_v7 = vadd.f32 %v1127_v8, %v1116_v12  ;;  %v1142_v54 = vmul.f32 0.044715, %v7335_v9  ;;  %v1148_v11 = vmul.f32 %v1144_v10, %v7328_v52  ;;  %v1143_v4 = vmul.f32 %v1139_v2, %v7331_v55  ;;  %v5674_v2 = vld [vmem:[%s8391_s8 + $0x10] sm:$0xff] }
 0x469   :  { %v1138_v28 = vmul.f32 0.5, %v7335_v9 }
 0x46a   :  { %v1146_v14 = vmul.f32 %v1142_v54, %v7335_v9  ;;  %v1141_v15 = vmul.f32 0.044715, %v7339_v7  ;;  %v1152_v13 = vadd.f32 %v1148_v11, %v7328_v52  ;;  %v1147_v16 = vmul.f32 %v1143_v4, %v7331_v55 }
 0x46b   :  { %v1137_v32 = vmul.f32 0.5, %v7339_v7 }
 0x46c   :  { %v1150_v17 = vmul.f32 %v1146_v14, %v7335_v9  ;;  %v1145_v6 = vmul.f32 %v1141_v15, %v7339_v7  ;;  %v1156_v18 = vmul.f32 0.7978846, %v1152_v13  ;;  %v1151_v5 = vadd.f32 %v1147_v16, %v7331_v55 }
 0x46e   :  { %v1154_v19 = vadd.f32 %v1150_v17, %v7335_v9  ;;  %v1149_v20 = vmul.f32 %v1145_v6, %v7339_v7  ;;  %v1155_v21 = vmul.f32 0.7978846, %v1151_v5  ;;  %6768 = vtanh.f32 %v1156_v18  ;;  %v5682_v17 = vld [vmem:[%s8391_s8 + $0x20] sm:$0xff]  ;;  %v1283_v6 = vld [vmem:[%s8392_s9 + $0x8] sm:$0xff]  ;;  %v7412_v5 = vld [vmem:[%s8399_s16 + $0x18] sm:$0xff] }
 0x46f   :  { %6369 = vmatprep.mubr.msk.f32.mxu1 %vm1306_vm11, %v5682_v17  ;;  %v1282_v18 = vld [vmem:[%s8392_s9] sm:$0xff] }
 0x470   :  { %v1158_v22 = vmul.f32 0.7978846, %v1154_v19  ;;  %v1153_v23 = vadd.f32 %v1149_v20, %v7339_v7  ;;  %v7417_v20 = vld [vmem:[%s8399_s16 + $0x10] sm:$0xff] }
 0x472   :  { %6770 = vtanh.f32 %v1158_v22  ;;  %v1157_v24 = vmul.f32 0.7978846, %v1153_v23  ;;  %v7423_v23 = vld [vmem:[%s8399_s16 + $0x8] sm:$0xff] }
 0x473   :  { %6772 = vtanh.f32 %v1155_v21 }
 0x474   :  { %6774 = vtanh.f32 %v1157_v24 }
 0x47b   :  { %v6769_v25 = vpop.eup %6768 }
 0x47c   :  { %v1164_v34 = vadd.f32 1.0, %v6769_v25 }
 0x47e   :  { %v1168_v38 = vmul.f32 %v1164_v34, %v1136_v36  ;;  %v7448_v34 = vld [vmem:[%s8399_s16 + $0x20] sm:$0xff] }
 0x47f   :  { %v6771_v26 = vpop.eup %6770 }
 0x480   :  { %v6773_v27 = vpop.eup %6772  ;;  %v1166_v29 = vadd.f32 1.0, %v6771_v26  ;;  %v7429_v26 = vld [vmem:[%s8399_s16] sm:$0xff] }
 0x481   :  { %v6775_v30 = vpop.eup %6774  ;;  %v1163_v37 = vadd.f32 1.0, %v6773_v27  ;;  %v5675_v27 = vld [vmem:[%s8391_s8 + $0x18] sm:$0xff] }
 0x482   :  { %v1170_v31 = vmul.f32 %v1166_v29, %v1138_v28  ;;  %v1165_v33 = vadd.f32 1.0, %v6775_v30  ;;  %v1292_v29 = vld [vmem:[%s8391_s8] sm:$0xff] }
 0x483   :  { %v1167_v40 = vmul.f32 %v1163_v37, %v1135_v39  ;;  %v5688_v37 = vld [vmem:[%s8391_s8 + $0x30] sm:$0xff]  ;;  %v7461_v39 = vld [vmem:[%s8399_s16 + $0x38] sm:$0xff] }
 0x484   :  { %6340 = vmatprep.subr.mxu0 %v1170_v31  ;;  %v1169_v35 = vmul.f32 %v1165_v33, %v1137_v32 }
 0x485   :  { %6341 = vmatpush3.msra.mxu0 %v1170_v31  ;;  %v7441_v31 = vld [vmem:[%s8399_s16 + $0x28] sm:$0xff] }
 0x486   :  { %6342 = vmatprep.subr.mxu0 %v1169_v35 }
 0x487   :  { %6343 = vmatpush3.msra.mxu0 %v1169_v35  ;;  %v1293_v35 = vld [vmem:[%s8391_s8 + $0x8] sm:$0xff] }
 0x488   :  { %6344 = vmatprep.subr.mxu0 %v1168_v38 }
 0x489   :  { %6345 = vmatpush3.msra.mxu0 %v1168_v38 }
 0x48a   :  { %6346 = vmatprep.subr.mxu0 %v1167_v40 }
 0x48b   :  { %6347 = vmatpush3.msra.mxu0 %v1167_v40 }
 0x48c   :  { %6349 = vmatmul.mubr.msk.f32.vlgmr.msra.gmra.mxu0 %vm133_vm0, %v1134_v41 }
 0x48d   :  { %6355 = vmatprep.mubr.msk.f32.mxu0 %vm1306_vm11, %v5674_v2 }
 0x54c   :  { %v6350_v43 = vpop.f32.mrf.mxu0 }
 0x54d   :  { %v1261_v44 = vadd.f32 %v6350_v43, %v1181_v42  ;;  %v7468_v42 = vld [vmem:[%s8399_s16 + $0x30] sm:$0xff] }
 0x54e   :  { %v1255_v46 = vpop.f32.mrf.mxu0 }
 0x54f   :  { %v1267_v47 = vmul.f32 0.044715, %v1261_v44  ;;  %v1256_v48 = vadd.f32 %v1255_v46, %v1176_v45  ;;  %v1265_v54 = vmul.f32 0.5, %v1261_v44  ;;  %v7478_v46 = vld [vmem:[%s8399_s16 + $0x58] sm:$0xff] }
 0x551   :  { %v1269_v49 = vmul.f32 %v1267_v47, %v1261_v44  ;;  %v1266_v50 = vmul.f32 0.044715, %v1256_v48  ;;  %v1264_v15 = vmul.f32 0.5, %v1256_v48 }
 0x553   :  { %v1271_v51 = vmul.f32 %v1269_v49, %v1261_v44  ;;  %v1268_v53 = vmul.f32 %v1266_v50, %v1256_v48  ;;  %v7486_v49 = vld [vmem:[%s8399_s16 + $0x50] sm:$0xff] }
 0x555   :  { %v1273_v56 = vadd.f32 %v1271_v51, %v1261_v44  ;;  %v1270_v1 = vmul.f32 %v1268_v53, %v1256_v48  ;;  %v5683_v44 = vld [vmem:[%s8391_s8 + $0x28] sm:$0xff]  ;;  %v5689_v51 = vld [vmem:[%s8391_s8 + $0x38] sm:$0xff]  ;;  %v5692_v53 = vld [vmem:[%s8391_s8 + $0x40] sm:$0xff] }
 0x557   :  { %v1275_v3 = vmul.f32 0.7978846, %v1273_v56  ;;  %v1272_v8 = vadd.f32 %v1270_v1, %v1256_v48  ;;  %v7500_v1 = vld [vmem:[%s8399_s16 + $0x68] sm:$0xff] }
 0x559   :  { %6776 = vtanh.f32 %v1275_v3  ;;  %v1274_v10 = vmul.f32 0.7978846, %v1272_v8  ;;  %v5693_v3 = vld [vmem:[%s8391_s8 + $0x48] sm:$0xff] }
 0x55b   :  { %6778 = vtanh.f32 %v1274_v10  ;;  %v5698_v10 = vld [vmem:[%s8391_s8 + $0x50] sm:$0xff] }
 0x566   :  { %v6777_v12 = vpop.eup %6776 }
 0x567   :  { %v1279_v11 = vadd.f32 1.0, %v6777_v12  ;;  %v7514_v12 = vld [vmem:[%s8399_s16 + $0x60] sm:$0xff] }
 0x568   :  { %v6779_v4 = vpop.eup %6778 }
 0x569   :  { %v7363_v14 = vmul.f32 %v1279_v11, %v1265_v54  ;;  %v1278_v13 = vadd.f32 1.0, %v6779_v4  ;;  %v5699_v11 = vld [vmem:[%s8391_s8 + $0x58] sm:$0xff] }
 0x56b   :  { %v7365_v16 = vmul.f32 %v1278_v13, %v1264_v15  ;;  %1296 = vrot.lane.b32.xlu0 %v7363_v14, %s6916_s2  ;;  %v5704_v15 = vld [vmem:[%s8391_s8 + $0x60] sm:$0xff] }
 0x56d   :  { %1294 = vrot.lane.b32.xlu1 %v7365_v16, %s6916_s2 }
 0x56f   :  { %1286 = vrot.lane.b32.xlu0 %v7363_v14, %s6919_s27 }
 0x571   :  { %1284 = vrot.lane.b32.xlu1 %v7365_v16, %s6919_s27 }
 0x573   :  { %1471 = vrot.lane.b32.xlu0 %v7363_v14, %s6920_s1 }
 0x575   :  { %1469 = vrot.lane.b32.xlu1 %v7365_v16, %s6920_s1 }
 0x577   :  { %1566 = vrot.lane.b32.xlu0 %v7363_v14, %s6921_s28 }
 0x579   :  { %1564 = vrot.lane.b32.xlu1 %v7365_v16, %s6921_s28 }
 0x57b   :  { %1747 = vrot.lane.b32.xlu0 %v7363_v14, %s6922_s0 }
 0x57d   :  { %1745 = vrot.lane.b32.xlu1 %v7365_v16, %s6922_s0 }
 0x57f   :  { %1842 = vrot.lane.b32.xlu0 %v7363_v14, %s6923_s6 }
 0x581   :  { %1840 = vrot.lane.b32.xlu1 %v7365_v16, %s6923_s6 }
 0x583   :  { %1937 = vrot.lane.b32.xlu0 %v7363_v14, %s6924_s14 }
 0x585   :  { %1935 = vrot.lane.b32.xlu1 %v7365_v16, %s6924_s14 }
 0x587   :  { %2032 = vrot.lane.b32.xlu0 %v7363_v14, %s6925_s29 }
 0x589   :  { %2030 = vrot.lane.b32.xlu1 %v7365_v16, %s6925_s29 }
 0x58b   :  { %2132 = vperm.xlu0 %6758, %v1283_v6   ;;  %v7538_v6 = vld [vmem:[%s8399_s16 + $0x70] sm:$0xff] }
 0x58d   :  { %2127 = vperm.xlu1 %6759, %v1282_v18   ;;  %v5705_v18 = vld [vmem:[%s8391_s8 + $0x68] sm:$0xff] }
 0x5dd   :  { %v1297_v19 = vpop.permute.xlu0 %1296 }
 0x5de   :  { %v1302_v21 = vmul.f32 %v7412_v5, %v1297_v19 }
 0x5df   :  { %v1295_v22 = vpop.permute.xlu1 %1294 }
 0x5e0   :  { %v1301_v24 = vmul.f32 %v7417_v20, %v1295_v22  ;;  %6351 = vmatprep.subr.mxu0 %v1302_v21 }
 0x5e1   :  { %6352 = vmatpush3.msra.mxu0 %v1302_v21  ;;  %v1287_v25 = vpop.permute.xlu0 %1286  ;;  %v5716_v21 = vld [vmem:[%s8391_s8 + $0x80] sm:$0xff] }
 0x5e2   :  { %v1291_v28 = vmul.f32 %v7423_v23, %v1287_v25  ;;  %6353 = vmatprep.subr.mxu0 %v1301_v24 }
 0x5e3   :  { %6354 = vmatpush3.msra.mxu0 %v1301_v24  ;;  %v1285_v30 = vpop.permute.xlu1 %1284  ;;  %v7552_v24 = vld [vmem:[%s8399_s16 + $0x88] sm:$0xff] }
 0x5e4   :  { %v1290_v32 = vmul.f32 %v7429_v26, %v1285_v30  ;;  %6358 = vmatprep.subr.mxu0 %v1291_v28  ;;  %6356 = vmatmul.mubr.msk.f32.vlgmr.msra.gmra.mxu0 %vm1306_vm11, %v5675_v27 }
 0x5e5   :  { %v1472_v33 = vpop.permute.xlu0 %1471  ;;  %6359 = vmatpush3.msra.mxu0 %v1291_v28  ;;  %6362 = vmatprep.mubr.msk.f32.mxu0 %vm1306_vm11, %v1292_v29  ;;  %v7560_v28 = vld [vmem:[%s8399_s16 + $0x80] sm:$0xff]  ;;  %v5711_v29 = vld [vmem:[%s8391_s8 + $0x78] sm:$0xff] }
 0x5e6   :  { %v1477_v36 = vmul.f32 %v7441_v31, %v1472_v33  ;;  %6360 = vmatprep.subr.mxu0 %v1290_v32 }
 0x5e7   :  { %6361 = vmatpush3.msra.mxu0 %v1290_v32  ;;  %v1470_v38 = vpop.permute.xlu1 %1469 }
 0x5e8   :  { %v1476_v40 = vmul.f32 %v7448_v34, %v1470_v38  ;;  %6365 = vmatprep.subr.mxu1 %v1477_v36  ;;  %6363 = vmatmul.mubr.msk.f32.vlgmr.msra.gmra.mxu0 %vm1306_vm11, %v1293_v35  ;;  %v5717_v35 = vld [vmem:[%s8391_s8 + $0x88] sm:$0xff] }
 0x5e9   :  { %6366 = vmatpush3.msra.mxu1 %v1477_v36  ;;  %v1567_v41 = vpop.permute.xlu0 %1566  ;;  %6376 = vmatprep.mubr.msk.f32.mxu0 %vm1306_vm11, %v5688_v37 }
 0x5ea   :  { %v1572_v43 = vmul.f32 %v7461_v39, %v1567_v41  ;;  %6367 = vmatprep.subr.mxu1 %v1476_v40 }
 0x5eb   :  { %6368 = vmatpush3.msra.mxu1 %v1476_v40  ;;  %v1565_v45 = vpop.permute.xlu1 %1564 }
 0x5ec   :  { %v1571_v47 = vmul.f32 %v7468_v42, %v1565_v45  ;;  %6372 = vmatprep.subr.mxu0 %v1572_v43  ;;  %6379 = vmatprep.subr.mxu1 %v7363_v14 }
 0x5ed   :  { %v1748_v48 = vpop.permute.xlu0 %1747  ;;  %6370 = vmatmul.mubr.msk.f32.vlgmr.msra.gmra.mxu1 %vm1306_vm11, %v5683_v44  ;;  %6373 = vmatpush3.msra.mxu0 %v1572_v43 }
 0x5ee   :  { %v1753_v50 = vmul.f32 %v7478_v46, %v1748_v48  ;;  %6380 = vmatpush3.msra.mxu1 %v7363_v14  ;;  %6374 = vmatprep.subr.mxu0 %v1571_v47  ;;  %v7525_v14 = vld [vmem:[%s8399_s16 + $0x78] sm:$0xff] }
 0x5ef   :  { %6381 = vmatprep.subr.mxu1 %v7365_v16  ;;  %6375 = vmatpush3.msra.mxu0 %v1571_v47  ;;  %v1746_v56 = vpop.permute.xlu1 %1745 }
 0x5f0   :  { %6382 = vmatpush3.msra.mxu1 %v7365_v16  ;;  %v1752_v8 = vmul.f32 %v7486_v49, %v1746_v56  ;;  %6386 = vmatprep.subr.mxu0 %v1753_v50  ;;  %v5710_v16 = vld [vmem:[%s8391_s8 + $0x70] sm:$0xff] }
 0x5f1   :  { %v1843_v2 = vpop.permute.xlu0 %1842  ;;  %6377 = vmatmul.mubr.msk.f32.vlgmr.msra.gmra.mxu0 %vm1306_vm11, %v5689_v51  ;;  %6383 = vmatprep.mubr.msk.f32.mxu1 %vm1306_vm11, %v5692_v53 }
 0x5f2   :  { %v1848_v54 = vmul.f32 %v7500_v1, %v1843_v2  ;;  %6387 = vmatpush3.msra.mxu0 %v1753_v50  ;;  %6384 = vmatmul.mubr.msk.f32.vlgmr.msra.gmra.mxu1 %vm1306_vm11, %v5693_v3 }
 0x5f3   :  { %6388 = vmatprep.subr.mxu0 %v1752_v8  ;;  %v1841_v4 = vpop.permute.xlu1 %1840  ;;  %6390 = vmatprep.mubr.msk.f32.mxu0 %vm1306_vm11, %v5698_v10 }
 0x5f4   :  { %6389 = vmatpush3.msra.mxu0 %v1752_v8  ;;  %v1847_v13 = vmul.f32 %v7514_v12, %v1841_v4  ;;  %6393 = vmatprep.subr.mxu1 %v1848_v54 }
 0x5f5   :  { %v1938_v17 = vpop.permute.xlu0 %1937  ;;  %6394 = vmatpush3.msra.mxu1 %v1848_v54  ;;  %6391 = vmatmul.mubr.msk.f32.vlgmr.msra.gmra.mxu0 %vm1306_vm11, %v5699_v11 }
 0x5f6   :  { %v1943_v19 = vmul.f32 %v7525_v14, %v1938_v17  ;;  %6395 = vmatprep.subr.mxu1 %v1847_v13  ;;  %6397 = vmatprep.mubr.msk.f32.mxu1 %vm1306_vm11, %v5704_v15 }
 0x5f7   :  { %6396 = vmatpush3.msra.mxu1 %v1847_v13  ;;  %v1936_v22 = vpop.permute.xlu1 %1935  ;;  %6404 = vmatprep.mubr.msk.f32.mxu0 %vm1306_vm11, %v5710_v16 }
 0x5f8   :  { %v1942_v25 = vmul.f32 %v7538_v6, %v1936_v22  ;;  %6400 = vmatprep.subr.mxu0 %v1943_v19  ;;  %6398 = vmatmul.mubr.msk.f32.vlgmr.msra.gmra.mxu1 %vm1306_vm11, %v5705_v18 }
 0x5f9   :  { %v2033_v27 = vpop.permute.xlu0 %2032  ;;  %6401 = vmatpush3.msra.mxu0 %v1943_v19  ;;  %6411 = vmatprep.mubr.msk.f32.mxu1 %vm1306_vm11, %v5716_v21 }
 0x5fa   :  { %v2038_v30 = vmul.f32 %v7552_v24, %v2033_v27  ;;  %6402 = vmatprep.subr.mxu0 %v1942_v25 }
 0x5fb   :  { %6403 = vmatpush3.msra.mxu0 %v1942_v25  ;;  %v2031_v32 = vpop.permute.xlu1 %2030 }
 0x5fc   :  { %v2037_v33 = vmul.f32 %v7560_v28, %v2031_v32  ;;  %6407 = vmatprep.subr.mxu1 %v2038_v30  ;;  %6405 = vmatmul.mubr.msk.f32.vlgmr.msra.gmra.mxu0 %vm1306_vm11, %v5711_v29 }
 0x5fd   :  { %6408 = vmatpush3.msra.mxu1 %v2038_v30 }
 0x5fe   :  { %6409 = vmatprep.subr.mxu1 %v2037_v33 }
 0x5ff   :  { %6410 = vmatpush3.msra.mxu1 %v2037_v33 }
 0x600   :  { %6412 = vmatmul.mubr.msk.f32.vlgmr.msra.gmra.mxu1 %vm1306_vm11, %v5717_v35 }
 0x606   :  { %v2133_v30 = vpop.permute.xlu0 %2132 }
 0x6a4   :  { %v6357_v36 = vpop.f32.mrf.mxu0 }
 0x6a6   :  { %v1379_v37 = vpop.f32.mrf.mxu0 }
 0x6a8   :  { %v6364_v38 = vpop.f32.mrf.mxu0 }
 0x6a9   :  { %v1466_v40 = vadd.f32 %v6364_v38, %v6357_v36  ;;  %v2128_v36 = vpop.permute.xlu1 %2127 }
 0x6aa   :  { %v1460_v41 = vpop.f32.mrf.mxu0 }
 0x6ab   :  { %v1461_v43 = vadd.f32 %v1460_v41, %v1379_v37 }
 0x6ad   :  { %v6371_v44 = vpop.f32.mrf.mxu1 }
 0x6ae   :  { %v1563_v45 = vadd.f32 %v6371_v44, %v1466_v40 }
 0x6af   :  { %v1553_v47 = vpop.f32.mrf.mxu1 }
 0x6b0   :  { %v1562_v48 = vadd.f32 %v1553_v47, %v1461_v43 }
 0x6b1   :  { %v6378_v50 = vpop.f32.mrf.mxu0 }
 0x6b2   :  { %v1658_v51 = vadd.f32 %v6378_v50, %v1563_v45  ;;  %v6385_v53 = vpop.f32.mrf.mxu1 }
 0x6b3   :  { %v1648_v56 = vpop.f32.mrf.mxu0 }
 0x6b4   :  { %v1657_v3 = vadd.f32 %v1648_v56, %v1562_v48  ;;  %v1744_v8 = vadd.f32 %v6385_v53, %v1658_v51  ;;  %v1734_v10 = vpop.f32.mrf.mxu1  ;;  %v2163_v56 = vld [vmem:[%s8393_s10] sm:$0xff] }
 0x6b5   :  { %v6392_v2 = vpop.f32.mrf.mxu0  ;;  %6425 = vmatprep.mubr.msk.f32.mxu1 %vm1306_vm11, %v2163_v56 }
 0x6b6   :  { %v1743_v11 = vadd.f32 %v1734_v10, %v1657_v3  ;;  %v1839_v4 = vadd.f32 %v6392_v2, %v1744_v8 }
 0x6b7   :  { %v1829_v15 = vpop.f32.mrf.mxu0 }
 0x6b8   :  { %v6399_v54 = vpop.f32.mrf.mxu1  ;;  %v1838_v17 = vadd.f32 %v1829_v15, %v1743_v11  ;;  %v5720_v15 = vld [vmem:[%s8393_s10 + $0x10] sm:$0xff] }
 0x6b9   :  { %v1934_v18 = vadd.f32 %v6399_v54, %v1839_v4  ;;  %6418 = vmatprep.mubr.msk.f32.mxu0 %vm1306_vm11, %v5720_v15  ;;  %v5727_v15 = vld [vmem:[%s8393_s10 + $0x28] sm:$0xff] }
 0x6ba   :  { %v1924_v13 = vpop.f32.mrf.mxu1 }
 0x6bb   :  { %v1933_v21 = vadd.f32 %v1924_v13, %v1838_v17  ;;  %v2155_v13 = vld [vmem:[%s8394_s11] sm:$0xff]  ;;  %v3009_v17 = vld [vmem:[%s8396_s13 + $0x8] sm:$0xff] }
 0x6bc   :  { %v6406_v16 = vpop.f32.mrf.mxu0 }
 0x6bd   :  { %v2029_v22 = vadd.f32 %v6406_v16, %v1934_v18  ;;  %v2156_v16 = vld [vmem:[%s8394_s11 + $0x8] sm:$0xff]  ;;  %v3008_v18 = vld [vmem:[%s8396_s13] sm:$0xff] }
 0x6be   :  { %v2019_v19 = vpop.f32.mrf.mxu0 }
 0x6bf   :  { %v2028_v27 = vadd.f32 %v2019_v19, %v1933_v21  ;;  %v3011_v19 = vld [vmem:[%s8396_s13 + $0x18] sm:$0xff]  ;;  %v3010_v21 = vld [vmem:[%s8396_s13 + $0x10] sm:$0xff] }
 0x6c0   :  { %v6413_v25 = vpop.f32.mrf.mxu1 }
 0x6c1   :  { %v2124_v29 = vadd.f32 %v6413_v25, %v2029_v22  ;;  %v407_v22 = vld [vmem:[%s8388_s5 + $0x48] sm:$0xff]  ;;  %v406_v25 = vld [vmem:[%s8388_s5 + $0x40] sm:$0xff] }
 0x6c2   :  { %v2114_v32 = vpop.f32.mrf.mxu1 }
 0x6c3   :  { %v2136_v33 = vadd.f32 %v2133_v30, %v2124_v29  ;;  %v2123_v35 = vadd.f32 %v2114_v32, %v2028_v27  ;;  %v409_v27 = vld [vmem:[%s8388_s5 + $0x58] sm:$0xff]  ;;  %v408_v29 = vld [vmem:[%s8388_s5 + $0x50] sm:$0xff]  ;;  %v411_v30 = vld [vmem:[%s8388_s5 + $0x68] sm:$0xff] }
 0x6c4   :  { %v410_v32 = vld [vmem:[%s8388_s5 + $0x60] sm:$0xff] }
 0x6c5   :  { %v2140_v37 = vmul.f32 0.044715, %v2136_v33  ;;  %v2135_v38 = vadd.f32 %v2128_v36, %v2123_v35  ;;  %v2138_v3 = vmul.f32 0.5, %v2136_v33  ;;  %v412_v35 = vld [vmem:[%s8388_s5 + $0x70] sm:$0xff] }
 0x6c6   :  { %v5772_v36 = vld [vmem:[%s8390_s7 + $0x10] sm:$0xff] }
 0x6c7   :  { %v2142_v40 = vmul.f32 %v2140_v37, %v2136_v33  ;;  %v2139_v41 = vmul.f32 0.044715, %v2135_v38  ;;  %v2137_v11 = vmul.f32 0.5, %v2135_v38  ;;  %v5773_v37 = vld [vmem:[%s8390_s7 + $0x18] sm:$0xff] }
 0x6c9   :  { %v2144_v43 = vmul.f32 %v2142_v40, %v2136_v33  ;;  %v2141_v44 = vmul.f32 %v2139_v41, %v2135_v38 }
 0x6cb   :  { %v2146_v45 = vadd.f32 %v2144_v43, %v2136_v33  ;;  %v2143_v47 = vmul.f32 %v2141_v44, %v2135_v38  ;;  %v413_v33 = vld [vmem:[%s8388_s5 + $0x78] sm:$0xff] }
 0x6cd   :  { %v2148_v48 = vmul.f32 0.7978846, %v2146_v45  ;;  %v2145_v50 = vadd.f32 %v2143_v47, %v2135_v38 }
 0x6cf   :  { %6780 = vtanh.f32 %v2148_v48  ;;  %v2147_v51 = vmul.f32 0.7978846, %v2145_v50  ;;  %v2164_v48 = vld [vmem:[%s8393_s10 + $0x8] sm:$0xff]  ;;  %v5730_v50 = vld [vmem:[%s8393_s10 + $0x30] sm:$0xff] }
 0x6d1   :  { %6782 = vtanh.f32 %v2147_v51 }
 0x6dc   :  { %v6781_v53 = vpop.eup %6780 }
 0x6dd   :  { %v2152_v8 = vadd.f32 1.0, %v6781_v53 }
 0x6de   :  { %v6783_v10 = vpop.eup %6782 }
 0x6df   :  { %v7577_v2 = vmul.f32 %v2152_v8, %v2138_v3  ;;  %v2151_v54 = vadd.f32 1.0, %v6783_v10  ;;  %v5721_v8 = vld [vmem:[%s8393_s10 + $0x18] sm:$0xff] }
 0x6e1   :  { %2159 = vrot.lane.b32.xlu1 %v7577_v2, %s6919_s27  ;;  %2167 = vrot.lane.b32.xlu0 %v7577_v2, %s6916_s2  ;;  %v7583_v4 = vmul.f32 %v2151_v54, %v2137_v11 }
 0x6e5   :  { %2338 = vrot.lane.b32.xlu0 %v7577_v2, %s6920_s1  ;;  %2157 = vrot.lane.b32.xlu1 %v7583_v4, %s6919_s27 }
 0x6e9   :  { %2430 = vrot.lane.b32.xlu0 %v7577_v2, %s6921_s28  ;;  %2336 = vrot.lane.b32.xlu1 %v7583_v4, %s6920_s1 }
 0x6ed   :  { %2428 = vrot.lane.b32.xlu1 %v7583_v4, %s6921_s28  ;;  %2165 = vrot.lane.b32.xlu0 %v7583_v4, %s6916_s2 }
 0x6f1   :  { %2606 = vrot.lane.b32.xlu1 %v7583_v4, %s6922_s0  ;;  %2608 = vrot.lane.b32.xlu0 %v7577_v2, %s6922_s0 }
 0x6f5   :  { %2698 = vrot.lane.b32.xlu1 %v7583_v4, %s6923_s6  ;;  %2700 = vrot.lane.b32.xlu0 %v7577_v2, %s6923_s6 }
 0x6f9   :  { %2790 = vrot.lane.b32.xlu1 %v7583_v4, %s6924_s14  ;;  %2792 = vrot.lane.b32.xlu0 %v7577_v2, %s6924_s14 }
 0x6fd   :  { %2882 = vrot.lane.b32.xlu1 %v7583_v4, %s6925_s29  ;;  %2884 = vrot.lane.b32.xlu0 %v7577_v2, %s6925_s29 }
 0x701   :  { %2976 = vperm.xlu1 %6759, %v2155_v13   ;;  %2981 = vperm.xlu0 %6758, %v2156_v16   ;;  %v5734_v16 = vld [vmem:[%s8393_s10 + $0x40] sm:$0xff] }
 0x705   :  { %3019 = vperm.xlu1 %6759, %v3009_v17   ;;  %3014 = vperm.xlu0 %6758, %v3008_v18   ;;  %v5738_v17 = vld [vmem:[%s8393_s10 + $0x50] sm:$0xff] }
 0x709   :  { %3029 = vperm.xlu1 %6759, %v3011_v19   ;;  %3024 = vperm.xlu0 %6758, %v3010_v21  }
 0x70d   :  { %461 = vperm.xlu1 %6759, %v407_v22   ;;  %456 = vperm.xlu0 %6758, %v406_v25  }
 0x711   :  { %471 = vperm.xlu1 %6759, %v409_v27   ;;  %466 = vperm.xlu0 %6758, %v408_v29   ;;  %v5743_v27 = vld [vmem:[%s8393_s10 + $0x68] sm:$0xff] }
 0x715   :  { %481 = vperm.xlu1 %6759, %v411_v30   ;;  %476 = vperm.xlu0 %6758, %v410_v32   ;;  %v5746_v30 = vld [vmem:[%s8393_s10 + $0x70] sm:$0xff] }
 0x719   :  { %491 = vperm.xlu1 %6759, %v413_v33   ;;  %486 = vperm.xlu0 %6758, %v412_v35   ;;  %v5751_v33 = vld [vmem:[%s8393_s10 + $0x88] sm:$0xff]  ;;  %v7759_v35 = vld [vmem:[%s8400_s17 + $0x70] sm:$0xff] }
 0x71d   :  { %3597 = vperm.xlu1 %6759, %v5772_v36   ;;  %3602 = vperm.xlu0 %6758, %v5773_v37   ;;  %v7766_v36 = vld [vmem:[%s8400_s17 + $0x68] sm:$0xff]  ;;  %v7773_v37 = vld [vmem:[%s8400_s17 + $0x60] sm:$0xff] }
 0x753   :  { %v2168_v38 = vpop.permute.xlu0 %2167  ;;  %v2160_v40 = vpop.permute.xlu1 %2159 }
 0x754   :  { %v2170_v41 = vmul.f32 %v7412_v5, %v2168_v38  ;;  %v2162_v43 = vmul.f32 %v2160_v40, %v7423_v23  ;;  %v7780_v38 = vld [vmem:[%s8400_s17 + $0x58] sm:$0xff]  ;;  %v7787_v40 = vld [vmem:[%s8400_s17 + $0x50] sm:$0xff] }
 0x756   :  { %6414 = vmatprep.subr.mxu0 %v2170_v41  ;;  %6421 = vmatprep.subr.mxu1 %v2162_v43 }
 0x757   :  { %6415 = vmatpush3.msra.mxu0 %v2170_v41  ;;  %v2339_v44 = vpop.permute.xlu0 %2338  ;;  %6422 = vmatpush3.msra.mxu1 %v2162_v43  ;;  %v2158_v45 = vpop.permute.xlu1 %2157  ;;  %v7794_v41 = vld [vmem:[%s8400_s17 + $0x48] sm:$0xff]  ;;  %v7801_v43 = vld [vmem:[%s8400_s17 + $0x40] sm:$0xff] }
 0x758   :  { %v2161_v47 = vmul.f32 %v2158_v45, %v7429_v26  ;;  %v2341_v10 = vmul.f32 %v7441_v31, %v2339_v44  ;;  %v5726_v31 = vld [vmem:[%s8393_s10 + $0x20] sm:$0xff]  ;;  %v7808_v44 = vld [vmem:[%s8400_s17 + $0x38] sm:$0xff]  ;;  %v7815_v45 = vld [vmem:[%s8400_s17 + $0x30] sm:$0xff] }
 0x75a   :  { %6423 = vmatprep.subr.mxu1 %v2161_v47 }
 0x75b   :  { %v2431_v5 = vpop.permute.xlu0 %2430  ;;  %6424 = vmatpush3.msra.mxu1 %v2161_v47  ;;  %v2337_v23 = vpop.permute.xlu1 %2336  ;;  %v7822_v47 = vld [vmem:[%s8400_s17 + $0x28] sm:$0xff] }
 0x75c   :  { %v2433_v51 = vmul.f32 %v7461_v39, %v2431_v5  ;;  %6426 = vmatmul.mubr.msk.f32.vlgmr.msra.gmra.mxu1 %vm1306_vm11, %v2164_v48  ;;  %v5731_v39 = vld [vmem:[%s8393_s10 + $0x38] sm:$0xff]  ;;  %v7829_v48 = vld [vmem:[%s8400_s17 + $0x20] sm:$0xff]  ;;  %v7843_v5 = vld [vmem:[%s8400_s17 + $0x10] sm:$0xff] }
 0x75d   :  { %6439 = vmatprep.mubr.msk.f32.mxu1 %vm1306_vm11, %v5730_v50  ;;  %v7836_v50 = vld [vmem:[%s8400_s17 + $0x18] sm:$0xff] }
 0x75e   :  { %6435 = vmatprep.subr.mxu1 %v2433_v51 }
 0x75f   :  { %v2166_v26 = vpop.permute.xlu0 %2165  ;;  %6436 = vmatpush3.msra.mxu1 %v2433_v51  ;;  %v2429_v53 = vpop.permute.xlu1 %2428  ;;  %v7857_v51 = vld [vmem:[%s8400_s17] sm:$0xff] }
 0x760   :  { %v2169_v56 = vmul.f32 %v7417_v20, %v2166_v26  ;;  %v2432_v3 = vmul.f32 %v7468_v42, %v2429_v53  ;;  %v2340_v20 = vmul.f32 %v7448_v34, %v2337_v23  ;;  %v7850_v23 = vld [vmem:[%s8400_s17 + $0x8] sm:$0xff]  ;;  %v7864_v26 = vld [vmem:[%s8401_s18] sm:$0x3] }
 0x761   :  { %v2986_v53 = vld [vmem:[%s8395_s12] sm:$0xff] }
 0x762   :  { %6416 = vmatprep.subr.mxu0 %v2169_v56  ;;  %6437 = vmatprep.subr.mxu1 %v2432_v3 }
 0x763   :  { %6417 = vmatpush3.msra.mxu0 %v2169_v56  ;;  %v2609_v54 = vpop.permute.xlu0 %2608  ;;  %6438 = vmatpush3.msra.mxu1 %v2432_v3  ;;  %v2607_v11 = vpop.permute.xlu1 %2606 }
 0x764   :  { %v2611_v42 = vmul.f32 %v7478_v46, %v2609_v54  ;;  %6428 = vmatprep.subr.mxu0 %v2341_v10  ;;  %6419 = vmatmul.mubr.msk.f32.vlgmr.msra.gmra.mxu0 %vm1306_vm11, %v5721_v8  ;;  %v2610_v34 = vmul.f32 %v7486_v49, %v2607_v11  ;;  %v5735_v49 = vld [vmem:[%s8393_s10 + $0x48] sm:$0xff] }
 0x765   :  { %6429 = vmatpush3.msra.mxu0 %v2341_v10  ;;  %6440 = vmatmul.mubr.msk.f32.vlgmr.msra.gmra.mxu1 %vm1306_vm11, %v5731_v39 }
 0x766   :  { %6430 = vmatprep.subr.mxu0 %v2340_v20  ;;  %6449 = vmatprep.subr.mxu1 %v2611_v42 }
 0x767   :  { %v2701_v13 = vpop.permute.xlu0 %2700  ;;  %6431 = vmatpush3.msra.mxu0 %v2340_v20  ;;  %6450 = vmatpush3.msra.mxu1 %v2611_v42  ;;  %v2699_v46 = vpop.permute.xlu1 %2698 }
 0x768   :  { %6432 = vmatprep.mubr.msk.f32.mxu0 %vm1306_vm11, %v5726_v31  ;;  %6442 = vmatprep.subr.mxu0 %v7577_v2  ;;  %v2703_v18 = vmul.f32 %v7500_v1, %v2701_v13  ;;  %v2702_v25 = vmul.f32 %v7514_v12, %v2699_v46  ;;  %v5742_v1 = vld [vmem:[%s8393_s10 + $0x60] sm:$0xff] }
 0x769   :  { %6451 = vmatprep.subr.mxu1 %v2610_v34  ;;  %6433 = vmatmul.mubr.msk.f32.vlgmr.msra.gmra.mxu0 %vm1306_vm11, %v5727_v15 }
 0x76a   :  { %6443 = vmatpush3.msra.mxu0 %v7577_v2  ;;  %6452 = vmatpush3.msra.mxu1 %v2610_v34  ;;  %v5739_v2 = vld [vmem:[%s8393_s10 + $0x58] sm:$0xff] }
 0x76b   :  { %6444 = vmatprep.subr.mxu0 %v7583_v4  ;;  %v2793_v19 = vpop.permute.xlu0 %2792  ;;  %v2791_v21 = vpop.permute.xlu1 %2790  ;;  %6446 = vmatprep.mubr.msk.f32.mxu0 %vm1306_vm11, %v5734_v16 }
 0x76c   :  { %v2795_v22 = vmul.f32 %v7525_v14, %v2793_v19  ;;  %6445 = vmatpush3.msra.mxu0 %v7583_v4  ;;  %6453 = vmatprep.mubr.msk.f32.mxu1 %vm1306_vm11, %v5738_v17  ;;  %v2794_v14 = vmul.f32 %v7538_v6, %v2791_v21  ;;  %v5747_v6 = vld [vmem:[%s8393_s10 + $0x78] sm:$0xff] }
 0x76d   :  { %6456 = vmatprep.subr.mxu0 %v2703_v18  ;;  %6447 = vmatmul.mubr.msk.f32.vlgmr.msra.gmra.mxu0 %vm1306_vm11, %v5735_v49 }
 0x76e   :  { %6457 = vmatpush3.msra.mxu0 %v2703_v18  ;;  %6463 = vmatprep.subr.mxu1 %v2795_v22 }
 0x76f   :  { %6458 = vmatprep.subr.mxu0 %v2702_v25  ;;  %v2885_v4 = vpop.permute.xlu0 %2884  ;;  %6454 = vmatmul.mubr.msk.f32.vlgmr.msra.gmra.mxu1 %vm1306_vm11, %v5739_v2  ;;  %v2883_v29 = vpop.permute.xlu1 %2882 }
 0x770   :  { %v2887_v12 = vmul.f32 %v7552_v24, %v2885_v4  ;;  %6459 = vmatpush3.msra.mxu0 %v2702_v25  ;;  %6464 = vmatpush3.msra.mxu1 %v2795_v22  ;;  %v5750_v24 = vld [vmem:[%s8393_s10 + $0x80] sm:$0xff]  ;;  %v2886_v32 = vmul.f32 %v7560_v28, %v2883_v29  ;;  %v7752_v28 = vld [vmem:[%s8400_s17 + $0x78] sm:$0xff] }
 0x771   :  { %6465 = vmatprep.subr.mxu1 %v2794_v14  ;;  %6460 = vmatprep.mubr.msk.f32.mxu0 %vm1306_vm11, %v5742_v1 }
 0x772   :  { %6466 = vmatpush3.msra.mxu1 %v2794_v14  ;;  %6461 = vmatmul.mubr.msk.f32.vlgmr.msra.gmra.mxu0 %vm1306_vm11, %v5743_v27 }
 0x773   :  { %6470 = vmatprep.subr.mxu0 %v2887_v12  ;;  %6467 = vmatprep.mubr.msk.f32.mxu1 %vm1306_vm11, %v5746_v30 }
 0x774   :  { %6471 = vmatpush3.msra.mxu0 %v2887_v12  ;;  %6468 = vmatmul.mubr.msk.f32.vlgmr.msra.gmra.mxu1 %vm1306_vm11, %v5747_v6 }
 0x775   :  { %6472 = vmatprep.subr.mxu0 %v2886_v32  ;;  %6474 = vmatprep.mubr.msk.f32.mxu0 %vm1306_vm11, %v5750_v24 }
 0x776   :  { %6473 = vmatpush3.msra.mxu0 %v2886_v32  ;;  %6481 = vmatprep.mubr.msk.f32.mxu1 %vm1306_vm11, %v2986_v53 }
 0x777   :  { %6475 = vmatmul.mubr.msk.f32.vlgmr.msra.gmra.mxu0 %vm1306_vm11, %v5751_v33  ;;  %6487 = vmatprep.subr.mxu0 %v7752_v28 }
 0x778   :  { %6488 = vmatpush3.msra.mxu0 %v7752_v28 }
 0x779   :  { %6489 = vmatprep.subr.mxu0 %v7759_v35 }
 0x77a   :  { %6490 = vmatpush3.msra.mxu0 %v7759_v35 }
 0x77b   :  { %6491 = vmatprep.subr.mxu0 %v7766_v36 }
 0x77c   :  { %6492 = vmatpush3.msra.mxu0 %v7766_v36  ;;  %v2982_v32 = vpop.permute.xlu0 %2981 }
 0x77d   :  { %6493 = vmatprep.subr.mxu0 %v7773_v37 }
 0x77e   :  { %6494 = vmatpush3.msra.mxu0 %v7773_v37 }
 0x77f   :  { %6495 = vmatprep.subr.mxu0 %v7780_v38 }
 0x780   :  { %6496 = vmatpush3.msra.mxu0 %v7780_v38 }
 0x781   :  { %6497 = vmatprep.subr.mxu0 %v7787_v40 }
 0x782   :  { %6498 = vmatpush3.msra.mxu0 %v7787_v40 }
 0x783   :  { %6499 = vmatprep.subr.mxu0 %v7794_v41 }
 0x784   :  { %6500 = vmatpush3.msra.mxu0 %v7794_v41 }
 0x785   :  { %6501 = vmatprep.subr.mxu0 %v7801_v43 }
 0x786   :  { %6502 = vmatpush3.msra.mxu0 %v7801_v43 }
 0x787   :  { %6503 = vmatprep.subr.mxu0 %v7808_v44 }
 0x788   :  { %6504 = vmatpush3.msra.mxu0 %v7808_v44 }
 0x789   :  { %6505 = vmatprep.subr.mxu0 %v7815_v45 }
 0x78a   :  { %6506 = vmatpush3.msra.mxu0 %v7815_v45 }
 0x78b   :  { %6507 = vmatprep.subr.mxu0 %v7822_v47 }
 0x78c   :  { %6508 = vmatpush3.msra.mxu0 %v7822_v47 }
 0x78d   :  { %6509 = vmatprep.subr.mxu0 %v7829_v48 }
 0x78e   :  { %6510 = vmatpush3.msra.mxu0 %v7829_v48 }
 0x78f   :  { %6511 = vmatprep.subr.mxu0 %v7836_v50 }
 0x790   :  { %6512 = vmatpush3.msra.mxu0 %v7836_v50 }
 0x791   :  { %6513 = vmatprep.subr.mxu0 %v7843_v5 }
 0x792   :  { %6514 = vmatpush3.msra.mxu0 %v7843_v5 }
 0x793   :  { %6515 = vmatprep.subr.mxu0 %v7850_v23 }
 0x794   :  { %6516 = vmatpush3.msra.mxu0 %v7850_v23 }
 0x795   :  { %6517 = vmatprep.subr.mxu0 %v7857_v51 }
 0x796   :  { %6518 = vmatpush3.msra.mxu0 %v7857_v51 }
 0x797   :  { %6571 = vmatprep.subr.msk.mxu0 %vm806_vm9, %v7864_v26 }
 0x81c   :  { %v6427_v56 = vpop.f32.mrf.mxu1 }
 0x81e   :  { %v2327_v8 = vpop.f32.mrf.mxu1 }
 0x824   :  { %v6420_v3 = vpop.f32.mrf.mxu0 }
 0x825   :  { %v2333_v39 = vadd.f32 %v6427_v56, %v6420_v3  ;;  %v6441_v54 = vpop.f32.mrf.mxu1  ;;  %v2977_v3 = vpop.permute.xlu1 %2976 }
 0x826   :  { %v2246_v10 = vpop.f32.mrf.mxu0 }
 0x827   :  { %v2328_v20 = vadd.f32 %v2327_v8, %v2246_v10  ;;  %v2509_v15 = vpop.f32.mrf.mxu1 }
 0x829   :  { %v6434_v11 = vpop.f32.mrf.mxu0 }
 0x82a   :  { %v2427_v42 = vadd.f32 %v6434_v11, %v2333_v39 }
 0x82b   :  { %v2417_v31 = vpop.f32.mrf.mxu0 }
 0x82c   :  { %v2426_v34 = vadd.f32 %v2417_v31, %v2328_v20  ;;  %v2519_v13 = vadd.f32 %v6441_v54, %v2427_v42 }
 0x82d   :  { %v6448_v46 = vpop.f32.mrf.mxu0 }
 0x82e   :  { %v2518_v16 = vadd.f32 %v2509_v15, %v2426_v34  ;;  %v2605_v17 = vadd.f32 %v6448_v46, %v2519_v13 }
 0x82f   :  { %v2595_v49 = vpop.f32.mrf.mxu0  ;;  %v6455_v18 = vpop.f32.mrf.mxu1 }
 0x830   :  { %v2604_v19 = vadd.f32 %v2595_v49, %v2518_v16  ;;  %v2697_v21 = vadd.f32 %v6455_v18, %v2605_v17 }
 0x831   :  { %v2687_v22 = vpop.f32.mrf.mxu1 }
 0x832   :  { %v2696_v2 = vadd.f32 %v2687_v22, %v2604_v19  ;;  %v6462_v25 = vpop.f32.mrf.mxu0 }
 0x833   :  { %v2789_v1 = vadd.f32 %v6462_v25, %v2697_v21  ;;  %v2988_v25 = vld [vmem:[%s8395_s12 + $0x10] sm:$0xff] }
 0x834   :  { %v2779_v14 = vpop.f32.mrf.mxu0  ;;  %v6469_v4 = vpop.f32.mrf.mxu1 }
 0x835   :  { %v2788_v27 = vadd.f32 %v2779_v14, %v2696_v2  ;;  %v2881_v12 = vadd.f32 %v6469_v4, %v2789_v1  ;;  %v2987_v2 = vld [vmem:[%s8395_s12 + $0x8] sm:$0xff]  ;;  %v2989_v1 = vld [vmem:[%s8395_s12 + $0x18] sm:$0xff]  ;;  %v3020_v14 = vpop.permute.xlu1 %3019  ;;  %v3015_v4 = vpop.permute.xlu0 %3014 }
 0x836   :  { %v2871_v29 = vpop.f32.mrf.mxu1 }
 0x837   :  { %v6476_v30 = vpop.f32.mrf.mxu0  ;;  %v2880_v6 = vadd.f32 %v2871_v29, %v2788_v27 }
 0x838   :  { %v2973_v24 = vadd.f32 %v6476_v30, %v2881_v12 }
 0x839   :  { %v2963_v33 = vpop.f32.mrf.mxu0 }
 0x83a   :  { %v2985_v53 = vadd.f32 %v2982_v32, %v2973_v24  ;;  %v2972_v56 = vadd.f32 %v2963_v33, %v2880_v6  ;;  %v3030_v24 = vpop.permute.xlu1 %3029  ;;  %v3025_v33 = vpop.permute.xlu0 %3024 }
 0x83c   :  { %v2993_v8 = vmul.f32 0.044715, %v2985_v53  ;;  %v2984_v10 = vadd.f32 %v2977_v3, %v2972_v56  ;;  %v2991_v16 = vmul.f32 0.5, %v2985_v53 }
 0x83e   :  { %v2992_v39 = vmul.f32 0.044715, %v2984_v10  ;;  %v2995_v54 = vmul.f32 %v2993_v8, %v2985_v53  ;;  %v2990_v19 = vmul.f32 0.5, %v2984_v10 }
 0x840   :  { %v2997_v11 = vmul.f32 %v2995_v54, %v2985_v53  ;;  %v2994_v20 = vmul.f32 %v2992_v39, %v2984_v10 }
 0x842   :  { %v2999_v42 = vadd.f32 %v2997_v11, %v2985_v53  ;;  %v2996_v31 = vmul.f32 %v2994_v20, %v2984_v10 }
 0x844   :  { %v3001_v15 = vmul.f32 0.7978846, %v2999_v42  ;;  %v2998_v34 = vadd.f32 %v2996_v31, %v2984_v10  ;;  %v457_v42 = vpop.permute.xlu0 %456  ;;  %v462_v31 = vpop.permute.xlu1 %461 }
 0x846   :  { %6784 = vtanh.f32 %v3001_v15  ;;  %v3000_v13 = vmul.f32 0.7978846, %v2998_v34 }
 0x848   :  { %6786 = vtanh.f32 %v3000_v13  ;;  %v467_v15 = vpop.permute.xlu0 %466  ;;  %v649_v13 = vadd.f32 %v7280_v58, %v457_v42 }
 0x853   :  { %v6785_v46 = vpop.eup %6784 }
 0x854   :  { %v3005_v17 = vadd.f32 1.0, %v6785_v46  ;;  %v472_v46 = vpop.permute.xlu1 %471 }
 0x855   :  { %v6787_v49 = vpop.eup %6786 }
 0x856   :  { %v3007_v18 = vmul.f32 %v3005_v17, %v2991_v16  ;;  %v3004_v21 = vadd.f32 1.0, %v6787_v49  ;;  %v654_v17 = vadd.f32 %v7278_v57, %v462_v31 }
 0x858   :  { %6477 = vmatprep.subr.mxu1 %v3007_v18  ;;  %v3006_v22 = vmul.f32 %v3004_v21, %v2990_v19 }
 0x859   :  { %6478 = vmatpush3.msra.mxu1 %v3007_v18  ;;  %v477_v18 = vpop.permute.xlu0 %476 }
 0x85a   :  { %6479 = vmatprep.subr.mxu1 %v3006_v22 }
 0x85b   :  { %6480 = vmatpush3.msra.mxu1 %v3006_v22  ;;  %v659_v22 = vadd.f32 %v7284_v60, %v467_v15 }
 0x85c   :  { %6482 = vmatmul.mubr.msk.f32.vlgmr.msra.gmra.mxu1 %vm1306_vm11, %v2987_v2  ;;  %6525 = vmatprep.subr.msk.mxu1 %vm806_vm9, %v7864_v26 }
 0x85d   :  { %6484 = vmatprep.mubr.msk.f32.mxu1 %vm1306_vm11, %v2988_v25  ;;  %6526 = vmatpush3.msk.msra.mxu1 %vm806_vm9, %v7864_v26  ;;  %v664_v25 = vadd.f32 %v7282_v59, %v472_v46  ;;  %v487_v57 = vpop.permute.xlu0 %486 }
 0x85e   :  { %6533 = vmatprep.subr.mxu1 %v7752_v28 }
 0x860   :  { %6485 = vmatmul.mubr.msk.f32.gmra.mxu1 %vm1306_vm11, %v2989_v1  ;;  %v482_v1 = vpop.permute.xlu1 %481 }
 0x861   :  { %v674_v60 = vadd.f32 %v7286_v61, %v482_v1 }
 0x91c   :  { %v6483_v27 = vpop.f32.mrf.mxu1 }
 0x91d   :  { %v3116_v12 = vadd.f32 %v6483_v27, %v3020_v14  ;;  %v679_v27 = vadd.f32 %v7292_v0, %v487_v57 }
 0x91e   :  { %v3110_v29 = vpop.f32.mrf.mxu1 }
 0x91f   :  { %v3111_v30 = vadd.f32 %v3110_v29, %v3015_v4  ;;  %v3130_v53 = vadd.f32 %v3116_v12, %v7328_v52  ;;  %v669_v4 = vadd.f32 %v7288_v62, %v477_v18  ;;  %v492_v12 = vpop.permute.xlu1 %491  ;;  %v3554_v62 = vld [vmem:[#allocation4 + $0x10] sm:$0xff] }
 0x920   :  { %v6486_v6 = vpop.f32.mrf.mxu1  ;;  %v684_v59 = vadd.f32 %v7290_v63, %v492_v12 }
 0x921   :  { %v3129_v32 = vadd.f32 %v3111_v30, %v7331_v55  ;;  %v3126_v56 = vadd.f32 %v6486_v6, %v3030_v24 }
 0x922   :  { %v3120_v3 = vpop.f32.mrf.mxu1 }
 0x923   :  { %v3121_v8 = vadd.f32 %v3120_v3, %v3025_v33  ;;  %6519 = vmatprep.mubr.f32.mxu0 %v3129_v32  ;;  %v3132_v39 = vadd.f32 %v3126_v56, %v7335_v9 }
 0x924   :  { %6520 = vmatmul.mubr.f32.vlgmr.msra.gmra.mxu0 %v3130_v53 }
 0x925   :  { %v3131_v10 = vadd.f32 %v3121_v8, %v7339_v7  ;;  %6572 = vmatpush3.msk.msra.mxu0 %vm806_vm9, %v7864_v26 }
 0x927   :  { %6522 = vmatprep.mubr.f32.mxu0 %v3131_v10 }
 0x928   :  { %6523 = vmatmul.mubr.f32.gmra.mxu0 %v3132_v39 }
 0x9e4   :  { %v6521_v54 = vpop.f32.mrf.mxu0 }
 0x9e6   :  { %v3199_v11 = vpop.f32.mrf.mxu0 }
 0x9e7   :  { %6527 = vmatprep.mubr.msk.f32.mxu1 %vm793_vm10, %v3199_v11 }
 0x9e8   :  { %v6524_v55 = vpop.f32.mrf.mxu0  ;;  %6528 = vmatmul.mubr.msk.f32.vlgmr.msra.gmra.mxu1 %vm793_vm10, %v6521_v54 }
 0x9e9   :  { %6534 = vmatpush3.msra.mxu1 %v7752_v28 }
 0x9ea   :  { %v3209_v52 = vpop.f32.mrf.mxu0  ;;  %6535 = vmatprep.subr.mxu1 %v7759_v35 }
 0x9eb   :  { %6530 = vmatprep.mubr.msk.f32.mxu1 %vm793_vm10, %v3209_v52  ;;  %6536 = vmatpush3.msra.mxu1 %v7759_v35 }
 0x9ec   :  { %6531 = vmatmul.mubr.msk.f32.gmra.mxu1 %vm793_vm10, %v6524_v55  ;;  %6537 = vmatprep.subr.mxu1 %v7766_v36 }
 0x9ed   :  { %6538 = vmatpush3.msra.mxu1 %v7766_v36 }
 0x9ee   :  { %6539 = vmatprep.subr.mxu1 %v7773_v37 }
 0x9ef   :  { %6540 = vmatpush3.msra.mxu1 %v7773_v37 }
 0x9f0   :  { %6541 = vmatprep.subr.mxu1 %v7780_v38 }
 0x9f1   :  { %6542 = vmatpush3.msra.mxu1 %v7780_v38 }
 0x9f2   :  { %6543 = vmatprep.subr.mxu1 %v7787_v40 }
 0x9f3   :  { %6544 = vmatpush3.msra.mxu1 %v7787_v40 }
 0x9f4   :  { %6545 = vmatprep.subr.mxu1 %v7794_v41 }
 0x9f5   :  { %6546 = vmatpush3.msra.mxu1 %v7794_v41 }
 0x9f6   :  { %6547 = vmatprep.subr.mxu1 %v7801_v43 }
 0x9f7   :  { %6548 = vmatpush3.msra.mxu1 %v7801_v43 }
 0x9f8   :  { %6549 = vmatprep.subr.mxu1 %v7808_v44 }
 0x9f9   :  { %6550 = vmatpush3.msra.mxu1 %v7808_v44 }
 0x9fa   :  { %6551 = vmatprep.subr.mxu1 %v7815_v45 }
 0x9fb   :  { %6552 = vmatpush3.msra.mxu1 %v7815_v45 }
 0x9fc   :  { %6553 = vmatprep.subr.mxu1 %v7822_v47 }
 0x9fd   :  { %6554 = vmatpush3.msra.mxu1 %v7822_v47 }
 0x9fe   :  { %6555 = vmatprep.subr.mxu1 %v7829_v48 }
 0x9ff   :  { %6556 = vmatpush3.msra.mxu1 %v7829_v48 }
 0xa00   :  { %6557 = vmatprep.subr.mxu1 %v7836_v50 }
 0xa01   :  { %6558 = vmatpush3.msra.mxu1 %v7836_v50 }
 0xa02   :  { %6559 = vmatprep.subr.mxu1 %v7843_v5 }
 0xa03   :  { %6560 = vmatpush3.msra.mxu1 %v7843_v5 }
 0xa04   :  { %6561 = vmatprep.subr.mxu1 %v7850_v23 }
 0xa05   :  { %6562 = vmatpush3.msra.mxu1 %v7850_v23 }
 0xa06   :  { %6563 = vmatprep.subr.mxu1 %v7857_v51 }
 0xa07   :  { %6564 = vmatpush3.msra.mxu1 %v7857_v51 }
 0xaa8   :  { %v6529_v9 = vpop.f32.mrf.mxu1 }
 0xaa9   :  { %v7930_v7 = vsub.f32 %v3130_v53, %v6529_v9 }
 0xaaa   :  { %v3296_v28 = vpop.f32.mrf.mxu1 }
 0xaab   :  { %v7932_v35 = vsub.f32 %v3129_v32, %v3296_v28  ;;  %v3320_v38 = vmul.f32 %v7930_v7, %v7930_v7 }
 0xaac   :  { %v6532_v36 = vpop.f32.mrf.mxu1 }
 0xaad   :  { %v3319_v37 = vmul.f32 %v7932_v35, %v7932_v35  ;;  %v7938_v40 = vsub.f32 %v3132_v39, %v6532_v36 }
 0xaae   :  { %v3306_v41 = vpop.f32.mrf.mxu1 }
 0xaaf   :  { %v7940_v43 = vsub.f32 %v3131_v10, %v3306_v41  ;;  %6565 = vmatprep.mubr.f32.mxu1 %v3319_v37  ;;  %v3322_v45 = vmul.f32 %v7938_v40, %v7938_v40 }
 0xab0   :  { %6566 = vmatmul.mubr.f32.vlgmr.msra.gmra.mxu1 %v3320_v38 }
 0xab1   :  { %v3321_v44 = vmul.f32 %v7940_v43, %v7940_v43 }
 0xab3   :  { %6568 = vmatprep.mubr.f32.mxu1 %v3321_v44 }
 0xab4   :  { %6569 = vmatmul.mubr.f32.gmra.mxu1 %v3322_v45 }
 0xab5   :  { %6593 = vmatprep.mubr.msk.f32.mxu1 %vm133_vm0, %v3554_v62 }
 0xb70   :  { %v6567_v47 = vpop.f32.mrf.mxu1 }
 0xb71   :  { %v3395_v48 = vadd.f32 1e-05, %v6567_v47 }
 0xb72   :  { %v3389_v50 = vpop.f32.mrf.mxu1 }
 0xb73   :  { %v3390_v5 = vadd.f32 1e-05, %v3389_v50  ;;  %6788 = vrsqrt.f32 %v3395_v48 }
 0xb74   :  { %v6570_v23 = vpop.f32.mrf.mxu1 }
 0xb75   :  { %6790 = vrsqrt.f32 %v3390_v5  ;;  %v3405_v51 = vadd.f32 1e-05, %v6570_v23 }
 0xb76   :  { %v3399_v26 = vpop.f32.mrf.mxu1 }
 0xb77   :  { %v3400_v20 = vadd.f32 1e-05, %v3399_v26  ;;  %6792 = vrsqrt.f32 %v3405_v51 }
 0xb79   :  { %6794 = vrsqrt.f32 %v3400_v20 }
 0xb80   :  { %v6789_v34 = vpop.eup %6788 }
 0xb81   :  { %v3413_v19 = vmul.f32 %v6789_v34, %v654_v17 }
 0xb82   :  { %v6791_v16 = vpop.eup %6790 }
 0xb83   :  { %v3412_v49 = vmul.f32 %v6791_v16, %v649_v13 }
 0xb84   :  { %v6793_v21 = vpop.eup %6792 }
 0xb85   :  { %6573 = vmatprep.mubr.msk.f32.mxu0 %vm793_vm10, %v3412_v49  ;;  %v3415_v58 = vmul.f32 %v6793_v21, %v664_v25  ;;  %v3603_v25 = vpop.permute.xlu0 %3602 }
 0xb86   :  { %v6795_v2 = vpop.eup %6794  ;;  %6574 = vmatmul.mubr.msk.f32.vlgmr.msra.gmra.mxu0 %vm793_vm10, %v3413_v19 }
 0xb87   :  { %v3414_v14 = vmul.f32 %v6795_v2, %v659_v22  ;;  %v3555_v2 = vld [vmem:[#allocation4 + $0x18] sm:$0xff] }
 0xb89   :  { %6576 = vmatprep.mubr.msk.f32.mxu0 %vm793_vm10, %v3414_v14 }
 0xb8a   :  { %6577 = vmatmul.mubr.msk.f32.gmra.mxu0 %vm793_vm10, %v3415_v58  ;;  %v3598_v58 = vpop.permute.xlu1 %3597 }
 0xb8b   :  { %6579 = vmatprep.mubr.msk.f32.mxu0 %vm793_vm10, %v669_v4 }
 0xb8e   :  { %6580 = vmatmul.mubr.msk.f32.gmra.mxu0 %vm793_vm10, %v674_v60 }
 0xb8f   :  { %6582 = vmatprep.mubr.msk.f32.mxu0 %vm793_vm10, %v679_v27 }
 0xb92   :  { %6583 = vmatmul.mubr.msk.f32.gmra.mxu0 %vm793_vm10, %v684_v59 }
 0xc46   :  { %v6575_v29 = vpop.f32.mrf.mxu0 }
 0xc47   :  { %v3546_v61 = vmul.f32 %v6575_v29, %v7930_v7 }
 0xc48   :  { %v3506_v30 = vpop.f32.mrf.mxu0 }
 0xc49   :  { %v3545_v0 = vmul.f32 %v3506_v30, %v7932_v35 }
 0xc4a   :  { %v6578_v6 = vpop.f32.mrf.mxu0 }
 0xc4b   :  { %v3548_v56 = vmul.f32 %v6578_v6, %v7938_v40 }
 0xc4c   :  { %v3516_v24 = vpop.f32.mrf.mxu0 }
 0xc4d   :  { %v3547_v10 = vmul.f32 %v3516_v24, %v7940_v43 }
 0xc4e   :  { %v6581_v32 = vpop.f32.mrf.mxu0 }
 0xc4f   :  { %v7965_v33 = vadd.f32 %v6581_v32, %v3546_v61 }
 0xc50   :  { %v3526_v53 = vpop.f32.mrf.mxu0 }
 0xc51   :  { %v7968_v63 = vadd.f32 %v3545_v0, %v3526_v53  ;;  %v3561_v3 = vmul.f32 0.044715, %v7965_v33  ;;  %v3557_v49 = vmul.f32 0.5, %v7965_v33  ;;  %v5778_v0 = vld [vmem:[%s8391_s8 + $0x90] sm:$0xff] }
 0xc52   :  { %v6584_v8 = vpop.f32.mrf.mxu0  ;;  %6607 = vmatprep.mubr.msk.f32.mxu0 %vm1306_vm11, %v5778_v0 }
 0xc53   :  { %v7972_v39 = vadd.f32 %v6584_v8, %v3548_v56  ;;  %v3565_v54 = vmul.f32 %v3561_v3, %v7965_v33  ;;  %v3560_v11 = vmul.f32 0.044715, %v7968_v63  ;;  %v3556_v21 = vmul.f32 0.5, %v7968_v63 }
 0xc54   :  { %v3536_v55 = vpop.f32.mrf.mxu0 }
 0xc55   :  { %v7976_v52 = vadd.f32 %v3547_v10, %v3536_v55  ;;  %v3563_v9 = vmul.f32 0.044715, %v7972_v39  ;;  %v3569_v7 = vmul.f32 %v3565_v54, %v7965_v33  ;;  %v3564_v28 = vmul.f32 %v3560_v11, %v7968_v63  ;;  %v5780_v55 = vld [vmem:[%s8391_s8 + $0xa0] sm:$0xff] }
 0xc56   :  { %v3559_v42 = vmul.f32 0.5, %v7972_v39 }
 0xc57   :  { %v3567_v35 = vmul.f32 %v3563_v9, %v7972_v39  ;;  %v3562_v36 = vmul.f32 0.044715, %v7976_v52  ;;  %v3573_v37 = vadd.f32 %v3569_v7, %v7965_v33  ;;  %v3568_v38 = vmul.f32 %v3564_v28, %v7968_v63  ;;  %v5776_v9 = vld [vmem:[%s8392_s9 + $0x10] sm:$0xff]  ;;  %v5777_v7 = vld [vmem:[%s8392_s9 + $0x18] sm:$0xff] }
 0xc58   :  { %v3558_v13 = vmul.f32 0.5, %v7976_v52 }
 0xc59   :  { %v3571_v40 = vmul.f32 %v3567_v35, %v7972_v39  ;;  %v3566_v41 = vmul.f32 %v3562_v36, %v7976_v52  ;;  %v3577_v43 = vmul.f32 0.7978846, %v3573_v37  ;;  %v3572_v44 = vadd.f32 %v3568_v38, %v7968_v63  ;;  %v8049_v36 = vld [vmem:[%s8399_s16 + $0x18] sm:$0xff]  ;;  %v8055_v38 = vld [vmem:[%s8399_s16 + $0x8] sm:$0xff] }
 0xc5b   :  { %v3575_v45 = vadd.f32 %v3571_v40, %v7972_v39  ;;  %v3570_v47 = vmul.f32 %v3566_v41, %v7976_v52  ;;  %v3576_v48 = vmul.f32 0.7978846, %v3572_v44  ;;  %6796 = vtanh.f32 %v3577_v43  ;;  %v8061_v44 = vld [vmem:[%s8399_s16] sm:$0xff] }
 0xc5d   :  { %v3579_v50 = vmul.f32 0.7978846, %v3575_v45  ;;  %v3574_v5 = vadd.f32 %v3570_v47, %v7976_v52  ;;  %v5779_v47 = vld [vmem:[%s8391_s8 + $0x98] sm:$0xff] }
 0xc5f   :  { %6798 = vtanh.f32 %v3579_v50  ;;  %v3578_v23 = vmul.f32 0.7978846, %v3574_v5 }
 0xc60   :  { %6800 = vtanh.f32 %v3576_v48  ;;  %v5790_v48 = vld [vmem:[%s8391_s8 + $0xc0] sm:$0xff] }
 0xc61   :  { %6802 = vtanh.f32 %v3578_v23  ;;  %v8073_v23 = vld [vmem:[%s8399_s16 + $0x38] sm:$0xff] }
 0xc68   :  { %v6797_v51 = vpop.eup %6796 }
 0xc69   :  { %v3585_v16 = vadd.f32 1.0, %v6797_v51 }
 0xc6b   :  { %v3589_v19 = vmul.f32 %v3585_v16, %v3557_v49 }
 0xc6c   :  { %v6799_v26 = vpop.eup %6798 }
 0xc6d   :  { %v6801_v20 = vpop.eup %6800  ;;  %v3587_v31 = vadd.f32 1.0, %v6799_v26 }
 0xc6e   :  { %v6803_v15 = vpop.eup %6802  ;;  %v3584_v18 = vadd.f32 1.0, %v6801_v20 }
 0xc6f   :  { %v3591_v34 = vmul.f32 %v3587_v31, %v3559_v42  ;;  %v3586_v46 = vadd.f32 1.0, %v6803_v15  ;;  %v8081_v42 = vld [vmem:[%s8399_s16 + $0x10] sm:$0xff] }
 0xc70   :  { %v3588_v22 = vmul.f32 %v3584_v18, %v3556_v21  ;;  %v8087_v15 = vld [vmem:[%s8399_s16 + $0x30] sm:$0xff] }
 0xc71   :  { %6585 = vmatprep.subr.mxu1 %v3591_v34  ;;  %v3590_v17 = vmul.f32 %v3586_v46, %v3558_v13  ;;  %v5781_v13 = vld [vmem:[%s8391_s8 + $0xa8] sm:$0xff] }
 0xc72   :  { %6586 = vmatpush3.msra.mxu1 %v3591_v34  ;;  %v8096_v46 = vld [vmem:[%s8399_s16 + $0x28] sm:$0xff] }
 0xc73   :  { %6587 = vmatprep.subr.mxu1 %v3590_v17 }
 0xc74   :  { %6588 = vmatpush3.msra.mxu1 %v3590_v17  ;;  %v5791_v17 = vld [vmem:[%s8391_s8 + $0xc8] sm:$0xff] }
 0xc75   :  { %6589 = vmatprep.subr.mxu1 %v3589_v19 }
 0xc76   :  { %6590 = vmatpush3.msra.mxu1 %v3589_v19  ;;  %v8105_v19 = vld [vmem:[%s8399_s16 + $0x20] sm:$0xff] }
 0xc77   :  { %6591 = vmatprep.subr.mxu1 %v3588_v22 }
 0xc78   :  { %6592 = vmatpush3.msra.mxu1 %v3588_v22  ;;  %v8111_v22 = vld [vmem:[%s8399_s16 + $0x58] sm:$0xff] }
 0xc79   :  { %6594 = vmatmul.mubr.msk.f32.vlgmr.msra.gmra.mxu1 %vm133_vm0, %v3555_v2 }
 0xc7a   :  { %6600 = vmatprep.mubr.msk.f32.mxu1 %vm1306_vm11, %v5780_v55 }
 0xd39   :  { %v6595_v1 = vpop.f32.mrf.mxu1 }
 0xd3a   :  { %v3683_v14 = vadd.f32 %v6595_v1, %v3603_v25  ;;  %v5786_v25 = vld [vmem:[%s8391_s8 + $0xb0] sm:$0xff]  ;;  %v5787_v1 = vld [vmem:[%s8391_s8 + $0xb8] sm:$0xff] }
 0xd3b   :  { %v3677_v4 = vpop.f32.mrf.mxu1 }
 0xd3c   :  { %v3689_v57 = vmul.f32 0.044715, %v3683_v14  ;;  %v3678_v60 = vadd.f32 %v3677_v4, %v3598_v58  ;;  %v3687_v53 = vmul.f32 0.5, %v3683_v14 }
 0xd3e   :  { %v3691_v27 = vmul.f32 %v3689_v57, %v3683_v14  ;;  %v3688_v12 = vmul.f32 0.044715, %v3678_v60  ;;  %v3686_v54 = vmul.f32 0.5, %v3678_v60 }
 0xd40   :  { %v3693_v59 = vmul.f32 %v3691_v27, %v3683_v14  ;;  %v3690_v62 = vmul.f32 %v3688_v12, %v3678_v60  ;;  %v5798_v27 = vld [vmem:[%s8391_s8 + $0xe0] sm:$0xff]  ;;  %v5795_v12 = vld [vmem:[%s8391_s8 + $0xd8] sm:$0xff] }
 0xd42   :  { %v3695_v29 = vadd.f32 %v3693_v59, %v3683_v14  ;;  %v3692_v30 = vmul.f32 %v3690_v62, %v3678_v60  ;;  %v8125_v14 = vld [vmem:[%s8399_s16 + $0x50] sm:$0xff]  ;;  %v8144_v59 = vld [vmem:[%s8399_s16 + $0x68] sm:$0xff] }
 0xd44   :  { %v3697_v6 = vmul.f32 0.7978846, %v3695_v29  ;;  %v3694_v24 = vadd.f32 %v3692_v30, %v3678_v60  ;;  %v5794_v60 = vld [vmem:[%s8391_s8 + $0xd0] sm:$0xff] }
 0xd46   :  { %6804 = vtanh.f32 %v3697_v6  ;;  %v3696_v61 = vmul.f32 0.7978846, %v3694_v24  ;;  %v8152_v6 = vld [vmem:[%s8399_s16 + $0x78] sm:$0xff] }
 0xd48   :  { %6806 = vtanh.f32 %v3696_v61  ;;  %v5799_v61 = vld [vmem:[%s8391_s8 + $0xe8] sm:$0xff] }
 0xd53   :  { %v6805_v32 = vpop.eup %6804 }
 0xd54   :  { %v3701_v56 = vadd.f32 1.0, %v6805_v32  ;;  %v8163_v32 = vld [vmem:[%s8399_s16 + $0x60] sm:$0xff] }
 0xd55   :  { %v6807_v3 = vpop.eup %6806 }
 0xd56   :  { %v8000_v8 = vmul.f32 %v3701_v56, %v3687_v53  ;;  %v3700_v10 = vadd.f32 1.0, %v6807_v3  ;;  %v5802_v53 = vld [vmem:[%s8391_s8 + $0xf0] sm:$0xff] }
 0xd57   :  { %v8173_v56 = vld [vmem:[%s8399_s16 + $0x70] sm:$0xff] }
 0xd58   :  { %3709 = vrot.lane.b32.xlu1 %v8000_v8, %s6919_s27  ;;  %3718 = vrot.lane.b32.xlu0 %v8000_v8, %s6916_s2  ;;  %v8006_v11 = vmul.f32 %v3700_v10, %v3686_v54  ;;  %v5803_v10 = vld [vmem:[%s8391_s8 + $0xf8] sm:$0xff]  ;;  %v8183_v54 = vld [vmem:[%s8399_s16 + $0x88] sm:$0xff] }
 0xd5c   :  { %3889 = vrot.lane.b32.xlu0 %v8000_v8, %s6920_s1  ;;  %3707 = vrot.lane.b32.xlu1 %v8006_v11, %s6919_s27 }
 0xd60   :  { %3981 = vrot.lane.b32.xlu0 %v8000_v8, %s6921_s28  ;;  %3887 = vrot.lane.b32.xlu1 %v8006_v11, %s6920_s1 }
 0xd64   :  { %3979 = vrot.lane.b32.xlu1 %v8006_v11, %s6921_s28  ;;  %3716 = vrot.lane.b32.xlu0 %v8006_v11, %s6916_s2 }
 0xd68   :  { %4157 = vrot.lane.b32.xlu1 %v8006_v11, %s6922_s0  ;;  %4159 = vrot.lane.b32.xlu0 %v8000_v8, %s6922_s0 }
 0xd6c   :  { %4249 = vrot.lane.b32.xlu1 %v8006_v11, %s6923_s6  ;;  %4251 = vrot.lane.b32.xlu0 %v8000_v8, %s6923_s6 }
 0xd70   :  { %4341 = vrot.lane.b32.xlu1 %v8006_v11, %s6924_s14  ;;  %4343 = vrot.lane.b32.xlu0 %v8000_v8, %s6924_s14 }
 0xd74   :  { %4433 = vrot.lane.b32.xlu1 %v8006_v11, %s6925_s29  ;;  %4435 = vrot.lane.b32.xlu0 %v8000_v8, %s6925_s29 }
 0xd78   :  { %4527 = vperm.xlu1 %6759, %v5776_v9   ;;  %4532 = vperm.xlu0 %6758, %v5777_v7   ;;  %v5806_v9 = vld [vmem:[%s8391_s8 + $0x100] sm:$0xff]  ;;  %v5807_v7 = vld [vmem:[%s8391_s8 + $0x108] sm:$0xff] }
 0xdca   :  { %v3719_v28 = vpop.permute.xlu0 %3718  ;;  %v3710_v35 = vpop.permute.xlu1 %3709 }
 0xdcb   :  { %v3721_v37 = vmul.f32 %v8049_v36, %v3719_v28  ;;  %v3712_v40 = vmul.f32 %v8055_v38, %v3710_v35  ;;  %v5810_v28 = vld [vmem:[%s8391_s8 + $0x110] sm:$0xff]  ;;  %v8200_v35 = vld [vmem:[%s8399_s16 + $0x80] sm:$0xff] }
 0xdcd   :  { %6596 = vmatprep.subr.mxu1 %v3721_v37  ;;  %6603 = vmatprep.subr.mxu0 %v3712_v40 }
 0xdce   :  { %6597 = vmatpush3.msra.mxu1 %v3721_v37  ;;  %v3890_v41 = vpop.permute.xlu0 %3889  ;;  %6604 = vmatpush3.msra.mxu0 %v3712_v40  ;;  %v3708_v43 = vpop.permute.xlu1 %3707  ;;  %v5811_v40 = vld [vmem:[%s8391_s8 + $0x118] sm:$0xff] }
 0xdcf   :  { %v3711_v45 = vmul.f32 %v8061_v44, %v3708_v43  ;;  %v3892_v16 = vmul.f32 %v8096_v46, %v3890_v41 }
 0xdd1   :  { %6605 = vmatprep.subr.mxu0 %v3711_v45 }
 0xdd2   :  { %v3982_v50 = vpop.permute.xlu0 %3981  ;;  %6606 = vmatpush3.msra.mxu0 %v3711_v45  ;;  %v3888_v5 = vpop.permute.xlu1 %3887 }
 0xdd3   :  { %v3984_v51 = vmul.f32 %v8073_v23, %v3982_v50  ;;  %6608 = vmatmul.mubr.msk.f32.vlgmr.msra.gmra.mxu0 %vm1306_vm11, %v5779_v47  ;;  %v3891_v21 = vmul.f32 %v8105_v19, %v3888_v5 }
 0xdd4   :  { %6621 = vmatprep.mubr.msk.f32.mxu0 %vm1306_vm11, %v5790_v48 }
 0xdd5   :  { %6617 = vmatprep.subr.mxu0 %v3984_v51 }
 0xdd6   :  { %v3717_v26 = vpop.permute.xlu0 %3716  ;;  %6618 = vmatpush3.msra.mxu0 %v3984_v51  ;;  %v3980_v20 = vpop.permute.xlu1 %3979 }
 0xdd7   :  { %v3720_v31 = vmul.f32 %v8081_v42, %v3717_v26  ;;  %v3983_v34 = vmul.f32 %v8087_v15, %v3980_v20 }
 0xdd9   :  { %6598 = vmatprep.subr.mxu1 %v3720_v31  ;;  %6619 = vmatprep.subr.mxu0 %v3983_v34 }
 0xdda   :  { %6599 = vmatpush3.msra.mxu1 %v3720_v31  ;;  %v4160_v49 = vpop.permute.xlu0 %4159  ;;  %6620 = vmatpush3.msra.mxu0 %v3983_v34  ;;  %v4158_v18 = vpop.permute.xlu1 %4157 }
 0xddb   :  { %v4162_v2 = vmul.f32 %v8111_v22, %v4160_v49  ;;  %6610 = vmatprep.subr.mxu1 %v3892_v16  ;;  %6601 = vmatmul.mubr.msk.f32.vlgmr.msra.gmra.mxu1 %vm1306_vm11, %v5781_v13  ;;  %v4161_v58 = vmul.f32 %v8125_v14, %v4158_v18 }
 0xddc   :  { %6611 = vmatpush3.msra.mxu1 %v3892_v16  ;;  %6622 = vmatmul.mubr.msk.f32.vlgmr.msra.gmra.mxu0 %vm1306_vm11, %v5791_v17 }
 0xddd   :  { %6612 = vmatprep.subr.mxu1 %v3891_v21  ;;  %6631 = vmatprep.subr.mxu0 %v4162_v2 }
 0xdde   :  { %v4252_v4 = vpop.permute.xlu0 %4251  ;;  %6613 = vmatpush3.msra.mxu1 %v3891_v21  ;;  %6632 = vmatpush3.msra.mxu0 %v4162_v2  ;;  %v4250_v57 = vpop.permute.xlu1 %4249 }
 0xddf   :  { %6614 = vmatprep.mubr.msk.f32.mxu1 %vm1306_vm11, %v5786_v25  ;;  %6624 = vmatprep.subr.mxu1 %v8000_v8  ;;  %v4254_v62 = vmul.f32 %v8144_v59, %v4252_v4  ;;  %v4253_v0 = vmul.f32 %v8163_v32, %v4250_v57 }
 0xde0   :  { %6633 = vmatprep.subr.mxu0 %v4161_v58  ;;  %6615 = vmatmul.mubr.msk.f32.vlgmr.msra.gmra.mxu1 %vm1306_vm11, %v5787_v1 }
 0xde1   :  { %6625 = vmatpush3.msra.mxu1 %v8000_v8  ;;  %6634 = vmatpush3.msra.mxu0 %v4161_v58 }
 0xde2   :  { %6626 = vmatprep.subr.mxu1 %v8006_v11  ;;  %v4344_v29 = vpop.permute.xlu0 %4343  ;;  %v4342_v30 = vpop.permute.xlu1 %4341  ;;  %6628 = vmatprep.mubr.msk.f32.mxu1 %vm1306_vm11, %v5794_v60 }
 0xde3   :  { %v4346_v24 = vmul.f32 %v8152_v6, %v4344_v29  ;;  %6627 = vmatpush3.msra.mxu1 %v8006_v11  ;;  %6635 = vmatprep.mubr.msk.f32.mxu0 %vm1306_vm11, %v5798_v27  ;;  %v4345_v3 = vmul.f32 %v8173_v56, %v4342_v30 }
 0xde4   :  { %6638 = vmatprep.subr.mxu1 %v4254_v62  ;;  %6629 = vmatmul.mubr.msk.f32.vlgmr.msra.gmra.mxu1 %vm1306_vm11, %v5795_v12 }
 0xde5   :  { %6639 = vmatpush3.msra.mxu1 %v4254_v62  ;;  %6645 = vmatprep.subr.mxu0 %v4346_v24 }
 0xde6   :  { %6640 = vmatprep.subr.mxu1 %v4253_v0  ;;  %v4436_v8 = vpop.permute.xlu0 %4435  ;;  %6636 = vmatmul.mubr.msk.f32.vlgmr.msra.gmra.mxu0 %vm1306_vm11, %v5799_v61  ;;  %v4434_v55 = vpop.permute.xlu1 %4433 }
 0xde7   :  { %v4438_v11 = vmul.f32 %v8183_v54, %v4436_v8  ;;  %6641 = vmatpush3.msra.mxu1 %v4253_v0  ;;  %6646 = vmatpush3.msra.mxu0 %v4346_v24  ;;  %v4437_v37 = vmul.f32 %v8200_v35, %v4434_v55 }
 0xde8   :  { %6647 = vmatprep.subr.mxu0 %v4345_v3  ;;  %6642 = vmatprep.mubr.msk.f32.mxu1 %vm1306_vm11, %v5802_v53 }
 0xde9   :  { %6648 = vmatpush3.msra.mxu0 %v4345_v3  ;;  %6643 = vmatmul.mubr.msk.f32.vlgmr.msra.gmra.mxu1 %vm1306_vm11, %v5803_v10 }
 0xdea   :  { %6652 = vmatprep.subr.mxu1 %v4438_v11  ;;  %6649 = vmatprep.mubr.msk.f32.mxu0 %vm1306_vm11, %v5806_v9 }
 0xdeb   :  { %6653 = vmatpush3.msra.mxu1 %v4438_v11  ;;  %6650 = vmatmul.mubr.msk.f32.vlgmr.msra.gmra.mxu0 %vm1306_vm11, %v5807_v7 }
 0xdec   :  { %6654 = vmatprep.subr.mxu1 %v4437_v37  ;;  %6656 = vmatprep.mubr.msk.f32.mxu1 %vm1306_vm11, %v5810_v28 }
 0xded   :  { %6655 = vmatpush3.msra.mxu1 %v4437_v37 }
 0xdee   :  { %6657 = vmatmul.mubr.msk.f32.vlgmr.msra.gmra.mxu1 %vm1306_vm11, %v5811_v40 }
 0xdf3   :  { %v4533_v0 = vpop.permute.xlu0 %4532  ;;  %v4528_v10 = vpop.permute.xlu1 %4527 }
 0xe93   :  { %v6609_v41 = vpop.f32.mrf.mxu0 }
 0xe95   :  { %v3878_v45 = vpop.f32.mrf.mxu0 }
 0xe9b   :  { %v6602_v43 = vpop.f32.mrf.mxu1 }
 0xe9c   :  { %v3884_v48 = vadd.f32 %v6609_v41, %v6602_v43  ;;  %v6623_v50 = vpop.f32.mrf.mxu0 }
 0xe9d   :  { %v3797_v47 = vpop.f32.mrf.mxu1 }
 0xe9e   :  { %v3879_v51 = vadd.f32 %v3878_v45, %v3797_v47  ;;  %v4060_v31 = vpop.f32.mrf.mxu0 }
 0xea0   :  { %v6616_v5 = vpop.f32.mrf.mxu1 }
 0xea1   :  { %v3978_v26 = vadd.f32 %v6616_v5, %v3884_v48 }
 0xea2   :  { %v3968_v20 = vpop.f32.mrf.mxu1 }
 0xea3   :  { %v3977_v34 = vadd.f32 %v3968_v20, %v3879_v51  ;;  %v4070_v13 = vadd.f32 %v6623_v50, %v3978_v26  ;;  %v5816_v50 = vld [vmem:[%s8393_s10 + $0x90] sm:$0xff] }
 0xea4   :  { %v6630_v16 = vpop.f32.mrf.mxu1  ;;  %6670 = vmatprep.mubr.msk.f32.mxu1 %vm1306_vm11, %v5816_v50  ;;  %v5841_v50 = vld [vmem:[%s8393_s10 + $0xf8] sm:$0xff] }
 0xea5   :  { %v4069_v17 = vadd.f32 %v4060_v31, %v3977_v34  ;;  %v4156_v49 = vadd.f32 %v6630_v16, %v4070_v13  ;;  %v5818_v16 = vld [vmem:[%s8393_s10 + $0xa0] sm:$0xff] }
 0xea6   :  { %v4146_v18 = vpop.f32.mrf.mxu1  ;;  %v6637_v21 = vpop.f32.mrf.mxu0  ;;  %6663 = vmatprep.mubr.msk.f32.mxu0 %vm1306_vm11, %v5818_v16 }
 0xea7   :  { %v4155_v2 = vadd.f32 %v4146_v18, %v4069_v17  ;;  %v4248_v25 = vadd.f32 %v6637_v21, %v4156_v49  ;;  %v5814_v17 = vld [vmem:[%s8394_s11 + $0x10] sm:$0xff]  ;;  %v5815_v49 = vld [vmem:[%s8394_s11 + $0x18] sm:$0xff] }
 0xea8   :  { %v4238_v1 = vpop.f32.mrf.mxu0  ;;  %v5858_v18 = vld [vmem:[%s8396_s13 + $0x30] sm:$0xff]  ;;  %v5859_v21 = vld [vmem:[%s8396_s13 + $0x38] sm:$0xff] }
 0xea9   :  { %v4247_v58 = vadd.f32 %v4238_v1, %v4155_v2  ;;  %v6644_v4 = vpop.f32.mrf.mxu1  ;;  %v5856_v2 = vld [vmem:[%s8396_s13 + $0x20] sm:$0xff] }
 0xeaa   :  { %v4340_v57 = vadd.f32 %v6644_v4, %v4248_v25  ;;  %v5857_v25 = vld [vmem:[%s8396_s13 + $0x28] sm:$0xff]  ;;  %v5538_v1 = vld [vmem:[%s8398_s15] sm:$0xff] }
 0xeab   :  { %v4330_v60 = vpop.f32.mrf.mxu1  ;;  %v6651_v27 = vpop.f32.mrf.mxu0 }
 0xeac   :  { %v4339_v12 = vadd.f32 %v4330_v60, %v4247_v58  ;;  %v4432_v62 = vadd.f32 %v6651_v27, %v4340_v57 }
 0xead   :  { %v4422_v29 = vpop.f32.mrf.mxu0 }
 0xeae   :  { %v6658_v30 = vpop.f32.mrf.mxu1  ;;  %v4431_v24 = vadd.f32 %v4422_v29, %v4339_v12  ;;  %v5817_v29 = vld [vmem:[%s8393_s10 + $0x98] sm:$0xff] }
 0xeaf   :  { %v4524_v61 = vadd.f32 %v6658_v30, %v4432_v62  ;;  %v5828_v30 = vld [vmem:[%s8393_s10 + $0xc0] sm:$0xff] }
 0xeb0   :  { %v4514_v53 = vpop.f32.mrf.mxu1 }
 0xeb1   :  { %v4536_v3 = vadd.f32 %v4533_v0, %v4524_v61  ;;  %v4523_v8 = vadd.f32 %v4514_v53, %v4431_v24 }
 0xeb3   :  { %v4540_v11 = vmul.f32 0.044715, %v4536_v3  ;;  %v4535_v55 = vadd.f32 %v4528_v10, %v4523_v8  ;;  %v4538_v5 = vmul.f32 0.5, %v4536_v3 }
 0xeb5   :  { %v4542_v9 = vmul.f32 %v4540_v11, %v4536_v3  ;;  %v4539_v7 = vmul.f32 0.044715, %v4535_v55  ;;  %v4537_v34 = vmul.f32 0.5, %v4535_v55 }
 0xeb7   :  { %v4544_v28 = vmul.f32 %v4542_v9, %v4536_v3  ;;  %v4541_v37 = vmul.f32 %v4539_v7, %v4535_v55  ;;  %v5832_v7 = vld [vmem:[%s8393_s10 + $0xd0] sm:$0xff] }
 0xeb9   :  { %v4546_v40 = vadd.f32 %v4544_v28, %v4536_v3  ;;  %v4543_v41 = vmul.f32 %v4541_v37, %v4535_v55  ;;  %v5819_v3 = vld [vmem:[%s8393_s10 + $0xa8] sm:$0xff]  ;;  %v5836_v28 = vld [vmem:[%s8393_s10 + $0xe0] sm:$0xff] }
 0xebb   :  { %v4548_v43 = vmul.f32 0.7978846, %v4546_v40  ;;  %v4545_v45 = vadd.f32 %v4543_v41, %v4535_v55  ;;  %v5825_v55 = vld [vmem:[%s8393_s10 + $0xb8] sm:$0xff] }
 0xebd   :  { %6808 = vtanh.f32 %v4548_v43  ;;  %v4547_v47 = vmul.f32 0.7978846, %v4545_v45  ;;  %v5837_v45 = vld [vmem:[%s8393_s10 + $0xe8] sm:$0xff] }
 0xebf   :  { %6810 = vtanh.f32 %v4547_v47 }
 0xeca   :  { %v6809_v48 = vpop.eup %6808 }
 0xecb   :  { %v4552_v51 = vadd.f32 1.0, %v6809_v48 }
 0xecc   :  { %v6811_v26 = vpop.eup %6810 }
 0xecd   :  { %v8214_v20 = vmul.f32 %v4552_v51, %v4538_v5  ;;  %v4551_v31 = vadd.f32 1.0, %v6811_v26  ;;  %v5844_v51 = vld [vmem:[%s8393_s10 + $0x100] sm:$0xff] }
 0xecf   :  { %4560 = vrot.lane.b32.xlu1 %v8214_v20, %s6919_s27  ;;  %4569 = vrot.lane.b32.xlu0 %v8214_v20, %s6916_s2  ;;  %v8220_v13 = vmul.f32 %v4551_v31, %v4537_v34 }
 0xed3   :  { %4740 = vrot.lane.b32.xlu0 %v8214_v20, %s6920_s1  ;;  %4558 = vrot.lane.b32.xlu1 %v8220_v13, %s6919_s27 }
 0xed7   :  { %4832 = vrot.lane.b32.xlu0 %v8214_v20, %s6921_s28  ;;  %4738 = vrot.lane.b32.xlu1 %v8220_v13, %s6920_s1 }
 0xedb   :  { %4830 = vrot.lane.b32.xlu1 %v8220_v13, %s6921_s28  ;;  %4567 = vrot.lane.b32.xlu0 %v8220_v13, %s6916_s2 }
 0xedf   :  { %5008 = vrot.lane.b32.xlu1 %v8220_v13, %s6922_s0  ;;  %5010 = vrot.lane.b32.xlu0 %v8214_v20, %s6922_s0 }
 0xee3   :  { %5100 = vrot.lane.b32.xlu1 %v8220_v13, %s6923_s6  ;;  %5102 = vrot.lane.b32.xlu0 %v8214_v20, %s6923_s6 }
 0xee7   :  { %5192 = vrot.lane.b32.xlu1 %v8220_v13, %s6924_s14  ;;  %5194 = vrot.lane.b32.xlu0 %v8214_v20, %s6924_s14 }
 0xeeb   :  { %5284 = vrot.lane.b32.xlu1 %v8220_v13, %s6925_s29  ;;  %5286 = vrot.lane.b32.xlu0 %v8214_v20, %s6925_s29 }
 0xeef   :  { %5378 = vperm.xlu1 %6759, %v5814_v17   ;;  %5383 = vperm.xlu0 %6758, %v5815_v49  }
 0xef3   :  { %5428 = vperm.xlu1 %6759, %v5858_v18   ;;  %5433 = vperm.xlu0 %6758, %v5859_v21  }
 0xef7   :  { %5418 = vperm.xlu1 %6759, %v5856_v2   ;;  %5423 = vperm.xlu0 %6758, %v5857_v25  }
 0xefb   :  { %5541 = vperm.xlu0 %6758, %v5538_v1  }
 0xf41   :  { %v4570_v58 = vpop.permute.xlu0 %4569  ;;  %v4561_v4 = vpop.permute.xlu1 %4560 }
 0xf42   :  { %v4572_v57 = vmul.f32 %v8049_v36, %v4570_v58  ;;  %v4563_v60 = vmul.f32 %v8055_v38, %v4561_v4 }
 0xf44   :  { %6659 = vmatprep.subr.mxu0 %v4572_v57  ;;  %6666 = vmatprep.subr.mxu1 %v4563_v60 }
 0xf45   :  { %6660 = vmatpush3.msra.mxu0 %v4572_v57  ;;  %v4741_v27 = vpop.permute.xlu0 %4740  ;;  %6667 = vmatpush3.msra.mxu1 %v4563_v60  ;;  %v4559_v12 = vpop.permute.xlu1 %4558 }
 0xf46   :  { %v4562_v62 = vmul.f32 %v8061_v44, %v4559_v12  ;;  %v4743_v8 = vmul.f32 %v8096_v46, %v4741_v27  ;;  %v5824_v46 = vld [vmem:[%s8393_s10 + $0xb0] sm:$0xff] }
 0xf48   :  { %6668 = vmatprep.subr.mxu1 %v4562_v62 }
 0xf49   :  { %v4833_v36 = vpop.permute.xlu0 %4832  ;;  %6669 = vmatpush3.msra.mxu1 %v4562_v62  ;;  %v4739_v38 = vpop.permute.xlu1 %4738 }
 0xf4a   :  { %v4835_v24 = vmul.f32 %v8073_v23, %v4833_v36  ;;  %6671 = vmatmul.mubr.msk.f32.vlgmr.msra.gmra.mxu1 %vm1306_vm11, %v5817_v29  ;;  %v5829_v23 = vld [vmem:[%s8393_s10 + $0xc8] sm:$0xff] }
 0xf4b   :  { %6684 = vmatprep.mubr.msk.f32.mxu1 %vm1306_vm11, %v5828_v30 }
 0xf4c   :  { %6680 = vmatprep.subr.mxu1 %v4835_v24 }
 0xf4d   :  { %v4568_v44 = vpop.permute.xlu0 %4567  ;;  %6681 = vmatpush3.msra.mxu1 %v4835_v24  ;;  %v4831_v61 = vpop.permute.xlu1 %4830 }
 0xf4e   :  { %v4571_v0 = vmul.f32 %v8081_v42, %v4568_v44  ;;  %v4834_v53 = vmul.f32 %v8087_v15, %v4831_v61  ;;  %v4742_v42 = vmul.f32 %v8105_v19, %v4739_v38 }
 0xf50   :  { %6661 = vmatprep.subr.mxu0 %v4571_v0  ;;  %6682 = vmatprep.subr.mxu1 %v4834_v53 }
 0xf51   :  { %6662 = vmatpush3.msra.mxu0 %v4571_v0  ;;  %v5011_v10 = vpop.permute.xlu0 %5010  ;;  %6683 = vmatpush3.msra.mxu1 %v4834_v53  ;;  %v5009_v11 = vpop.permute.xlu1 %5008 }
 0xf52   :  { %v5013_v15 = vmul.f32 %v8111_v22, %v5011_v10  ;;  %6673 = vmatprep.subr.mxu0 %v4743_v8  ;;  %6664 = vmatmul.mubr.msk.f32.vlgmr.msra.gmra.mxu0 %vm1306_vm11, %v5819_v3  ;;  %v5012_v19 = vmul.f32 %v8125_v14, %v5009_v11  ;;  %v5833_v14 = vld [vmem:[%s8393_s10 + $0xd8] sm:$0xff] }
 0xf53   :  { %6674 = vmatpush3.msra.mxu0 %v4743_v8  ;;  %6685 = vmatmul.mubr.msk.f32.vlgmr.msra.gmra.mxu1 %vm1306_vm11, %v5829_v23 }
 0xf54   :  { %6675 = vmatprep.subr.mxu0 %v4742_v42  ;;  %6694 = vmatprep.subr.mxu1 %v5013_v15 }
 0xf55   :  { %v5103_v9 = vpop.permute.xlu0 %5102  ;;  %6676 = vmatpush3.msra.mxu0 %v4742_v42  ;;  %6695 = vmatpush3.msra.mxu1 %v5013_v15  ;;  %v5101_v22 = vpop.permute.xlu1 %5100 }
 0xf56   :  { %6677 = vmatprep.mubr.msk.f32.mxu0 %vm1306_vm11, %v5824_v46  ;;  %6687 = vmatprep.subr.mxu0 %v8214_v20  ;;  %v5105_v37 = vmul.f32 %v8144_v59, %v5103_v9  ;;  %v5104_v47 = vmul.f32 %v8163_v32, %v5101_v22  ;;  %v5840_v59 = vld [vmem:[%s8393_s10 + $0xf0] sm:$0xff] }
 0xf57   :  { %6696 = vmatprep.subr.mxu1 %v5012_v19  ;;  %6678 = vmatmul.mubr.msk.f32.vlgmr.msra.gmra.mxu0 %vm1306_vm11, %v5825_v55 }
 0xf58   :  { %6688 = vmatpush3.msra.mxu0 %v8214_v20  ;;  %6697 = vmatpush3.msra.mxu1 %v5012_v19  ;;  %v5849_v20 = vld [vmem:[%s8393_s10 + $0x118] sm:$0xff] }
 0xf59   :  { %6689 = vmatprep.subr.mxu0 %v8220_v13  ;;  %v5195_v40 = vpop.permute.xlu0 %5194  ;;  %v5193_v41 = vpop.permute.xlu1 %5192  ;;  %6691 = vmatprep.mubr.msk.f32.mxu0 %vm1306_vm11, %v5832_v7 }
 0xf5a   :  { %v5197_v43 = vmul.f32 %v8152_v6, %v5195_v40  ;;  %6690 = vmatpush3.msra.mxu0 %v8220_v13  ;;  %6698 = vmatprep.mubr.msk.f32.mxu1 %vm1306_vm11, %v5836_v28  ;;  %v5196_v6 = vmul.f32 %v8173_v56, %v5193_v41  ;;  %v5845_v56 = vld [vmem:[%s8393_s10 + $0x108] sm:$0xff] }
 0xf5b   :  { %6701 = vmatprep.subr.mxu0 %v5105_v37  ;;  %6692 = vmatmul.mubr.msk.f32.vlgmr.msra.gmra.mxu0 %vm1306_vm11, %v5833_v14 }
 0xf5c   :  { %6702 = vmatpush3.msra.mxu0 %v5105_v37  ;;  %6708 = vmatprep.subr.mxu1 %v5197_v43 }
 0xf5d   :  { %6703 = vmatprep.subr.mxu0 %v5104_v47  ;;  %v5287_v48 = vpop.permute.xlu0 %5286  ;;  %6699 = vmatmul.mubr.msk.f32.vlgmr.msra.gmra.mxu1 %vm1306_vm11, %v5837_v45  ;;  %v5285_v5 = vpop.permute.xlu1 %5284 }
 0xf5e   :  { %v5289_v32 = vmul.f32 %v8183_v54, %v5287_v48  ;;  %6704 = vmatpush3.msra.mxu0 %v5104_v47  ;;  %6709 = vmatpush3.msra.mxu1 %v5197_v43  ;;  %v5848_v54 = vld [vmem:[%s8393_s10 + $0x110] sm:$0xff]  ;;  %v5288_v26 = vmul.f32 %v8200_v35, %v5285_v5  ;;  %v5852_v35 = vld [vmem:[%s8395_s12 + $0x20] sm:$0xff] }
 0xf5f   :  { %6710 = vmatprep.subr.mxu1 %v5196_v6  ;;  %6705 = vmatprep.mubr.msk.f32.mxu0 %vm1306_vm11, %v5840_v59 }
 0xf60   :  { %6711 = vmatpush3.msra.mxu1 %v5196_v6  ;;  %6706 = vmatmul.mubr.msk.f32.vlgmr.msra.gmra.mxu0 %vm1306_vm11, %v5841_v50 }
 0xf61   :  { %6715 = vmatprep.subr.mxu0 %v5289_v32  ;;  %6712 = vmatprep.mubr.msk.f32.mxu1 %vm1306_vm11, %v5844_v51 }
 0xf62   :  { %6716 = vmatpush3.msra.mxu0 %v5289_v32  ;;  %6713 = vmatmul.mubr.msk.f32.vlgmr.msra.gmra.mxu1 %vm1306_vm11, %v5845_v56 }
 0xf63   :  { %6717 = vmatprep.subr.mxu0 %v5288_v26  ;;  %6719 = vmatprep.mubr.msk.f32.mxu0 %vm1306_vm11, %v5848_v54  ;;  %v5853_v54 = vld [vmem:[%s8395_s12 + $0x28] sm:$0xff] }
 0xf64   :  { %6718 = vmatpush3.msra.mxu0 %v5288_v26  ;;  %6726 = vmatprep.mubr.msk.f32.mxu1 %vm1306_vm11, %v5852_v35  ;;  %v5854_v26 = vld [vmem:[%s8395_s12 + $0x30] sm:$0xff]  ;;  %v6926_v35 = vmov 0.0  }
 0xf65   :  { %6720 = vmatmul.mubr.msk.f32.vlgmr.msra.gmra.mxu0 %vm1306_vm11, %v5849_v20  ;;  %v5855_v20 = vld [vmem:[%s8395_s12 + $0x38] sm:$0xff]  ;;  %6732 = vmatprep.subr.mxu0 %v6926_v35 }
 0xf66   :  { %6740 = vmatprep.mubr.msk.f32.mxu0 %vm6927_vm12, %v6926_v35 }
 0xf6a   :  { %v5384_v42 = vpop.permute.xlu0 %5383  ;;  %v5379_v19 = vpop.permute.xlu1 %5378 }
0x100a   :  { %v6672_v31 = vpop.f32.mrf.mxu1 }
0x100c   :  { %v4729_v13 = vpop.f32.mrf.mxu1 }
0x1012   :  { %v6665_v34 = vpop.f32.mrf.mxu0 }
0x1013   :  { %v4735_v17 = vadd.f32 %v6672_v31, %v6665_v34  ;;  %v6686_v49 = vpop.f32.mrf.mxu1  ;;  %v5434_v31 = vpop.permute.xlu0 %5433 }
0x1014   :  { %v4648_v16 = vpop.f32.mrf.mxu0 }
0x1015   :  { %v4730_v21 = vadd.f32 %v4729_v13, %v4648_v16  ;;  %v4911_v1 = vpop.f32.mrf.mxu1  ;;  %v5429_v13 = vpop.permute.xlu1 %5428 }
0x1017   :  { %v6679_v18 = vpop.f32.mrf.mxu0 }
0x1018   :  { %v4829_v2 = vadd.f32 %v6679_v18, %v4735_v17  ;;  %v5424_v18 = vpop.permute.xlu0 %5423 }
0x1019   :  { %v4819_v25 = vpop.f32.mrf.mxu0 }
0x101a   :  { %v4828_v58 = vadd.f32 %v4819_v25, %v4730_v21  ;;  %v4921_v4 = vadd.f32 %v6686_v49, %v4829_v2 }
0x101b   :  { %v6693_v57 = vpop.f32.mrf.mxu0 }
0x101c   :  { %v4920_v60 = vadd.f32 %v4911_v1, %v4828_v58  ;;  %v5007_v27 = vadd.f32 %v6693_v57, %v4921_v4  ;;  %v5419_v58 = vpop.permute.xlu1 %5418 }
0x101d   :  { %v4997_v12 = vpop.f32.mrf.mxu0  ;;  %v6700_v62 = vpop.f32.mrf.mxu1 }
0x101e   :  { %v5006_v29 = vadd.f32 %v4997_v12, %v4920_v60  ;;  %v5099_v30 = vadd.f32 %v6700_v62, %v5007_v27  ;;  %v5537_v12 = vld [vmem:[#allocation6] sm:$0xff] }
0x101f   :  { %v5089_v36 = vpop.f32.mrf.mxu1 }
0x1020   :  { %v5098_v38 = vadd.f32 %v5089_v36, %v5006_v29  ;;  %v6707_v24 = vpop.f32.mrf.mxu0 }
0x1021   :  { %v5191_v44 = vadd.f32 %v6707_v24, %v5099_v30 }
0x1022   :  { %v5181_v61 = vpop.f32.mrf.mxu0  ;;  %v6714_v0 = vpop.f32.mrf.mxu1 }
0x1023   :  { %v5190_v53 = vadd.f32 %v5181_v61, %v5098_v38  ;;  %v5283_v3 = vadd.f32 %v6714_v0, %v5191_v44 }
0x1024   :  { %v5273_v8 = vpop.f32.mrf.mxu1 }
0x1025   :  { %v6721_v23 = vpop.f32.mrf.mxu0  ;;  %v5282_v10 = vadd.f32 %v5273_v8, %v5190_v53 }
0x1026   :  { %v5375_v11 = vadd.f32 %v6721_v23, %v5283_v3 }
0x1027   :  { %v5365_v15 = vpop.f32.mrf.mxu0 }
0x1028   :  { %v5387_v46 = vadd.f32 %v5384_v42, %v5375_v11  ;;  %v5374_v55 = vadd.f32 %v5365_v15, %v5282_v10 }
0x102a   :  { %v5396_v9 = vmul.f32 0.044715, %v5387_v46  ;;  %v5386_v22 = vadd.f32 %v5379_v19, %v5374_v55  ;;  %v5394_v6 = vmul.f32 0.5, %v5387_v46 }
0x102c   :  { %v5395_v7 = vmul.f32 0.044715, %v5386_v22  ;;  %v5398_v28 = vmul.f32 %v5396_v9, %v5387_v46  ;;  %v5393_v5 = vmul.f32 0.5, %v5386_v22 }
0x102e   :  { %v5400_v14 = vmul.f32 %v5398_v28, %v5387_v46  ;;  %v5397_v37 = vmul.f32 %v5395_v7, %v5386_v22 }
0x1030   :  { %v5402_v40 = vadd.f32 %v5400_v14, %v5387_v46  ;;  %v5399_v41 = vmul.f32 %v5397_v37, %v5386_v22 }
0x1032   :  { %v5404_v43 = vmul.f32 0.7978846, %v5402_v40  ;;  %v5401_v45 = vadd.f32 %v5399_v41, %v5386_v22 }
0x1034   :  { %6812 = vtanh.f32 %v5404_v43  ;;  %v5403_v47 = vmul.f32 0.7978846, %v5401_v45 }
0x1036   :  { %6814 = vtanh.f32 %v5403_v47 }
0x1041   :  { %v6813_v59 = vpop.eup %6812 }
0x1042   :  { %v5408_v48 = vadd.f32 1.0, %v6813_v59 }
0x1043   :  { %v6815_v50 = vpop.eup %6814 }
0x1044   :  { %v5410_v32 = vmul.f32 %v5408_v48, %v5394_v6  ;;  %v5407_v51 = vadd.f32 1.0, %v6815_v50 }
0x1046   :  { %6722 = vmatprep.subr.mxu1 %v5410_v32  ;;  %v5409_v56 = vmul.f32 %v5407_v51, %v5393_v5 }
0x1047   :  { %6723 = vmatpush3.msra.mxu1 %v5410_v32 }
0x1048   :  { %6724 = vmatprep.subr.mxu1 %v5409_v56 }
0x1049   :  { %6725 = vmatpush3.msra.mxu1 %v5409_v56 }
0x104a   :  { %6727 = vmatmul.mubr.msk.f32.vlgmr.msra.gmra.mxu1 %vm1306_vm11, %v5853_v54 }
0x104b   :  { %6729 = vmatprep.mubr.msk.f32.mxu1 %vm1306_vm11, %v5854_v26 }
0x104e   :  { %6730 = vmatmul.mubr.msk.f32.gmra.mxu1 %vm1306_vm11, %v5855_v20 }
0x110a   :  { %v6728_v34 = vpop.f32.mrf.mxu1 }
0x110b   :  { %v5520_v2 = vadd.f32 %v6728_v34, %v5424_v18 }
0x110c   :  { %v5514_v16 = vpop.f32.mrf.mxu1 }
0x110d   :  { %v5515_v4 = vadd.f32 %v5514_v16, %v5419_v58  ;;  %v5534_v60 = vadd.f32 %v5520_v2, %v7965_v33 }
0x110e   :  { %v6731_v17 = vpop.f32.mrf.mxu1 }
0x110f   :  { %v5530_v49 = vadd.f32 %v6731_v17, %v5434_v31  ;;  %v5533_v27 = vadd.f32 %v5515_v4, %v7968_v63 }
0x1110   :  { %v5524_v21 = vpop.f32.mrf.mxu1 }
0x1111   :  { %v5536_v25 = vadd.f32 %v5530_v49, %v7972_v39  ;;  %v5525_v1 = vadd.f32 %v5524_v21, %v5429_v13  ;;  %v5542_v39 = vpop.permute.xlu0 %5541 }
0x1113   :  { %v5535_v57 = vadd.f32 %v5525_v1, %v7976_v52  ;;  %6733 = vmatpush3.msra.mxu0 %v5536_v25 }
0x1114   :  { %6734 = vmatprep.subr.mxu0 %v6926_v35 }
0x1115   :  { %6735 = vmatpush3.msra.mxu0 %v5535_v57 }
0x1116   :  { %6736 = vmatprep.subr.mxu0 %v6926_v35 }
0x1117   :  { %6737 = vmatpush3.msra.mxu0 %v5534_v60 }
0x1118   :  { %6738 = vmatprep.subr.mxu0 %v6926_v35 }
0x1119   :  { %6739 = vmatpush3.msra.mxu0 %v5533_v27 }
0x111a   :  { %6741 = vmatmul.mubr.msk.f32.vlgmr.msra.gmra.mxu0 %vm133_vm0, %v5537_v12 }
0x11da   :  { %v5613_v62 = vpop.f32.mrf.mxu0 }
0x11db   :  { %v5614_v29 = vadd.f32 %v5613_v62, %v5542_v39 }
0x11dc   :  { %v6742_v30 = vpop.f32.mrf.mxu0 }
0x11dd   :  { %5617 = vst [vmem:[%s8402_s19] sm:$0xff] %v5614_v29 }
0x11de   :  { %5622 = vsyncpa [#allocation3], 1 }
0x11df   :  { %5623 = vsyncpa [#allocation5], 1 }

</bundles_post_ra>
